<compile_context>
chip_gen: v7x
topology: tpu7x:2x2x1
jax: 0.10.0
libtpu: 0.0.40
codegen_flags: <defaults>
</compile_context>

<pallas_src>
import math
import functools
from typing import NamedTuple

import jax
import jax.numpy as jnp
from jax import lax
from jax.experimental import pallas as pl
from jax.experimental.pallas import tpu as pltpu


class HGNNConfig(NamedTuple):
    n_in: int
    n_head: int
    n_fc_out: int
    n_hid: int
    M: int
    Ledge: int
    Lhyper: int
    num_cores: int


# ----------------------------------------------------------------------------
# small in-kernel helpers (bf16 MXU operands, f32 accumulation / VPU math)
# ----------------------------------------------------------------------------
def _mm(a, b):
    return jnp.dot(a.astype(jnp.bfloat16), b.astype(jnp.bfloat16),
                   preferred_element_type=jnp.float32)


def _mmT0(a, b):
    """a.T @ b (contract dim 0 of both) -- avoids shipping transposed copies."""
    return lax.dot_general(a.astype(jnp.bfloat16), b.astype(jnp.bfloat16),
                           (((0,), (0,)), ((), ())),
                           preferred_element_type=jnp.float32)


def _mmT1(a, b):
    """a @ b.T (contract dim 1 of both)."""
    return lax.dot_general(a.astype(jnp.bfloat16), b.astype(jnp.bfloat16),
                           (((1,), (1,)), ((), ())),
                           preferred_element_type=jnp.float32)


def _softmax(x, axis=-1):
    m = jnp.max(x, axis=axis, keepdims=True)
    e = jnp.exp(x - m)
    return e * pl.reciprocal(jnp.sum(e, axis=axis, keepdims=True), approx=True)


def _softplus(x):
    return jnp.maximum(x, 0.0) + jnp.log(1.0 + jnp.exp(-jnp.abs(x)))


def _batched_spec(a):
    nd = a.ndim
    return pl.BlockSpec((1,) + a.shape[1:],
                        lambda b, _n=nd: (b,) + (0,) * (_n - 1))


def _const_spec(a):
    nd = a.ndim
    return pl.BlockSpec(a.shape, lambda b, _n=nd: (0,) * _n)


# ----------------------------------------------------------------------------
# Fused graph-pass kernel (encoder + hypergraph route + SeparateGRUs + gumbel)
# grid=(B,) "parallel"; all weights VMEM-resident; 3 lane-dense packed outputs.
# ----------------------------------------------------------------------------
_GP_BATCHED = ("x", "rr", "rs", "g_pim", "g_cg", "g_hg")
_GP_WEIGHTS = (
    "enc_w1", "enc_b1", "enc_w2", "enc_b2", "enc_ew", "enc_eb",
    "enc_aw", "enc_ab", "enc_sw", "enc_sb",
    "ecg_w1", "ecg_b1", "ecg_w2", "ecg_b2",
    "pim_w", "pim_b",
    "hge_w1", "hge_b1", "hge_w2", "hge_b2",
    "att_wq", "att_bq", "att_wk", "att_bk", "att_wv", "att_bv",
    "att_wo", "att_bo",
    "gru_e_wi", "gru_e_bi", "gru_e_ow", "gru_e_ob",
    "gru_h_wi", "gru_h_bi", "gru_h_ow", "gru_h_ob",
)
_GP_ARGS = _GP_BATCHED + _GP_WEIGHTS


def _graph_pass_kernel(*refs, tau, H, F, M, Ledge, Lhyper):
    nargs = len(_GP_ARGS)
    r = dict(zip(_GP_ARGS, refs[:nargs]))
    node_o, edge_o, hyper_o = refs[nargs:]

    x = r["x"][0]                                       # [N, T*n_in]
    R = r["rr"][0]                                      # [E, N]
    S = r["rs"][0]                                      # [E, N]
    N = x.shape[0]
    E = R.shape[0]
    inv_tau = 1.0 / tau

    # ---- MLPEncoder (TODO(synk): original source not provided; stand-in) ----
    h1 = jnp.maximum(_mm(x, r["enc_w1"][...]) + r["enc_b1"][...], 0.0)
    v_self = _mm(h1, r["enc_w2"][...]) + r["enc_b2"][...]                  # [N,H]
    recv_s = _mm(R, v_self)                                                # [E,H]
    send_s = _mm(S, v_self)
    edge_in = jnp.concatenate([recv_s, send_s], -1)                        # [E,2H]
    edge_feat = jnp.maximum(_mm(edge_in, r["enc_ew"][...]) + r["enc_eb"][...], 0.0)
    alpha_ij = jax.nn.sigmoid(_mm(edge_feat, r["enc_aw"][...]) + r["enc_ab"][...])
    agg = _mmT0(R, alpha_ij * edge_feat)                                   # [N,F]
    v_social = jnp.maximum(_mm(agg, r["enc_sw"][...]) + r["enc_sb"][...], 0.0)
    v_comb = jnp.concatenate([v_self, v_social], -1)                       # [N,H+F]

    # ---- e_cg_2 MLP on node2edge(v_combined) (single fused matmul) ----
    recv_c = _mm(R, v_social)
    send_c = _mm(S, v_social)
    ecg_in = jnp.concatenate([recv_s, recv_c, send_s, send_c], -1)         # [E,2(H+F)]
    h_ecg = jnp.maximum(_mm(ecg_in, r["ecg_w1"][...]) + r["ecg_b1"][...], 0.0)
    e_cg_2 = _mm(h_ecg, r["ecg_w2"][...]) + r["ecg_b2"][...]               # [E,F]

    # ---- f_PIM + hard gumbel-softmax (forward only; ties broken by tiny
    #      column bias -- TODO(synk): no straight-through estimator) ----
    I_PIM = _mm(v_comb, r["pim_w"][...]) + r["pim_b"][...]                 # [N,M]
    y = _softmax((I_PIM + r["g_pim"][0]) * inv_tau)
    col = lax.broadcasted_iota(jnp.int32, y.shape, 1).astype(jnp.float32)
    yb = y - col * 1e-6
    I_HG = (yb >= jnp.max(yb, -1, keepdims=True)).astype(jnp.float32)      # [N,M]

    # ---- compute_alpha_im (TODO(synk): source not provided; stand-in) ----
    send_member = _mm(S, I_HG)                                             # [E,M]
    alpha_im = _mmT0(R, alpha_ij * send_member)                            # [N,M]
    alpha_im = alpha_im * pl.reciprocal(
        jnp.sum(alpha_im, -1, keepdims=True) + 1e-6, approx=True)

    # ---- f_HG_E (TODO(synk): MLPHGE source not provided; stand-in) ----
    hm = _mmT0(alpha_im, v_comb)                                           # [M,H+F]
    hge_h = jnp.maximum(_mm(hm, r["hge_w1"][...]) + r["hge_b1"][...], 0.0)
    e_HG = _mm(hge_h, r["hge_w2"][...]) + r["hge_b2"][...]                 # [M,3F]

    # ---- HyperEdgeAttention (TODO(synk): source not provided; stand-in).
    #      scores kept [N,M] so no transposes are needed; softmax over nodes.
    q = _mm(e_HG, r["att_wq"][...]) + r["att_bq"][...]                     # [M,H]
    k = _mm(v_comb, r["att_wk"][...]) + r["att_bk"][...]                   # [N,H]
    v = _mm(v_comb, r["att_wv"][...]) + r["att_bv"][...]                   # [N,H]
    sc = _mmT1(k, q) * (1.0 / math.sqrt(H))                                # [N,M]
    sc = sc + (I_HG - 1.0) * 1e9        # membership mask, per-batch only
    m0 = jnp.max(sc, axis=0, keepdims=True)
    e0 = jnp.exp(sc - m0)
    attn = e0 * pl.reciprocal(jnp.sum(e0, axis=0, keepdims=True), approx=True)
    ctx = _mmT0(attn, v)                                                   # [M,H]
    att_in = jnp.concatenate([e_HG, ctx], -1)                              # [M,3F+H]
    e_HG_2 = _mm(att_in, r["att_wo"][...]) + r["att_bo"][...]              # [M,5F]

    # ---- SeparateGRUs (TODO(synk): source not provided; zero-h stand-in) ----
    def gru0(xin, wi, bi):
        gi = _mm(xin, wi[...]) + bi[...]
        zz = jax.nn.sigmoid(gi[:, H:2 * H])
        nn = jnp.tanh(gi[:, 2 * H:3 * H])
        return (1.0 - zz) * nn           # h0 = 0 => reset gate has no effect

    h_g = gru0(e_cg_2, r["gru_e_wi"], r["gru_e_bi"])                       # [E,H]
    h_hg = gru0(e_HG_2, r["gru_h_wi"], r["gru_h_bi"])                      # [M,H]
    edge_logits = _mm(h_g, r["gru_e_ow"][...]) + r["gru_e_ob"][...]
    hyper_logits = _mm(h_hg, r["gru_h_ow"][...]) + r["gru_h_ob"][...]
    z_CG = _softmax((edge_logits + r["g_cg"][0]) * inv_tau)
    z_HG = _softmax((hyper_logits + r["g_hg"][0]) * inv_tau)

    # ---- lane-dense packed outputs (pad to 128 lanes, full-block stores) ----
    node_o[0] = jnp.concatenate(
        [v_self, v_social, I_HG,
         jnp.zeros((N, 128 - (H + F + M)), jnp.float32)], -1)
    edge_o[0] = jnp.concatenate(
        [z_CG, h_g, jnp.zeros((E, 128 - (Ledge + H)), jnp.float32)], -1)
    hyper_o[0] = jnp.concatenate(
        [z_HG, h_hg, jnp.zeros((M, 128 - (Lhyper + H)), jnp.float32)], -1)


def graph_pass(p, cfg, inputs, rel_rec, rel_send, tau, key):
    B, N, T, n_in = inputs.shape
    E = rel_rec.shape[1]
    H, F, M = cfg.n_hid, cfg.n_fc_out, cfg.M
    Ledge, Lhyper = cfg.Ledge, cfg.Lhyper

    x = inputs.reshape(B, N, T * n_in).astype(jnp.float32)
    k1, k2, k3 = jax.random.split(key, 3)

    def gumbel(k, shape):
        u = jax.random.uniform(k, shape, minval=1e-10, maxval=1.0)
        return -jnp.log(-jnp.log(u))

    # TODO(synk): gumbel noise could be drawn in-kernel via pltpu.prng_*; kept
    # as three tiny host-side inputs for parity with jax.random.
    args = dict(x=x,
                rr=rel_rec.astype(jnp.float32),
                rs=rel_send.astype(jnp.float32),
                g_pim=gumbel(k1, (B, N, M)),
                g_cg=gumbel(k2, (B, E, Ledge)),
                g_hg=gumbel(k3, (B, M, Lhyper)))
    for name in _GP_WEIGHTS:
        args[name] = p[name]
    flat = [args[n] for n in _GP_ARGS]

    in_specs = ([_batched_spec(args[n]) for n in _GP_BATCHED] +
                [_const_spec(args[n]) for n in _GP_WEIGHTS])
    out_shapes = (
        jax.ShapeDtypeStruct((B, N, 128), jnp.float32),
        jax.ShapeDtypeStruct((B, E, 128), jnp.float32),
        jax.ShapeDtypeStruct((B, M, 128), jnp.float32),
    )
    out_specs = [
        pl.BlockSpec((1, N, 128), lambda b: (b, 0, 0)),
        pl.BlockSpec((1, E, 128), lambda b: (b, 0, 0)),
        pl.BlockSpec((1, M, 128), lambda b: (b, 0, 0)),
    ]

    node_o, edge_o, hyper_o = pl.pallas_call(
        functools.partial(_graph_pass_kernel, tau=tau, H=H, F=F, M=M,
                          Ledge=Ledge, Lhyper=Lhyper),
        grid=(B,),
        in_specs=in_specs,
        out_specs=out_specs,
        out_shape=out_shapes,
        compiler_params=pltpu.CompilerParams(
            dimension_semantics=("parallel",),
            vmem_limit_bytes=32 * 1024 * 1024),
    )(*flat)

    v_combined = node_o[..., :H + F]
    I_HG = node_o[..., H + F:H + F + M]
    z_CG = edge_o[..., :Ledge]
    h_g = edge_o[..., Ledge:Ledge + H]
    z_HG = hyper_o[..., :Lhyper]
    h_hg = hyper_o[..., Lhyper:Lhyper + H]
    return v_combined, z_CG, z_HG, I_HG, h_g, h_hg


# ----------------------------------------------------------------------------
# Fused decoder rollout: grid=(B,) "parallel", pl.loop over time inside one
# invocation, VMEM-resident weights, GRU state + last prediction in scratch,
# single packed lane-dense output per batch.
# ----------------------------------------------------------------------------
_DEC_BATCHED = ("inp", "rr", "rs", "zcg")
_DEC_WEIGHTS = ("dec_msg_w", "dec_msg_b", "dec_xemb_w", "dec_xemb_b",
                "dec_wi", "dec_bi", "dec_wh",
                "out_fc1_w", "out_fc1_b", "out_fc2_w", "out_fc2_b",
                "out_fc3_w", "out_fc3_b", "head_w", "head_b")
_DEC_ARGS = _DEC_BATCHED + _DEC_WEIGHTS


def _decoder_kernel(*refs, H, F, C, n_in, Ledge, pred_steps, burn, T_in, N_real):
    nargs = len(_DEC_ARGS)
    r = dict(zip(_DEC_ARGS, refs[:nargs]))
    out_ref = refs[nargs]
    h_scr, xp_scr = refs[nargs + 1:]

    R = r["rr"][0]                                   # [E, Np]
    S = r["rs"][0]
    zcg = r["zcg"][0]                                # [E, Ledge]
    Np = R.shape[1]
    E = R.shape[0]

    inp_view = r["inp"].at[0]                        # [T_in, Np, n_in] view
    out_view = out_ref.at[0]                         # [pred_steps, Np, 128] view

    h_scr[...] = jnp.zeros_like(h_scr)
    xp_scr[...] = inp_view[0]

    inv_n = 1.0 / float(N_real)
    burn_eff = min(burn, T_in)                       # static python int
    head_w_total = n_in + C + 2 * C * n_in
    zeros_pad = jnp.zeros((Np, 128 - head_w_total), jnp.float32)
    zeros_msg = jnp.zeros((E, F), jnp.float32)

    @pl.loop(0, pred_steps)
    def _(t):
        t_idx = jnp.minimum(t, T_in - 1)
        x_obs = inp_view[t_idx]                      # [Np, n_in]
        x_t = jnp.where(t < burn_eff, x_obs, xp_scr[...])
        h = h_scr[...]

        recv = _mm(R, h)                             # [E,H]
        send = _mm(S, h)
        rs_cat = jnp.concatenate([recv, send], -1)   # [E,2H]
        msg = zeros_msg
        for k in range(Ledge):                       # static unroll (Ledge small)
            pre = jnp.tanh(_mm(rs_cat, r["dec_msg_w"][k]) + r["dec_msg_b"][k])
            msg = msg + zcg[:, k:k + 1] * pre
        agg = _mmT0(R, msg) * inv_n                  # [Np,F]

        x_emb = jnp.maximum(_mm(x_t, r["dec_xemb_w"][...]) +
                            r["dec_xemb_b"][...], 0.0)
        xa = jnp.concatenate([x_emb, agg], -1)       # [Np,2F]

        # fused GRU gates: input_r/i/n (bias=True), hidden_r/i/h (bias=False)
        gi = _mm(xa, r["dec_wi"][...]) + r["dec_bi"][...]      # [Np,3H]
        gh = _mm(h, r["dec_wh"][...])                          # [Np,3H]
        rr_g = jax.nn.sigmoid(gi[:, 0:H] + gh[:, 0:H])
        ii_g = jax.nn.sigmoid(gi[:, H:2 * H] + gh[:, H:2 * H])
        nn_g = jnp.tanh(gi[:, 2 * H:3 * H] + rr_g * gh[:, 2 * H:3 * H])
        h_new = (1.0 - ii_g) * nn_g + ii_g * h
        h_scr[...] = h_new

        o1 = jnp.maximum(_mm(h_new, r["out_fc1_w"][...]) + r["out_fc1_b"][...], 0.0)
        o2 = jnp.maximum(_mm(o1, r["out_fc2_w"][...]) + r["out_fc2_b"][...], 0.0)
        delta = _mm(o2, r["out_fc3_w"][...]) + r["out_fc3_b"][...]
        pred = x_t + delta
        xp_scr[...] = pred

        # fused alpha/mu/sigma head (single matmul)
        head = _mm(h_new, r["head_w"][...]) + r["head_b"][...]  # [Np, C+2*C*n_in]
        a = _softmax(head[:, :C])
        x_rep = jnp.concatenate([x_t] * C, -1)                  # lane tile, no MXU
        mu = x_rep + head[:, C:C + C * n_in]
        sg = _softplus(head[:, C + C * n_in:]) + 1e-3

        slab = jnp.concatenate([pred, a, mu, sg, zeros_pad], -1)  # [Np,128]
        out_view[t] = slab


def decoder_forward(p, cfg, inputs, z_CG, rel_rec, rel_send, z_HG, I_HG,
                    pred_steps, v_combined, burn_in_steps):
    # TODO(synk): RNNDecoder source not provided; GRU rollout stand-in using
    # the module's input_r/i/n + hidden_r/i/h + out_fc1/2/3 parameters and a
    # num_cores-component GMM head, fused into a single pallas_call.
    B, N, T_in, n_in = inputs.shape
    E = rel_rec.shape[1]
    H, F, C, Ledge = cfg.n_hid, cfg.n_fc_out, cfg.num_cores, cfg.Ledge
    Np = ((N + 7) // 8) * 8     # pad node dim so per-step stores are tile-aligned

    inp = jnp.transpose(inputs, (0, 2, 1, 3)).astype(jnp.float32)   # [B,T,N,n_in]
    rr = rel_rec.astype(jnp.float32)
    rs = rel_send.astype(jnp.float32)
    if Np != N:
        inp = jnp.pad(inp, ((0, 0), (0, 0), (0, Np - N), (0, 0)))
        rr = jnp.pad(rr, ((0, 0), (0, 0), (0, Np - N)))
        rs = jnp.pad(rs, ((0, 0), (0, 0), (0, Np - N)))

    args = dict(inp=inp, rr=rr, rs=rs, zcg=z_CG.astype(jnp.float32))
    for name in _DEC_WEIGHTS:
        args[name] = p[name]
    flat = [args[n] for n in _DEC_ARGS]

    in_specs = ([_batched_spec(args[n]) for n in _DEC_BATCHED] +
                [_const_spec(args[n]) for n in _DEC_WEIGHTS])
    out_shape = jax.ShapeDtypeStruct((B, pred_steps, Np, 128), jnp.float32)
    out_spec = pl.BlockSpec((1, pred_steps, Np, 128), lambda b: (b, 0, 0, 0))

    out = pl.pallas_call(
        functools.partial(_decoder_kernel, H=H, F=F, C=C, n_in=n_in,
                          Ledge=Ledge, pred_steps=pred_steps,
                          burn=burn_in_steps, T_in=T_in, N_real=N),
        grid=(B,),
        in_specs=in_specs,
        out_specs=out_spec,
        out_shape=out_shape,
        scratch_shapes=[pltpu.VMEM((Np, H), jnp.float32),
                        pltpu.VMEM((Np, n_in), jnp.float32)],
        compiler_params=pltpu.CompilerParams(
            dimension_semantics=("parallel",),
            vmem_limit_bytes=32 * 1024 * 1024),
    )(*flat)

    out = out[:, :, :N, :]                           # drop padded node rows
    preds = jnp.transpose(out[..., :n_in], (0, 2, 1, 3))
    alphas = jnp.transpose(out[..., n_in:n_in + C], (0, 2, 1, 3))
    mus = jnp.transpose(out[..., n_in + C:n_in + C + C * n_in],
                        (0, 2, 1, 3)).reshape(B, N, pred_steps, C, n_in)
    sigs = jnp.transpose(out[..., n_in + C + C * n_in:n_in + C + 2 * C * n_in],
                         (0, 2, 1, 3)).reshape(B, N, pred_steps, C, n_in)
    return preds, alphas, mus, sigs


# ----------------------------------------------------------------------------
# Stand-ins for helpers whose source is not provided
# ----------------------------------------------------------------------------
def build_dynamic_graph_and_hypergraph(z_CG, z_HG, rel_rec, rel_send, I_HG):
    # TODO(synk): graph-rebuilding logic not provided; pass structure through.
    return rel_rec, rel_send, I_HG, z_CG, z_HG


def _simple_losses(Z_CG_LIST, Z_HG_LIST):
    # TODO(synk): loss helper sources not provided; plausible stand-ins.
    eps = 1e-16

    def ent(z):
        return -jnp.mean(jnp.sum(z * jnp.log(z + eps), -1))

    def kl_unif(z):
        kk = z.shape[-1]
        return jnp.mean(jnp.sum(z * (jnp.log(z + eps) - math.log(1.0 / kk)), -1))

    sm = jnp.asarray(0.0, jnp.float32)
    for lst in (Z_CG_LIST, Z_HG_LIST):
        for a, b in zip(lst[:-1], lst[1:]):
            sm = sm + 0.1 * jnp.mean((a - b) ** 2)
    sh = 0.1 * sum(ent(z) for z in Z_CG_LIST) + 0.1 * sum(ent(z) for z in Z_HG_LIST)
    sp = 0.1 * sum(jnp.mean(z[..., 1:]) for z in Z_CG_LIST) + \
         0.1 * sum(jnp.mean(z[..., 1:]) for z in Z_HG_LIST)
    kl = 0.1 * sum(kl_unif(z) for z in Z_CG_LIST) + 0.1 * sum(kl_unif(z) for z in Z_HG_LIST)
    return sm, sh, sp, kl


# ----------------------------------------------------------------------------
# Parameter init (deterministic, in-script).  Matmul weights stored in bf16
# (halves their DMA/VMEM bytes); biases stay f32 (VPU math stays f32).
# ----------------------------------------------------------------------------
_BF16_WEIGHTS = {
    "enc_w1", "enc_w2", "enc_ew", "enc_aw", "enc_sw", "ecg_w1", "ecg_w2",
    "pim_w", "hge_w1", "hge_w2", "att_wq", "att_wk", "att_wv", "att_wo",
    "gru_e_wi", "gru_e_ow", "gru_h_wi", "gru_h_ow",
    "dec_msg_w", "dec_xemb_w", "dec_wi", "dec_wh",
    "out_fc1_w", "out_fc2_w", "out_fc3_w", "head_w",
}


def init_params(key, cfg, encoder_timesteps):
    T = encoder_timesteps
    n_in, H, F = cfg.n_in, cfg.n_hid, cfg.n_fc_out
    M, Ledge, Lhyper, C = cfg.M, cfg.Ledge, cfg.Lhyper, cfg.num_cores
    HF = H + F
    keys = iter(jax.random.split(key, 80))

    def w(shape):
        k = next(keys)
        return (1.0 / math.sqrt(shape[0])) * jax.random.normal(k, shape, dtype=jnp.float32)

    def b(n):
        return jnp.zeros((1, n), jnp.float32)

    p = dict(
        # encoder (TODO(synk): MLPEncoder stand-in)
        enc_w1=w((T * n_in, H)), enc_b1=b(H),
        enc_w2=w((H, H)), enc_b2=b(H),
        enc_ew=w((2 * H, F)), enc_eb=b(F),
        enc_aw=w((F, 1)), enc_ab=b(1),
        enc_sw=w((F, F)), enc_sb=b(F),
        # e_cg_2 MLP: 2*(H+F) -> H -> F
        ecg_w1=w((2 * HF, H)), ecg_b1=b(H),
        ecg_w2=w((H, F)), ecg_b2=b(F),
        # f_PIM
        pim_w=w((HF, M)), pim_b=b(M),
        # f_HG_E: HF -> H -> 3F
        hge_w1=w((HF, H)), hge_b1=b(H),
        hge_w2=w((H, 3 * F)), hge_b2=b(3 * F),
        # HyperEdgeAttention: q from 3F, k/v from HF, inner H, out 5F
        att_wq=w((3 * F, H)), att_bq=b(H),
        att_wk=w((HF, H)), att_bk=b(H),
        att_wv=w((HF, H)), att_bv=b(H),
        att_wo=w((3 * F + H, 5 * F)), att_bo=b(5 * F),
        # SeparateGRUs stand-in (zero initial hidden)
        gru_e_wi=w((F, 3 * H)), gru_e_bi=b(3 * H),
        gru_e_ow=w((H, Ledge)), gru_e_ob=b(Ledge),
        gru_h_wi=w((5 * F, 3 * H)), gru_h_bi=b(3 * H),
        gru_h_ow=w((H, Lhyper)), gru_h_ob=b(Lhyper),
        # decoder (RNNDecoder stand-in) -- fused gate / head weights
        dec_msg_w=jnp.stack([w((2 * H, F)) for _ in range(Ledge)]),
        dec_msg_b=jnp.zeros((Ledge, 1, F), jnp.float32),
        dec_xemb_w=w((n_in, F)), dec_xemb_b=b(F),
        dec_wi=w((2 * F, 3 * H)), dec_bi=b(3 * H),       # input_r|i|n (bias)
        dec_wh=w((H, 3 * H)),                            # hidden_r|i|h (no bias)
        out_fc1_w=w((H, H)), out_fc1_b=b(H),
        out_fc2_w=w((H, H)), out_fc2_b=b(H),
        out_fc3_w=w((H, n_in)), out_fc3_b=b(n_in),
        head_w=w((H, C + 2 * C * n_in)), head_b=b(C + 2 * C * n_in),
    )
    for name in _BF16_WEIGHTS:
        p[name] = p[name].astype(jnp.bfloat16)
    return p


# ----------------------------------------------------------------------------
# Full forward (mirrors HGNNModelFish.forward control flow)
# ----------------------------------------------------------------------------
def hgnn_forward(p, inputs, rel_rec, rel_send, key, *, cfg, total_pred_steps,
                 encoder_timesteps, recompute_gap, tau, pre_train=False):
    B = inputs.shape[0]
    rel_rec = rel_rec[:B]
    rel_send = rel_send[:B]

    key, sub = jax.random.split(key)
    v_combined, z_CG, z_HG, I_HG, h_g, h_hg = graph_pass(
        p, cfg, inputs, rel_rec, rel_send, tau, sub)
    Z_CG_LIST, Z_HG_LIST = [z_CG], [z_HG]
    rel_rec, rel_send, I_HG, _, _ = build_dynamic_graph_and_hypergraph(
        z_CG, z_HG, rel_rec, rel_send, I_HG)

    time_steps_left = total_pred_steps - encoder_timesteps - recompute_gap
    output_traj, alphas, mus, sigmas = decoder_forward(
        p, cfg, inputs, z_CG, rel_rec, rel_send, z_HG, I_HG,
        encoder_timesteps + recompute_gap, v_combined, burn_in_steps=recompute_gap)
    output_traj = output_traj[:, :, -recompute_gap:, :]
    alphas = alphas[:, :, -recompute_gap:, :]
    mus = mus[:, :, -recompute_gap:, :, :]
    sigmas = sigmas[:, :, -recompute_gap:, :, :]
    if recompute_gap < encoder_timesteps:
        inputs = jnp.concatenate(
            (inputs[:, :, -(encoder_timesteps - recompute_gap):, :], output_traj), axis=2)
    else:
        inputs = output_traj[:, :, -encoder_timesteps:, :]

    output_lists = {'z_CG': [z_CG], 'z_HG': [z_HG], 'trajs': [output_traj],
                    'alphas': [alphas], 'mus': [mus], 'sigmas': [sigmas]}
    num_new_graph = math.ceil((total_pred_steps - encoder_timesteps) / recompute_gap) - 1

    for _ in range(num_new_graph):
        key, sub = jax.random.split(key)
        v_combined, z_CG, z_HG, I_HG, h_g, h_hg = graph_pass(
            p, cfg, inputs, rel_rec, rel_send, tau, sub)
        Z_CG_LIST.append(z_CG)
        Z_HG_LIST.append(z_HG)
        rel_rec, rel_send, I_HG, _, _ = build_dynamic_graph_and_hypergraph(
            z_CG, z_HG, rel_rec, rel_send, I_HG)
        output_traj, alphas, mus, sigmas = decoder_forward(
            p, cfg, inputs, z_CG, rel_rec, rel_send, z_HG, I_HG,
            encoder_timesteps + recompute_gap, v_combined, burn_in_steps=recompute_gap)
        take = recompute_gap if time_steps_left >= recompute_gap else time_steps_left
        output_traj = output_traj[:, :, -take:, :]
        alphas = alphas[:, :, -take:, :]
        mus = mus[:, :, -take:, :, :]
        sigmas = sigmas[:, :, -take:, :, :]
        time_steps_left -= recompute_gap
        if recompute_gap < encoder_timesteps:
            inputs = jnp.concatenate(
                (inputs[:, :, -(encoder_timesteps - recompute_gap):, :], output_traj), axis=2)
        else:
            inputs = output_traj[:, :, -encoder_timesteps:, :]
        output_lists['z_CG'].append(z_CG)
        output_lists['z_HG'].append(z_HG)
        output_lists['trajs'].append(output_traj)
        output_lists['alphas'].append(alphas)
        output_lists['mus'].append(mus)
        output_lists['sigmas'].append(sigmas)

    L_SM, L_SH, L_SP, L_KL = _simple_losses(Z_CG_LIST, Z_HG_LIST)
    return output_lists, h_g, h_hg, rel_rec, rel_send, L_SM, L_SH, L_SP, L_KL


# ----------------------------------------------------------------------------
# Main
# ----------------------------------------------------------------------------
if __name__ == "__main__":
    n_in, n_head, n_fc_out, n_hid = 4, 2, 16, 32
    M, Ledge, Lhyper, num_cores = 3, 2, 2, 2
    tau = 0.5
    B, N = 2, 4
    encoder_timesteps, recompute_gap, total_pred_steps = 8, 4, 16

    cfg = HGNNConfig(n_in=n_in, n_head=n_head, n_fc_out=n_fc_out, n_hid=n_hid,
                     M=M, Ledge=Ledge, Lhyper=Lhyper, num_cores=num_cores)

    key = jax.random.PRNGKey(0)
    kp, kx, kf = jax.random.split(key, 3)
    params = init_params(kp, cfg, encoder_timesteps)

    inputs = jax.random.normal(kx, (B, N, encoder_timesteps, n_in), dtype=jnp.float32)

    recv, send = [], []
    for i in range(N):
        for j in range(N):
            if i != j:
                recv.append(i)
                send.append(j)
    rel_rec = jnp.tile(jax.nn.one_hot(jnp.array(recv), N, dtype=jnp.float32)[None], (B, 1, 1))
    rel_send = jnp.tile(jax.nn.one_hot(jnp.array(send), N, dtype=jnp.float32)[None], (B, 1, 1))

    fwd = jax.jit(hgnn_forward,
                  static_argnames=("cfg", "total_pred_steps", "encoder_timesteps",
                                   "recompute_gap", "tau", "pre_train"))

    outs = fwd(params, inputs, rel_rec, rel_send, kf,
               cfg=cfg, total_pred_steps=total_pred_steps,
               encoder_timesteps=encoder_timesteps,
               recompute_gap=recompute_gap, tau=tau)
    output_lists, h_g, h_hg, rr, rs, L_SM, L_SH, L_SP, L_KL = outs

    jax.block_until_ready(output_lists['trajs'][-1])
    jax.block_until_ready(output_lists['mus'][-1])
    jax.block_until_ready(output_lists['sigmas'][-1])
    jax.block_until_ready(h_g)
    jax.block_until_ready(h_hg)
    jax.block_until_ready(L_KL)

    print("KERNEL_OK")
</pallas_src>

<mosaic_0001>
module attributes {stable_mosaic.version = 11 : i64} {
  func.func @_graph_pass_kernel(%arg0: i32, %arg1: memref<1x4x32xf32, #tpu.memory_space<vmem>>, %arg2: memref<1x12x4xf32, #tpu.memory_space<vmem>>, %arg3: memref<1x12x4xf32, #tpu.memory_space<vmem>>, %arg4: memref<1x4x3xf32, #tpu.memory_space<vmem>>, %arg5: memref<1x12x2xf32, #tpu.memory_space<vmem>>, %arg6: memref<1x3x2xf32, #tpu.memory_space<vmem>>, %arg7: memref<32x32xbf16, #tpu.memory_space<vmem>>, %arg8: memref<1x32xf32, #tpu.memory_space<vmem>>, %arg9: memref<32x32xbf16, #tpu.memory_space<vmem>>, %arg10: memref<1x32xf32, #tpu.memory_space<vmem>>, %arg11: memref<64x16xbf16, #tpu.memory_space<vmem>>, %arg12: memref<1x16xf32, #tpu.memory_space<vmem>>, %arg13: memref<16x1xbf16, #tpu.memory_space<vmem>>, %arg14: memref<1x1xf32, #tpu.memory_space<vmem>>, %arg15: memref<16x16xbf16, #tpu.memory_space<vmem>>, %arg16: memref<1x16xf32, #tpu.memory_space<vmem>>, %arg17: memref<96x32xbf16, #tpu.memory_space<vmem>>, %arg18: memref<1x32xf32, #tpu.memory_space<vmem>>, %arg19: memref<32x16xbf16, #tpu.memory_space<vmem>>, %arg20: memref<1x16xf32, #tpu.memory_space<vmem>>, %arg21: memref<48x3xbf16, #tpu.memory_space<vmem>>, %arg22: memref<1x3xf32, #tpu.memory_space<vmem>>, %arg23: memref<48x32xbf16, #tpu.memory_space<vmem>>, %arg24: memref<1x32xf32, #tpu.memory_space<vmem>>, %arg25: memref<32x48xbf16, #tpu.memory_space<vmem>>, %arg26: memref<1x48xf32, #tpu.memory_space<vmem>>, %arg27: memref<48x32xbf16, #tpu.memory_space<vmem>>, %arg28: memref<1x32xf32, #tpu.memory_space<vmem>>, %arg29: memref<48x32xbf16, #tpu.memory_space<vmem>>, %arg30: memref<1x32xf32, #tpu.memory_space<vmem>>, %arg31: memref<48x32xbf16, #tpu.memory_space<vmem>>, %arg32: memref<1x32xf32, #tpu.memory_space<vmem>>, %arg33: memref<80x80xbf16, #tpu.memory_space<vmem>>, %arg34: memref<1x80xf32, #tpu.memory_space<vmem>>, %arg35: memref<16x96xbf16, #tpu.memory_space<vmem>>, %arg36: memref<1x96xf32, #tpu.memory_space<vmem>>, %arg37: memref<32x2xbf16, #tpu.memory_space<vmem>>, %arg38: memref<1x2xf32, #tpu.memory_space<vmem>>, %arg39: memref<80x96xbf16, #tpu.memory_space<vmem>>, %arg40: memref<1x96xf32, #tpu.memory_space<vmem>>, %arg41: memref<32x2xbf16, #tpu.memory_space<vmem>>, %arg42: memref<1x2xf32, #tpu.memory_space<vmem>>, %arg43: memref<1x4x128xf32, #tpu.memory_space<vmem>>, %arg44: memref<1x12x128xf32, #tpu.memory_space<vmem>>, %arg45: memref<1x3x128xf32, #tpu.memory_space<vmem>>) attributes {dimension_semantics = [#tpu.dimension_semantics<parallel>], iteration_bounds = array<i64: 2>, scalar_prefetch = 0 : i64, scratch_operands = 0 : i64, tpu.core_type = #tpu.core_type<tc>, window_params = [{transform_indices = @transform_0, window_bounds = array<i64: 1, 4, 32>}, {transform_indices = @transform_1, window_bounds = array<i64: 1, 12, 4>}, {transform_indices = @transform_2, window_bounds = array<i64: 1, 12, 4>}, {transform_indices = @transform_3, window_bounds = array<i64: 1, 4, 3>}, {transform_indices = @transform_4, window_bounds = array<i64: 1, 12, 2>}, {transform_indices = @transform_5, window_bounds = array<i64: 1, 3, 2>}, {pipeline_mode = #tpu.pipeline_mode<synchronous>, transform_indices = @transform_6, window_bounds = array<i64: 32, 32>}, {pipeline_mode = #tpu.pipeline_mode<synchronous>, transform_indices = @transform_7, window_bounds = array<i64: 1, 32>}, {pipeline_mode = #tpu.pipeline_mode<synchronous>, transform_indices = @transform_8, window_bounds = array<i64: 32, 32>}, {pipeline_mode = #tpu.pipeline_mode<synchronous>, transform_indices = @transform_9, window_bounds = array<i64: 1, 32>}, {pipeline_mode = #tpu.pipeline_mode<synchronous>, transform_indices = @transform_10, window_bounds = array<i64: 64, 16>}, {pipeline_mode = #tpu.pipeline_mode<synchronous>, transform_indices = @transform_11, window_bounds = array<i64: 1, 16>}, {pipeline_mode = #tpu.pipeline_mode<synchronous>, transform_indices = @transform_12, window_bounds = array<i64: 16, 1>}, {pipeline_mode = #tpu.pipeline_mode<synchronous>, transform_indices = @transform_13, window_bounds = array<i64: 1, 1>}, {pipeline_mode = #tpu.pipeline_mode<synchronous>, transform_indices = @transform_14, window_bounds = array<i64: 16, 16>}, {pipeline_mode = #tpu.pipeline_mode<synchronous>, transform_indices = @transform_15, window_bounds = array<i64: 1, 16>}, {pipeline_mode = #tpu.pipeline_mode<synchronous>, transform_indices = @transform_16, window_bounds = array<i64: 96, 32>}, {pipeline_mode = #tpu.pipeline_mode<synchronous>, transform_indices = @transform_17, window_bounds = array<i64: 1, 32>}, {pipeline_mode = #tpu.pipeline_mode<synchronous>, transform_indices = @transform_18, window_bounds = array<i64: 32, 16>}, {pipeline_mode = #tpu.pipeline_mode<synchronous>, transform_indices = @transform_19, window_bounds = array<i64: 1, 16>}, {pipeline_mode = #tpu.pipeline_mode<synchronous>, transform_indices = @transform_20, window_bounds = array<i64: 48, 3>}, {pipeline_mode = #tpu.pipeline_mode<synchronous>, transform_indices = @transform_21, window_bounds = array<i64: 1, 3>}, {pipeline_mode = #tpu.pipeline_mode<synchronous>, transform_indices = @transform_22, window_bounds = array<i64: 48, 32>}, {pipeline_mode = #tpu.pipeline_mode<synchronous>, transform_indices = @transform_23, window_bounds = array<i64: 1, 32>}, {pipeline_mode = #tpu.pipeline_mode<synchronous>, transform_indices = @transform_24, window_bounds = array<i64: 32, 48>}, {pipeline_mode = #tpu.pipeline_mode<synchronous>, transform_indices = @transform_25, window_bounds = array<i64: 1, 48>}, {pipeline_mode = #tpu.pipeline_mode<synchronous>, transform_indices = @transform_26, window_bounds = array<i64: 48, 32>}, {pipeline_mode = #tpu.pipeline_mode<synchronous>, transform_indices = @transform_27, window_bounds = array<i64: 1, 32>}, {pipeline_mode = #tpu.pipeline_mode<synchronous>, transform_indices = @transform_28, window_bounds = array<i64: 48, 32>}, {pipeline_mode = #tpu.pipeline_mode<synchronous>, transform_indices = @transform_29, window_bounds = array<i64: 1, 32>}, {pipeline_mode = #tpu.pipeline_mode<synchronous>, transform_indices = @transform_30, window_bounds = array<i64: 48, 32>}, {pipeline_mode = #tpu.pipeline_mode<synchronous>, transform_indices = @transform_31, window_bounds = array<i64: 1, 32>}, {pipeline_mode = #tpu.pipeline_mode<synchronous>, transform_indices = @transform_32, window_bounds = array<i64: 80, 80>}, {pipeline_mode = #tpu.pipeline_mode<synchronous>, transform_indices = @transform_33, window_bounds = array<i64: 1, 80>}, {pipeline_mode = #tpu.pipeline_mode<synchronous>, transform_indices = @transform_34, window_bounds = array<i64: 16, 96>}, {pipeline_mode = #tpu.pipeline_mode<synchronous>, transform_indices = @transform_35, window_bounds = array<i64: 1, 96>}, {pipeline_mode = #tpu.pipeline_mode<synchronous>, transform_indices = @transform_36, window_bounds = array<i64: 32, 2>}, {pipeline_mode = #tpu.pipeline_mode<synchronous>, transform_indices = @transform_37, window_bounds = array<i64: 1, 2>}, {pipeline_mode = #tpu.pipeline_mode<synchronous>, transform_indices = @transform_38, window_bounds = array<i64: 80, 96>}, {pipeline_mode = #tpu.pipeline_mode<synchronous>, transform_indices = @transform_39, window_bounds = array<i64: 1, 96>}, {pipeline_mode = #tpu.pipeline_mode<synchronous>, transform_indices = @transform_40, window_bounds = array<i64: 32, 2>}, {pipeline_mode = #tpu.pipeline_mode<synchronous>, transform_indices = @transform_41, window_bounds = array<i64: 1, 2>}, {transform_indices = @transform_42, window_bounds = array<i64: 1, 4, 128>}, {transform_indices = @transform_43, window_bounds = array<i64: 1, 12, 128>}, {transform_indices = @transform_44, window_bounds = array<i64: 1, 3, 128>}]} {
    %c0 = arith.constant 0 : index
    %c0_0 = arith.constant 0 : index
    %c0_1 = arith.constant 0 : index
    %0 = vector.load %arg1[%c0, %c0_0, %c0_1] : memref<1x4x32xf32, #tpu.memory_space<vmem>>, vector<1x4x32xf32>
    %1 = vector.shape_cast %0 : vector<1x4x32xf32> to vector<4x32xf32>
    %c0_2 = arith.constant 0 : index
    %c0_3 = arith.constant 0 : index
    %c0_4 = arith.constant 0 : index
    %2 = vector.load %arg2[%c0_2, %c0_3, %c0_4] : memref<1x12x4xf32, #tpu.memory_space<vmem>>, vector<1x12x4xf32>
    %3 = vector.shape_cast %2 : vector<1x12x4xf32> to vector<12x4xf32>
    %c0_5 = arith.constant 0 : index
    %c0_6 = arith.constant 0 : index
    %c0_7 = arith.constant 0 : index
    %4 = vector.load %arg3[%c0_5, %c0_6, %c0_7] : memref<1x12x4xf32, #tpu.memory_space<vmem>>, vector<1x12x4xf32>
    %5 = vector.shape_cast %4 : vector<1x12x4xf32> to vector<12x4xf32>
    %c0_8 = arith.constant 0 : index
    %c0_9 = arith.constant 0 : index
    %6 = vector.load %arg7[%c0_8, %c0_9] : memref<32x32xbf16, #tpu.memory_space<vmem>>, vector<32x32xbf16>
    %7 = arith.truncf %1 : vector<4x32xf32> to vector<4x32xbf16>
    %cst = arith.constant dense<0.000000e+00> : vector<4x32xf32>
    %8 = tpu.matmul %7, %6, %cst {dimension_numbers = #tpu.dot_dimension_numbers<[1], [0], [0], [1], [0, 0, 1, 1], [], []>} : vector<4x32xbf16>, vector<32x32xbf16>, vector<4x32xf32> -> vector<4x32xf32>
    %c0_10 = arith.constant 0 : index
    %c0_11 = arith.constant 0 : index
    %9 = vector.load %arg8[%c0_10, %c0_11] : memref<1x32xf32, #tpu.memory_space<vmem>>, vector<1x32xf32>
    %10 = vector.broadcast %9 : vector<1x32xf32> to vector<4x32xf32>
    %11 = arith.addf %8, %10 : vector<4x32xf32>
    %cst_12 = arith.constant 0.000000e+00 : f32
    %12 = vector.broadcast %cst_12 : f32 to vector<4x32xf32>
    %13 = arith.maximumf %11, %12 : vector<4x32xf32>
    %c0_13 = arith.constant 0 : index
    %c0_14 = arith.constant 0 : index
    %14 = vector.load %arg9[%c0_13, %c0_14] : memref<32x32xbf16, #tpu.memory_space<vmem>>, vector<32x32xbf16>
    %15 = arith.truncf %13 : vector<4x32xf32> to vector<4x32xbf16>
    %cst_15 = arith.constant dense<0.000000e+00> : vector<4x32xf32>
    %16 = tpu.matmul %15, %14, %cst_15 {dimension_numbers = #tpu.dot_dimension_numbers<[1], [0], [0], [1], [0, 0, 1, 1], [], []>} : vector<4x32xbf16>, vector<32x32xbf16>, vector<4x32xf32> -> vector<4x32xf32>
    %c0_16 = arith.constant 0 : index
    %c0_17 = arith.constant 0 : index
    %17 = vector.load %arg10[%c0_16, %c0_17] : memref<1x32xf32, #tpu.memory_space<vmem>>, vector<1x32xf32>
    %18 = vector.broadcast %17 : vector<1x32xf32> to vector<4x32xf32>
    %19 = arith.addf %16, %18 : vector<4x32xf32>
    %20 = arith.truncf %3 : vector<12x4xf32> to vector<12x4xbf16>
    %21 = arith.truncf %19 : vector<4x32xf32> to vector<4x32xbf16>
    %cst_18 = arith.constant dense<0.000000e+00> : vector<12x32xf32>
    %22 = tpu.matmul %20, %21, %cst_18 {dimension_numbers = #tpu.dot_dimension_numbers<[1], [0], [0], [1], [0, 0, 1, 1], [], []>} : vector<12x4xbf16>, vector<4x32xbf16>, vector<12x32xf32> -> vector<12x32xf32>
    %23 = arith.truncf %5 : vector<12x4xf32> to vector<12x4xbf16>
    %24 = arith.truncf %19 : vector<4x32xf32> to vector<4x32xbf16>
    %cst_19 = arith.constant dense<0.000000e+00> : vector<12x32xf32>
    %25 = tpu.matmul %23, %24, %cst_19 {dimension_numbers = #tpu.dot_dimension_numbers<[1], [0], [0], [1], [0, 0, 1, 1], [], []>} : vector<12x4xbf16>, vector<4x32xbf16>, vector<12x32xf32> -> vector<12x32xf32>
    %26 = tpu.concatenate %22, %25 in 1 : vector<12x32xf32>, vector<12x32xf32> -> vector<12x64xf32>
    %c0_20 = arith.constant 0 : index
    %c0_21 = arith.constant 0 : index
    %27 = vector.load %arg11[%c0_20, %c0_21] : memref<64x16xbf16, #tpu.memory_space<vmem>>, vector<64x16xbf16>
    %28 = arith.truncf %26 : vector<12x64xf32> to vector<12x64xbf16>
    %cst_22 = arith.constant dense<0.000000e+00> : vector<12x16xf32>
    %29 = tpu.matmul %28, %27, %cst_22 {dimension_numbers = #tpu.dot_dimension_numbers<[1], [0], [0], [1], [0, 0, 1, 1], [], []>} : vector<12x64xbf16>, vector<64x16xbf16>, vector<12x16xf32> -> vector<12x16xf32>
    %c0_23 = arith.constant 0 : index
    %c0_24 = arith.constant 0 : index
    %30 = vector.load %arg12[%c0_23, %c0_24] : memref<1x16xf32, #tpu.memory_space<vmem>>, vector<1x16xf32>
    %31 = vector.broadcast %30 : vector<1x16xf32> to vector<12x16xf32>
    %32 = arith.addf %29, %31 : vector<12x16xf32>
    %cst_25 = arith.constant 0.000000e+00 : f32
    %33 = vector.broadcast %cst_25 : f32 to vector<12x16xf32>
    %34 = arith.maximumf %32, %33 : vector<12x16xf32>
    %c0_26 = arith.constant 0 : index
    %c0_27 = arith.constant 0 : index
    %35 = vector.load %arg13[%c0_26, %c0_27] : memref<16x1xbf16, #tpu.memory_space<vmem>>, vector<16x1xbf16>
    %36 = arith.truncf %34 : vector<12x16xf32> to vector<12x16xbf16>
    %cst_28 = arith.constant dense<0.000000e+00> : vector<12x1xf32>
    %37 = tpu.matmul %36, %35, %cst_28 {dimension_numbers = #tpu.dot_dimension_numbers<[1], [0], [0], [1], [0, 0, 1, 1], [], []>} : vector<12x16xbf16>, vector<16x1xbf16>, vector<12x1xf32> -> vector<12x1xf32>
    %c0_29 = arith.constant 0 : index
    %c0_30 = arith.constant 0 : index
    %38 = vector.load %arg14[%c0_29, %c0_30] : memref<1x1xf32, #tpu.memory_space<vmem>>, vector<1x1xf32>
    %39 = vector.broadcast %38 : vector<1x1xf32> to vector<12x1xf32>
    %40 = arith.addf %37, %39 : vector<12x1xf32>
    %41 = arith.negf %40 : vector<12x1xf32>
    %42 = math.exp %41 : vector<12x1xf32>
    %cst_31 = arith.constant 1.000000e+00 : f32
    %43 = vector.broadcast %cst_31 : f32 to vector<12x1xf32>
    %44 = arith.addf %43, %42 : vector<12x1xf32>
    %45 = arith.divf %43, %44 : vector<12x1xf32>
    %46 = vector.broadcast %45 : vector<12x1xf32> to vector<12x16xf32>
    %47 = arith.mulf %46, %34 : vector<12x16xf32>
    %48 = arith.truncf %3 : vector<12x4xf32> to vector<12x4xbf16>
    %49 = arith.truncf %47 : vector<12x16xf32> to vector<12x16xbf16>
    %cst_32 = arith.constant dense<0.000000e+00> : vector<4x16xf32>
    %50 = tpu.matmul %48, %49, %cst_32 {dimension_numbers = #tpu.dot_dimension_numbers<[0], [0], [1], [1], [0, 1, 1, 1], [], []>} : vector<12x4xbf16>, vector<12x16xbf16>, vector<4x16xf32> -> vector<4x16xf32>
    %c0_33 = arith.constant 0 : index
    %c0_34 = arith.constant 0 : index
    %51 = vector.load %arg15[%c0_33, %c0_34] : memref<16x16xbf16, #tpu.memory_space<vmem>>, vector<16x16xbf16>
    %52 = arith.truncf %50 : vector<4x16xf32> to vector<4x16xbf16>
    %cst_35 = arith.constant dense<0.000000e+00> : vector<4x16xf32>
    %53 = tpu.matmul %52, %51, %cst_35 {dimension_numbers = #tpu.dot_dimension_numbers<[1], [0], [0], [1], [0, 0, 1, 1], [], []>} : vector<4x16xbf16>, vector<16x16xbf16>, vector<4x16xf32> -> vector<4x16xf32>
    %c0_36 = arith.constant 0 : index
    %c0_37 = arith.constant 0 : index
    %54 = vector.load %arg16[%c0_36, %c0_37] : memref<1x16xf32, #tpu.memory_space<vmem>>, vector<1x16xf32>
    %55 = vector.broadcast %54 : vector<1x16xf32> to vector<4x16xf32>
    %56 = arith.addf %53, %55 : vector<4x16xf32>
    %cst_38 = arith.constant 0.000000e+00 : f32
    %57 = vector.broadcast %cst_38 : f32 to vector<4x16xf32>
    %58 = arith.maximumf %56, %57 : vector<4x16xf32>
    %59 = tpu.concatenate %19, %58 in 1 : vector<4x32xf32>, vector<4x16xf32> -> vector<4x48xf32>
    %60 = arith.truncf %3 : vector<12x4xf32> to vector<12x4xbf16>
    %61 = arith.truncf %58 : vector<4x16xf32> to vector<4x16xbf16>
    %cst_39 = arith.constant dense<0.000000e+00> : vector<12x16xf32>
    %62 = tpu.matmul %60, %61, %cst_39 {dimension_numbers = #tpu.dot_dimension_numbers<[1], [0], [0], [1], [0, 0, 1, 1], [], []>} : vector<12x4xbf16>, vector<4x16xbf16>, vector<12x16xf32> -> vector<12x16xf32>
    %63 = arith.truncf %5 : vector<12x4xf32> to vector<12x4xbf16>
    %64 = arith.truncf %58 : vector<4x16xf32> to vector<4x16xbf16>
    %cst_40 = arith.constant dense<0.000000e+00> : vector<12x16xf32>
    %65 = tpu.matmul %63, %64, %cst_40 {dimension_numbers = #tpu.dot_dimension_numbers<[1], [0], [0], [1], [0, 0, 1, 1], [], []>} : vector<12x4xbf16>, vector<4x16xbf16>, vector<12x16xf32> -> vector<12x16xf32>
    %66 = tpu.concatenate %22, %62, %25, %65 in 1 : vector<12x32xf32>, vector<12x16xf32>, vector<12x32xf32>, vector<12x16xf32> -> vector<12x96xf32>
    %c0_41 = arith.constant 0 : index
    %c0_42 = arith.constant 0 : index
    %67 = vector.load %arg17[%c0_41, %c0_42] : memref<96x32xbf16, #tpu.memory_space<vmem>>, vector<96x32xbf16>
    %68 = arith.truncf %66 : vector<12x96xf32> to vector<12x96xbf16>
    %cst_43 = arith.constant dense<0.000000e+00> : vector<12x32xf32>
    %69 = tpu.matmul %68, %67, %cst_43 {dimension_numbers = #tpu.dot_dimension_numbers<[1], [0], [0], [1], [0, 0, 1, 1], [], []>} : vector<12x96xbf16>, vector<96x32xbf16>, vector<12x32xf32> -> vector<12x32xf32>
    %c0_44 = arith.constant 0 : index
    %c0_45 = arith.constant 0 : index
    %70 = vector.load %arg18[%c0_44, %c0_45] : memref<1x32xf32, #tpu.memory_space<vmem>>, vector<1x32xf32>
    %71 = vector.broadcast %70 : vector<1x32xf32> to vector<12x32xf32>
    %72 = arith.addf %69, %71 : vector<12x32xf32>
    %cst_46 = arith.constant 0.000000e+00 : f32
    %73 = vector.broadcast %cst_46 : f32 to vector<12x32xf32>
    %74 = arith.maximumf %72, %73 : vector<12x32xf32>
    %c0_47 = arith.constant 0 : index
    %c0_48 = arith.constant 0 : index
    %75 = vector.load %arg19[%c0_47, %c0_48] : memref<32x16xbf16, #tpu.memory_space<vmem>>, vector<32x16xbf16>
    %76 = arith.truncf %74 : vector<12x32xf32> to vector<12x32xbf16>
    %cst_49 = arith.constant dense<0.000000e+00> : vector<12x16xf32>
    %77 = tpu.matmul %76, %75, %cst_49 {dimension_numbers = #tpu.dot_dimension_numbers<[1], [0], [0], [1], [0, 0, 1, 1], [], []>} : vector<12x32xbf16>, vector<32x16xbf16>, vector<12x16xf32> -> vector<12x16xf32>
    %c0_50 = arith.constant 0 : index
    %c0_51 = arith.constant 0 : index
    %78 = vector.load %arg20[%c0_50, %c0_51] : memref<1x16xf32, #tpu.memory_space<vmem>>, vector<1x16xf32>
    %79 = vector.broadcast %78 : vector<1x16xf32> to vector<12x16xf32>
    %80 = arith.addf %77, %79 : vector<12x16xf32>
    %c0_52 = arith.constant 0 : index
    %c0_53 = arith.constant 0 : index
    %81 = vector.load %arg21[%c0_52, %c0_53] : memref<48x3xbf16, #tpu.memory_space<vmem>>, vector<48x3xbf16>
    %82 = arith.truncf %59 : vector<4x48xf32> to vector<4x48xbf16>
    %cst_54 = arith.constant dense<0.000000e+00> : vector<4x3xf32>
    %83 = tpu.matmul %82, %81, %cst_54 {dimension_numbers = #tpu.dot_dimension_numbers<[1], [0], [0], [1], [0, 0, 1, 1], [], []>} : vector<4x48xbf16>, vector<48x3xbf16>, vector<4x3xf32> -> vector<4x3xf32>
    %c0_55 = arith.constant 0 : index
    %c0_56 = arith.constant 0 : index
    %84 = vector.load %arg22[%c0_55, %c0_56] : memref<1x3xf32, #tpu.memory_space<vmem>>, vector<1x3xf32>
    %85 = vector.broadcast %84 : vector<1x3xf32> to vector<4x3xf32>
    %86 = arith.addf %83, %85 : vector<4x3xf32>
    %c0_57 = arith.constant 0 : index
    %c0_58 = arith.constant 0 : index
    %c0_59 = arith.constant 0 : index
    %87 = vector.load %arg4[%c0_57, %c0_58, %c0_59] : memref<1x4x3xf32, #tpu.memory_space<vmem>>, vector<1x4x3xf32>
    %88 = vector.shape_cast %87 : vector<1x4x3xf32> to vector<4x3xf32>
    %89 = arith.addf %86, %88 : vector<4x3xf32>
    %cst_60 = arith.constant 2.000000e+00 : f32
    %90 = vector.broadcast %cst_60 : f32 to vector<4x3xf32>
    %91 = arith.mulf %89, %90 : vector<4x3xf32>
    %cst_61 = arith.constant dense<0xFF800000> : vector<4xf32>
    %92 = vector.multi_reduction <maximumf>, %91, %cst_61 [1] : vector<4x3xf32> to vector<4xf32>
    %93 = vector.shape_cast %92 : vector<4xf32> to vector<4x1xf32>
    %94 = vector.broadcast %93 : vector<4x1xf32> to vector<4x3xf32>
    %95 = arith.subf %91, %94 : vector<4x3xf32>
    %96 = math.exp %95 : vector<4x3xf32>
    %cst_62 = arith.constant dense<0.000000e+00> : vector<4xf32>
    %97 = vector.multi_reduction <add>, %96, %cst_62 [1] : vector<4x3xf32> to vector<4xf32>
    %98 = vector.shape_cast %97 : vector<4xf32> to vector<4x1xf32>
    %99 = tpu.reciprocal %98 {approx = true} : vector<4x1xf32> -> vector<4x1xf32>
    %100 = vector.broadcast %99 : vector<4x1xf32> to vector<4x3xf32>
    %101 = arith.mulf %96, %100 : vector<4x3xf32>
    %102 = tpu.iota {dimensions = array<i32: 1>} : vector<4x3xi32>
    %103 = arith.sitofp %102 : vector<4x3xi32> to vector<4x3xf32>
    %cst_63 = arith.constant 9.99999997E-7 : f32
    %104 = vector.broadcast %cst_63 : f32 to vector<4x3xf32>
    %105 = arith.mulf %103, %104 : vector<4x3xf32>
    %106 = arith.subf %101, %105 : vector<4x3xf32>
    %cst_64 = arith.constant dense<0xFF800000> : vector<4xf32>
    %107 = vector.multi_reduction <maximumf>, %106, %cst_64 [1] : vector<4x3xf32> to vector<4xf32>
    %108 = vector.shape_cast %107 : vector<4xf32> to vector<4x1xf32>
    %109 = vector.broadcast %108 : vector<4x1xf32> to vector<4x3xf32>
    %110 = arith.cmpf oge, %106, %109 : vector<4x3xf32>
    %111 = arith.extui %110 : vector<4x3xi1> to vector<4x3xi32>
    %112 = arith.sitofp %111 : vector<4x3xi32> to vector<4x3xf32>
    %113 = arith.truncf %5 : vector<12x4xf32> to vector<12x4xbf16>
    %114 = arith.truncf %112 : vector<4x3xf32> to vector<4x3xbf16>
    %cst_65 = arith.constant dense<0.000000e+00> : vector<12x3xf32>
    %115 = tpu.matmul %113, %114, %cst_65 {dimension_numbers = #tpu.dot_dimension_numbers<[1], [0], [0], [1], [0, 0, 1, 1], [], []>} : vector<12x4xbf16>, vector<4x3xbf16>, vector<12x3xf32> -> vector<12x3xf32>
    %116 = vector.broadcast %45 : vector<12x1xf32> to vector<12x3xf32>
    %117 = arith.mulf %116, %115 : vector<12x3xf32>
    %118 = arith.truncf %3 : vector<12x4xf32> to vector<12x4xbf16>
    %119 = arith.truncf %117 : vector<12x3xf32> to vector<12x3xbf16>
    %cst_66 = arith.constant dense<0.000000e+00> : vector<4x3xf32>
    %120 = tpu.matmul %118, %119, %cst_66 {dimension_numbers = #tpu.dot_dimension_numbers<[0], [0], [1], [1], [0, 1, 1, 1], [], []>} : vector<12x4xbf16>, vector<12x3xbf16>, vector<4x3xf32> -> vector<4x3xf32>
    %cst_67 = arith.constant dense<0.000000e+00> : vector<4xf32>
    %121 = vector.multi_reduction <add>, %120, %cst_67 [1] : vector<4x3xf32> to vector<4xf32>
    %122 = vector.shape_cast %121 : vector<4xf32> to vector<4x1xf32>
    %cst_68 = arith.constant 9.99999997E-7 : f32
    %123 = vector.broadcast %cst_68 : f32 to vector<4x1xf32>
    %124 = arith.addf %122, %123 : vector<4x1xf32>
    %125 = tpu.reciprocal %124 {approx = true} : vector<4x1xf32> -> vector<4x1xf32>
    %126 = vector.broadcast %125 : vector<4x1xf32> to vector<4x3xf32>
    %127 = arith.mulf %120, %126 : vector<4x3xf32>
    %128 = arith.truncf %127 : vector<4x3xf32> to vector<4x3xbf16>
    %129 = arith.truncf %59 : vector<4x48xf32> to vector<4x48xbf16>
    %cst_69 = arith.constant dense<0.000000e+00> : vector<3x48xf32>
    %130 = tpu.matmul %128, %129, %cst_69 {dimension_numbers = #tpu.dot_dimension_numbers<[0], [0], [1], [1], [0, 1, 1, 1], [], []>} : vector<4x3xbf16>, vector<4x48xbf16>, vector<3x48xf32> -> vector<3x48xf32>
    %c0_70 = arith.constant 0 : index
    %c0_71 = arith.constant 0 : index
    %131 = vector.load %arg23[%c0_70, %c0_71] : memref<48x32xbf16, #tpu.memory_space<vmem>>, vector<48x32xbf16>
    %132 = arith.truncf %130 : vector<3x48xf32> to vector<3x48xbf16>
    %cst_72 = arith.constant dense<0.000000e+00> : vector<3x32xf32>
    %133 = tpu.matmul %132, %131, %cst_72 {dimension_numbers = #tpu.dot_dimension_numbers<[1], [0], [0], [1], [0, 0, 1, 1], [], []>} : vector<3x48xbf16>, vector<48x32xbf16>, vector<3x32xf32> -> vector<3x32xf32>
    %c0_73 = arith.constant 0 : index
    %c0_74 = arith.constant 0 : index
    %134 = vector.load %arg24[%c0_73, %c0_74] : memref<1x32xf32, #tpu.memory_space<vmem>>, vector<1x32xf32>
    %135 = vector.broadcast %134 : vector<1x32xf32> to vector<3x32xf32>
    %136 = arith.addf %133, %135 : vector<3x32xf32>
    %cst_75 = arith.constant 0.000000e+00 : f32
    %137 = vector.broadcast %cst_75 : f32 to vector<3x32xf32>
    %138 = arith.maximumf %136, %137 : vector<3x32xf32>
    %c0_76 = arith.constant 0 : index
    %c0_77 = arith.constant 0 : index
    %139 = vector.load %arg25[%c0_76, %c0_77] : memref<32x48xbf16, #tpu.memory_space<vmem>>, vector<32x48xbf16>
    %140 = arith.truncf %138 : vector<3x32xf32> to vector<3x32xbf16>
    %cst_78 = arith.constant dense<0.000000e+00> : vector<3x48xf32>
    %141 = tpu.matmul %140, %139, %cst_78 {dimension_numbers = #tpu.dot_dimension_numbers<[1], [0], [0], [1], [0, 0, 1, 1], [], []>} : vector<3x32xbf16>, vector<32x48xbf16>, vector<3x48xf32> -> vector<3x48xf32>
    %c0_79 = arith.constant 0 : index
    %c0_80 = arith.constant 0 : index
    %142 = vector.load %arg26[%c0_79, %c0_80] : memref<1x48xf32, #tpu.memory_space<vmem>>, vector<1x48xf32>
    %143 = vector.broadcast %142 : vector<1x48xf32> to vector<3x48xf32>
    %144 = arith.addf %141, %143 : vector<3x48xf32>
    %c0_81 = arith.constant 0 : index
    %c0_82 = arith.constant 0 : index
    %145 = vector.load %arg27[%c0_81, %c0_82] : memref<48x32xbf16, #tpu.memory_space<vmem>>, vector<48x32xbf16>
    %146 = arith.truncf %144 : vector<3x48xf32> to vector<3x48xbf16>
    %cst_83 = arith.constant dense<0.000000e+00> : vector<3x32xf32>
    %147 = tpu.matmul %146, %145, %cst_83 {dimension_numbers = #tpu.dot_dimension_numbers<[1], [0], [0], [1], [0, 0, 1, 1], [], []>} : vector<3x48xbf16>, vector<48x32xbf16>, vector<3x32xf32> -> vector<3x32xf32>
    %c0_84 = arith.constant 0 : index
    %c0_85 = arith.constant 0 : index
    %148 = vector.load %arg28[%c0_84, %c0_85] : memref<1x32xf32, #tpu.memory_space<vmem>>, vector<1x32xf32>
    %149 = vector.broadcast %148 : vector<1x32xf32> to vector<3x32xf32>
    %150 = arith.addf %147, %149 : vector<3x32xf32>
    %c0_86 = arith.constant 0 : index
    %c0_87 = arith.constant 0 : index
    %151 = vector.load %arg29[%c0_86, %c0_87] : memref<48x32xbf16, #tpu.memory_space<vmem>>, vector<48x32xbf16>
    %152 = arith.truncf %59 : vector<4x48xf32> to vector<4x48xbf16>
    %cst_88 = arith.constant dense<0.000000e+00> : vector<4x32xf32>
    %153 = tpu.matmul %152, %151, %cst_88 {dimension_numbers = #tpu.dot_dimension_numbers<[1], [0], [0], [1], [0, 0, 1, 1], [], []>} : vector<4x48xbf16>, vector<48x32xbf16>, vector<4x32xf32> -> vector<4x32xf32>
    %c0_89 = arith.constant 0 : index
    %c0_90 = arith.constant 0 : index
    %154 = vector.load %arg30[%c0_89, %c0_90] : memref<1x32xf32, #tpu.memory_space<vmem>>, vector<1x32xf32>
    %155 = vector.broadcast %154 : vector<1x32xf32> to vector<4x32xf32>
    %156 = arith.addf %153, %155 : vector<4x32xf32>
    %c0_91 = arith.constant 0 : index
    %c0_92 = arith.constant 0 : index
    %157 = vector.load %arg31[%c0_91, %c0_92] : memref<48x32xbf16, #tpu.memory_space<vmem>>, vector<48x32xbf16>
    %158 = arith.truncf %59 : vector<4x48xf32> to vector<4x48xbf16>
    %cst_93 = arith.constant dense<0.000000e+00> : vector<4x32xf32>
    %159 = tpu.matmul %158, %157, %cst_93 {dimension_numbers = #tpu.dot_dimension_numbers<[1], [0], [0], [1], [0, 0, 1, 1], [], []>} : vector<4x48xbf16>, vector<48x32xbf16>, vector<4x32xf32> -> vector<4x32xf32>
    %c0_94 = arith.constant 0 : index
    %c0_95 = arith.constant 0 : index
    %160 = vector.load %arg32[%c0_94, %c0_95] : memref<1x32xf32, #tpu.memory_space<vmem>>, vector<1x32xf32>
    %161 = vector.broadcast %160 : vector<1x32xf32> to vector<4x32xf32>
    %162 = arith.addf %159, %161 : vector<4x32xf32>
    %163 = arith.truncf %156 : vector<4x32xf32> to vector<4x32xbf16>
    %164 = arith.truncf %150 : vector<3x32xf32> to vector<3x32xbf16>
    %cst_96 = arith.constant dense<0.000000e+00> : vector<4x3xf32>
    %165 = tpu.matmul %163, %164, %cst_96 {dimension_numbers = #tpu.dot_dimension_numbers<[1], [1], [0], [0], [0, 0, 1, 0], [], []>} : vector<4x32xbf16>, vector<3x32xbf16>, vector<4x3xf32> -> vector<4x3xf32>
    %cst_97 = arith.constant 0.176776692 : f32
    %166 = vector.broadcast %cst_97 : f32 to vector<4x3xf32>
    %167 = arith.mulf %165, %166 : vector<4x3xf32>
    %cst_98 = arith.constant 1.000000e+00 : f32
    %168 = vector.broadcast %cst_98 : f32 to vector<4x3xf32>
    %169 = arith.subf %112, %168 : vector<4x3xf32>
    %cst_99 = arith.constant 1.000000e+09 : f32
    %170 = vector.broadcast %cst_99 : f32 to vector<4x3xf32>
    %171 = arith.mulf %169, %170 : vector<4x3xf32>
    %172 = arith.addf %167, %171 : vector<4x3xf32>
    %cst_100 = arith.constant dense<0xFF800000> : vector<3xf32>
    %173 = vector.multi_reduction <maximumf>, %172, %cst_100 [0] : vector<4x3xf32> to vector<3xf32>
    %174 = vector.shape_cast %173 : vector<3xf32> to vector<1x3xf32>
    %175 = vector.broadcast %174 : vector<1x3xf32> to vector<4x3xf32>
    %176 = arith.subf %172, %175 : vector<4x3xf32>
    %177 = math.exp %176 : vector<4x3xf32>
    %cst_101 = arith.constant dense<0.000000e+00> : vector<3xf32>
    %178 = vector.multi_reduction <add>, %177, %cst_101 [0] : vector<4x3xf32> to vector<3xf32>
    %179 = vector.shape_cast %178 : vector<3xf32> to vector<1x3xf32>
    %180 = tpu.reciprocal %179 {approx = true} : vector<1x3xf32> -> vector<1x3xf32>
    %181 = vector.broadcast %180 : vector<1x3xf32> to vector<4x3xf32>
    %182 = arith.mulf %177, %181 : vector<4x3xf32>
    %183 = arith.truncf %182 : vector<4x3xf32> to vector<4x3xbf16>
    %184 = arith.truncf %162 : vector<4x32xf32> to vector<4x32xbf16>
    %cst_102 = arith.constant dense<0.000000e+00> : vector<3x32xf32>
    %185 = tpu.matmul %183, %184, %cst_102 {dimension_numbers = #tpu.dot_dimension_numbers<[0], [0], [1], [1], [0, 1, 1, 1], [], []>} : vector<4x3xbf16>, vector<4x32xbf16>, vector<3x32xf32> -> vector<3x32xf32>
    %186 = tpu.concatenate %144, %185 in 1 : vector<3x48xf32>, vector<3x32xf32> -> vector<3x80xf32>
    %c0_103 = arith.constant 0 : index
    %c0_104 = arith.constant 0 : index
    %187 = vector.load %arg33[%c0_103, %c0_104] : memref<80x80xbf16, #tpu.memory_space<vmem>>, vector<80x80xbf16>
    %188 = arith.truncf %186 : vector<3x80xf32> to vector<3x80xbf16>
    %cst_105 = arith.constant dense<0.000000e+00> : vector<3x80xf32>
    %189 = tpu.matmul %188, %187, %cst_105 {dimension_numbers = #tpu.dot_dimension_numbers<[1], [0], [0], [1], [0, 0, 1, 1], [], []>} : vector<3x80xbf16>, vector<80x80xbf16>, vector<3x80xf32> -> vector<3x80xf32>
    %c0_106 = arith.constant 0 : index
    %c0_107 = arith.constant 0 : index
    %190 = vector.load %arg34[%c0_106, %c0_107] : memref<1x80xf32, #tpu.memory_space<vmem>>, vector<1x80xf32>
    %191 = vector.broadcast %190 : vector<1x80xf32> to vector<3x80xf32>
    %192 = arith.addf %189, %191 : vector<3x80xf32>
    %c0_108 = arith.constant 0 : index
    %c0_109 = arith.constant 0 : index
    %193 = vector.load %arg35[%c0_108, %c0_109] : memref<16x96xbf16, #tpu.memory_space<vmem>>, vector<16x96xbf16>
    %194 = arith.truncf %80 : vector<12x16xf32> to vector<12x16xbf16>
    %cst_110 = arith.constant dense<0.000000e+00> : vector<12x96xf32>
    %195 = tpu.matmul %194, %193, %cst_110 {dimension_numbers = #tpu.dot_dimension_numbers<[1], [0], [0], [1], [0, 0, 1, 1], [], []>} : vector<12x16xbf16>, vector<16x96xbf16>, vector<12x96xf32> -> vector<12x96xf32>
    %c0_111 = arith.constant 0 : index
    %c0_112 = arith.constant 0 : index
    %196 = vector.load %arg36[%c0_111, %c0_112] : memref<1x96xf32, #tpu.memory_space<vmem>>, vector<1x96xf32>
    %197 = vector.broadcast %196 : vector<1x96xf32> to vector<12x96xf32>
    %198 = arith.addf %195, %197 : vector<12x96xf32>
    %199 = vector.extract_strided_slice %198 {offsets = [0, 32], sizes = [12, 32], strides = [1, 1]} : vector<12x96xf32> to vector<12x32xf32>
    %200 = arith.negf %199 : vector<12x32xf32>
    %201 = math.exp %200 : vector<12x32xf32>
    %cst_113 = arith.constant 1.000000e+00 : f32
    %202 = vector.broadcast %cst_113 : f32 to vector<12x32xf32>
    %203 = arith.addf %202, %201 : vector<12x32xf32>
    %204 = arith.divf %202, %203 : vector<12x32xf32>
    %205 = vector.extract_strided_slice %198 {offsets = [0, 64], sizes = [12, 32], strides = [1, 1]} : vector<12x96xf32> to vector<12x32xf32>
    %206 = math.tanh %205 : vector<12x32xf32>
    %cst_114 = arith.constant 1.000000e+00 : f32
    %207 = vector.broadcast %cst_114 : f32 to vector<12x32xf32>
    %208 = arith.subf %207, %204 : vector<12x32xf32>
    %209 = arith.mulf %208, %206 : vector<12x32xf32>
    %c0_115 = arith.constant 0 : index
    %c0_116 = arith.constant 0 : index
    %210 = vector.load %arg39[%c0_115, %c0_116] : memref<80x96xbf16, #tpu.memory_space<vmem>>, vector<80x96xbf16>
    %211 = arith.truncf %192 : vector<3x80xf32> to vector<3x80xbf16>
    %cst_117 = arith.constant dense<0.000000e+00> : vector<3x96xf32>
    %212 = tpu.matmul %211, %210, %cst_117 {dimension_numbers = #tpu.dot_dimension_numbers<[1], [0], [0], [1], [0, 0, 1, 1], [], []>} : vector<3x80xbf16>, vector<80x96xbf16>, vector<3x96xf32> -> vector<3x96xf32>
    %c0_118 = arith.constant 0 : index
    %c0_119 = arith.constant 0 : index
    %213 = vector.load %arg40[%c0_118, %c0_119] : memref<1x96xf32, #tpu.memory_space<vmem>>, vector<1x96xf32>
    %214 = vector.broadcast %213 : vector<1x96xf32> to vector<3x96xf32>
    %215 = arith.addf %212, %214 : vector<3x96xf32>
    %216 = vector.extract_strided_slice %215 {offsets = [0, 32], sizes = [3, 32], strides = [1, 1]} : vector<3x96xf32> to vector<3x32xf32>
    %217 = arith.negf %216 : vector<3x32xf32>
    %218 = math.exp %217 : vector<3x32xf32>
    %cst_120 = arith.constant 1.000000e+00 : f32
    %219 = vector.broadcast %cst_120 : f32 to vector<3x32xf32>
    %220 = arith.addf %219, %218 : vector<3x32xf32>
    %221 = arith.divf %219, %220 : vector<3x32xf32>
    %222 = vector.extract_strided_slice %215 {offsets = [0, 64], sizes = [3, 32], strides = [1, 1]} : vector<3x96xf32> to vector<3x32xf32>
    %223 = math.tanh %222 : vector<3x32xf32>
    %cst_121 = arith.constant 1.000000e+00 : f32
    %224 = vector.broadcast %cst_121 : f32 to vector<3x32xf32>
    %225 = arith.subf %224, %221 : vector<3x32xf32>
    %226 = arith.mulf %225, %223 : vector<3x32xf32>
    %c0_122 = arith.constant 0 : index
    %c0_123 = arith.constant 0 : index
    %227 = vector.load %arg37[%c0_122, %c0_123] : memref<32x2xbf16, #tpu.memory_space<vmem>>, vector<32x2xbf16>
    %228 = arith.truncf %209 : vector<12x32xf32> to vector<12x32xbf16>
    %cst_124 = arith.constant dense<0.000000e+00> : vector<12x2xf32>
    %229 = tpu.matmul %228, %227, %cst_124 {dimension_numbers = #tpu.dot_dimension_numbers<[1], [0], [0], [1], [0, 0, 1, 1], [], []>} : vector<12x32xbf16>, vector<32x2xbf16>, vector<12x2xf32> -> vector<12x2xf32>
    %c0_125 = arith.constant 0 : index
    %c0_126 = arith.constant 0 : index
    %230 = vector.load %arg38[%c0_125, %c0_126] : memref<1x2xf32, #tpu.memory_space<vmem>>, vector<1x2xf32>
    %231 = vector.broadcast %230 : vector<1x2xf32> to vector<12x2xf32>
    %232 = arith.addf %229, %231 : vector<12x2xf32>
    %c0_127 = arith.constant 0 : index
    %c0_128 = arith.constant 0 : index
    %233 = vector.load %arg41[%c0_127, %c0_128] : memref<32x2xbf16, #tpu.memory_space<vmem>>, vector<32x2xbf16>
    %234 = arith.truncf %226 : vector<3x32xf32> to vector<3x32xbf16>
    %cst_129 = arith.constant dense<0.000000e+00> : vector<3x2xf32>
    %235 = tpu.matmul %234, %233, %cst_129 {dimension_numbers = #tpu.dot_dimension_numbers<[1], [0], [0], [1], [0, 0, 1, 1], [], []>} : vector<3x32xbf16>, vector<32x2xbf16>, vector<3x2xf32> -> vector<3x2xf32>
    %c0_130 = arith.constant 0 : index
    %c0_131 = arith.constant 0 : index
    %236 = vector.load %arg42[%c0_130, %c0_131] : memref<1x2xf32, #tpu.memory_space<vmem>>, vector<1x2xf32>
    %237 = vector.broadcast %236 : vector<1x2xf32> to vector<3x2xf32>
    %238 = arith.addf %235, %237 : vector<3x2xf32>
    %c0_132 = arith.constant 0 : index
    %c0_133 = arith.constant 0 : index
    %c0_134 = arith.constant 0 : index
    %239 = vector.load %arg5[%c0_132, %c0_133, %c0_134] : memref<1x12x2xf32, #tpu.memory_space<vmem>>, vector<1x12x2xf32>
    %240 = vector.shape_cast %239 : vector<1x12x2xf32> to vector<12x2xf32>
    %241 = arith.addf %232, %240 : vector<12x2xf32>
    %cst_135 = arith.constant 2.000000e+00 : f32
    %242 = vector.broadcast %cst_135 : f32 to vector<12x2xf32>
    %243 = arith.mulf %241, %242 : vector<12x2xf32>
    %cst_136 = arith.constant dense<0xFF800000> : vector<12xf32>
    %244 = vector.multi_reduction <maximumf>, %243, %cst_136 [1] : vector<12x2xf32> to vector<12xf32>
    %245 = vector.shape_cast %244 : vector<12xf32> to vector<12x1xf32>
    %246 = vector.broadcast %245 : vector<12x1xf32> to vector<12x2xf32>
    %247 = arith.subf %243, %246 : vector<12x2xf32>
    %248 = math.exp %247 : vector<12x2xf32>
    %cst_137 = arith.constant dense<0.000000e+00> : vector<12xf32>
    %249 = vector.multi_reduction <add>, %248, %cst_137 [1] : vector<12x2xf32> to vector<12xf32>
    %250 = vector.shape_cast %249 : vector<12xf32> to vector<12x1xf32>
    %251 = tpu.reciprocal %250 {approx = true} : vector<12x1xf32> -> vector<12x1xf32>
    %252 = vector.broadcast %251 : vector<12x1xf32> to vector<12x2xf32>
    %253 = arith.mulf %248, %252 : vector<12x2xf32>
    %c0_138 = arith.constant 0 : index
    %c0_139 = arith.constant 0 : index
    %c0_140 = arith.constant 0 : index
    %254 = vector.load %arg6[%c0_138, %c0_139, %c0_140] : memref<1x3x2xf32, #tpu.memory_space<vmem>>, vector<1x3x2xf32>
    %255 = vector.shape_cast %254 : vector<1x3x2xf32> to vector<3x2xf32>
    %256 = arith.addf %238, %255 : vector<3x2xf32>
    %cst_141 = arith.constant 2.000000e+00 : f32
    %257 = vector.broadcast %cst_141 : f32 to vector<3x2xf32>
    %258 = arith.mulf %256, %257 : vector<3x2xf32>
    %cst_142 = arith.constant dense<0xFF800000> : vector<3xf32>
    %259 = vector.multi_reduction <maximumf>, %258, %cst_142 [1] : vector<3x2xf32> to vector<3xf32>
    %260 = vector.shape_cast %259 : vector<3xf32> to vector<3x1xf32>
    %261 = vector.broadcast %260 : vector<3x1xf32> to vector<3x2xf32>
    %262 = arith.subf %258, %261 : vector<3x2xf32>
    %263 = math.exp %262 : vector<3x2xf32>
    %cst_143 = arith.constant dense<0.000000e+00> : vector<3xf32>
    %264 = vector.multi_reduction <add>, %263, %cst_143 [1] : vector<3x2xf32> to vector<3xf32>
    %265 = vector.shape_cast %264 : vector<3xf32> to vector<3x1xf32>
    %266 = tpu.reciprocal %265 {approx = true} : vector<3x1xf32> -> vector<3x1xf32>
    %267 = vector.broadcast %266 : vector<3x1xf32> to vector<3x2xf32>
    %268 = arith.mulf %263, %267 : vector<3x2xf32>
    %cst_144 = arith.constant 0.000000e+00 : f32
    %269 = vector.broadcast %cst_144 : f32 to vector<4x77xf32>
    %270 = tpu.concatenate %19, %58, %112, %269 in 1 : vector<4x32xf32>, vector<4x16xf32>, vector<4x3xf32>, vector<4x77xf32> -> vector<4x128xf32>
    %c0_145 = arith.constant 0 : index
    %c0_146 = arith.constant 0 : index
    %c0_147 = arith.constant 0 : index
    %271 = vector.load %arg43[%c0_145, %c0_146, %c0_147] : memref<1x4x128xf32, #tpu.memory_space<vmem>>, vector<1x4x128xf32>
    %272 = vector.shape_cast %271 : vector<1x4x128xf32> to vector<4x128xf32>
    %273 = vector.shape_cast %270 : vector<4x128xf32> to vector<1x4x128xf32>
    tpu.vector_store %arg43[%c0_145, %c0_146, %c0_147], %273 {strides = array<i32>} : memref<1x4x128xf32, #tpu.memory_space<vmem>>, vector<1x4x128xf32>,
    %cst_148 = arith.constant 0.000000e+00 : f32
    %274 = vector.broadcast %cst_148 : f32 to vector<12x94xf32>
    %275 = tpu.concatenate %253, %209, %274 in 1 : vector<12x2xf32>, vector<12x32xf32>, vector<12x94xf32> -> vector<12x128xf32>
    %c0_149 = arith.constant 0 : index
    %c0_150 = arith.constant 0 : index
    %c0_151 = arith.constant 0 : index
    %276 = vector.load %arg44[%c0_149, %c0_150, %c0_151] : memref<1x12x128xf32, #tpu.memory_space<vmem>>, vector<1x12x128xf32>
    %277 = vector.shape_cast %276 : vector<1x12x128xf32> to vector<12x128xf32>
    %278 = vector.shape_cast %275 : vector<12x128xf32> to vector<1x12x128xf32>
    tpu.vector_store %arg44[%c0_149, %c0_150, %c0_151], %278 {strides = array<i32>} : memref<1x12x128xf32, #tpu.memory_space<vmem>>, vector<1x12x128xf32>,
    %cst_152 = arith.constant 0.000000e+00 : f32
    %279 = vector.broadcast %cst_152 : f32 to vector<3x94xf32>
    %280 = tpu.concatenate %268, %226, %279 in 1 : vector<3x2xf32>, vector<3x32xf32>, vector<3x94xf32> -> vector<3x128xf32>
    %c0_153 = arith.constant 0 : index
    %c0_154 = arith.constant 0 : index
    %c0_155 = arith.constant 0 : index
    %281 = vector.load %arg45[%c0_153, %c0_154, %c0_155] : memref<1x3x128xf32, #tpu.memory_space<vmem>>, vector<1x3x128xf32>
    %282 = vector.shape_cast %281 : vector<1x3x128xf32> to vector<3x128xf32>
    %283 = vector.shape_cast %280 : vector<3x128xf32> to vector<1x3x128xf32>
    tpu.vector_store %arg45[%c0_153, %c0_154, %c0_155], %283 {strides = array<i32>} : memref<1x3x128xf32, #tpu.memory_space<vmem>>, vector<1x3x128xf32>,
    return
  }
  func.func @transform_0(%arg0: i32) -> (i32, i32, i32) {
    %c0_i32 = arith.constant 0 : i32
    %c0_i32_0 = arith.constant 0 : i32
    %c0_i32_1 = arith.constant 0 : i32
    return %arg0, %c0_i32, %c0_i32_0 : i32, i32, i32
  }
  func.func @transform_1(%arg0: i32) -> (i32, i32, i32) {
    %c0_i32 = arith.constant 0 : i32
    %c0_i32_0 = arith.constant 0 : i32
    %c0_i32_1 = arith.constant 0 : i32
    return %arg0, %c0_i32, %c0_i32_0 : i32, i32, i32
  }
  func.func @transform_2(%arg0: i32) -> (i32, i32, i32) {
    %c0_i32 = arith.constant 0 : i32
    %c0_i32_0 = arith.constant 0 : i32
    %c0_i32_1 = arith.constant 0 : i32
    return %arg0, %c0_i32, %c0_i32_0 : i32, i32, i32
  }
  func.func @transform_3(%arg0: i32) -> (i32, i32, i32) {
    %c0_i32 = arith.constant 0 : i32
    %c0_i32_0 = arith.constant 0 : i32
    %c0_i32_1 = arith.constant 0 : i32
    return %arg0, %c0_i32, %c0_i32_0 : i32, i32, i32
  }
  func.func @transform_4(%arg0: i32) -> (i32, i32, i32) {
    %c0_i32 = arith.constant 0 : i32
    %c0_i32_0 = arith.constant 0 : i32
    %c0_i32_1 = arith.constant 0 : i32
    return %arg0, %c0_i32, %c0_i32_0 : i32, i32, i32
  }
  func.func @transform_5(%arg0: i32) -> (i32, i32, i32) {
    %c0_i32 = arith.constant 0 : i32
    %c0_i32_0 = arith.constant 0 : i32
    %c0_i32_1 = arith.constant 0 : i32
    return %arg0, %c0_i32, %c0_i32_0 : i32, i32, i32
  }
  func.func @transform_6(%arg0: i32) -> (i32, i32) {
    %c0_i32 = arith.constant 0 : i32
    %c0_i32_0 = arith.constant 0 : i32
    %c0_i32_1 = arith.constant 0 : i32
    return %c0_i32, %c0_i32_0 : i32, i32
  }
  func.func @transform_7(%arg0: i32) -> (i32, i32) {
    %c0_i32 = arith.constant 0 : i32
    %c0_i32_0 = arith.constant 0 : i32
    %c0_i32_1 = arith.constant 0 : i32
    return %c0_i32, %c0_i32_0 : i32, i32
  }
  func.func @transform_8(%arg0: i32) -> (i32, i32) {
    %c0_i32 = arith.constant 0 : i32
    %c0_i32_0 = arith.constant 0 : i32
    %c0_i32_1 = arith.constant 0 : i32
    return %c0_i32, %c0_i32_0 : i32, i32
  }
  func.func @transform_9(%arg0: i32) -> (i32, i32) {
    %c0_i32 = arith.constant 0 : i32
    %c0_i32_0 = arith.constant 0 : i32
    %c0_i32_1 = arith.constant 0 : i32
    return %c0_i32, %c0_i32_0 : i32, i32
  }
  func.func @transform_10(%arg0: i32) -> (i32, i32) {
    %c0_i32 = arith.constant 0 : i32
    %c0_i32_0 = arith.constant 0 : i32
    %c0_i32_1 = arith.constant 0 : i32
    return %c0_i32, %c0_i32_0 : i32, i32
  }
  func.func @transform_11(%arg0: i32) -> (i32, i32) {
    %c0_i32 = arith.constant 0 : i32
    %c0_i32_0 = arith.constant 0 : i32
    %c0_i32_1 = arith.constant 0 : i32
    return %c0_i32, %c0_i32_0 : i32, i32
  }
  func.func @transform_12(%arg0: i32) -> (i32, i32) {
    %c0_i32 = arith.constant 0 : i32
    %c0_i32_0 = arith.constant 0 : i32
    %c0_i32_1 = arith.constant 0 : i32
    return %c0_i32, %c0_i32_0 : i32, i32
  }
  func.func @transform_13(%arg0: i32) -> (i32, i32) {
    %c0_i32 = arith.constant 0 : i32
    %c0_i32_0 = arith.constant 0 : i32
    %c0_i32_1 = arith.constant 0 : i32
    return %c0_i32, %c0_i32_0 : i32, i32
  }
  func.func @transform_14(%arg0: i32) -> (i32, i32) {
    %c0_i32 = arith.constant 0 : i32
    %c0_i32_0 = arith.constant 0 : i32
    %c0_i32_1 = arith.constant 0 : i32
    return %c0_i32, %c0_i32_0 : i32, i32
  }
  func.func @transform_15(%arg0: i32) -> (i32, i32) {
    %c0_i32 = arith.constant 0 : i32
    %c0_i32_0 = arith.constant 0 : i32
    %c0_i32_1 = arith.constant 0 : i32
    return %c0_i32, %c0_i32_0 : i32, i32
  }
  func.func @transform_16(%arg0: i32) -> (i32, i32) {
    %c0_i32 = arith.constant 0 : i32
    %c0_i32_0 = arith.constant 0 : i32
    %c0_i32_1 = arith.constant 0 : i32
    return %c0_i32, %c0_i32_0 : i32, i32
  }
  func.func @transform_17(%arg0: i32) -> (i32, i32) {
    %c0_i32 = arith.constant 0 : i32
    %c0_i32_0 = arith.constant 0 : i32
    %c0_i32_1 = arith.constant 0 : i32
    return %c0_i32, %c0_i32_0 : i32, i32
  }
  func.func @transform_18(%arg0: i32) -> (i32, i32) {
    %c0_i32 = arith.constant 0 : i32
    %c0_i32_0 = arith.constant 0 : i32
    %c0_i32_1 = arith.constant 0 : i32
    return %c0_i32, %c0_i32_0 : i32, i32
  }
  func.func @transform_19(%arg0: i32) -> (i32, i32) {
    %c0_i32 = arith.constant 0 : i32
    %c0_i32_0 = arith.constant 0 : i32
    %c0_i32_1 = arith.constant 0 : i32
    return %c0_i32, %c0_i32_0 : i32, i32
  }
  func.func @transform_20(%arg0: i32) -> (i32, i32) {
    %c0_i32 = arith.constant 0 : i32
    %c0_i32_0 = arith.constant 0 : i32
    %c0_i32_1 = arith.constant 0 : i32
    return %c0_i32, %c0_i32_0 : i32, i32
  }
  func.func @transform_21(%arg0: i32) -> (i32, i32) {
    %c0_i32 = arith.constant 0 : i32
    %c0_i32_0 = arith.constant 0 : i32
    %c0_i32_1 = arith.constant 0 : i32
    return %c0_i32, %c0_i32_0 : i32, i32
  }
  func.func @transform_22(%arg0: i32) -> (i32, i32) {
    %c0_i32 = arith.constant 0 : i32
    %c0_i32_0 = arith.constant 0 : i32
    %c0_i32_1 = arith.constant 0 : i32
    return %c0_i32, %c0_i32_0 : i32, i32
  }
  func.func @transform_23(%arg0: i32) -> (i32, i32) {
    %c0_i32 = arith.constant 0 : i32
    %c0_i32_0 = arith.constant 0 : i32
    %c0_i32_1 = arith.constant 0 : i32
    return %c0_i32, %c0_i32_0 : i32, i32
  }
  func.func @transform_24(%arg0: i32) -> (i32, i32) {
    %c0_i32 = arith.constant 0 : i32
    %c0_i32_0 = arith.constant 0 : i32
    %c0_i32_1 = arith.constant 0 : i32
    return %c0_i32, %c0_i32_0 : i32, i32
  }
  func.func @transform_25(%arg0: i32) -> (i32, i32) {
    %c0_i32 = arith.constant 0 : i32
    %c0_i32_0 = arith.constant 0 : i32
    %c0_i32_1 = arith.constant 0 : i32
    return %c0_i32, %c0_i32_0 : i32, i32
  }
  func.func @transform_26(%arg0: i32) -> (i32, i32) {
    %c0_i32 = arith.constant 0 : i32
    %c0_i32_0 = arith.constant 0 : i32
    %c0_i32_1 = arith.constant 0 : i32
    return %c0_i32, %c0_i32_0 : i32, i32
  }
  func.func @transform_27(%arg0: i32) -> (i32, i32) {
    %c0_i32 = arith.constant 0 : i32
    %c0_i32_0 = arith.constant 0 : i32
    %c0_i32_1 = arith.constant 0 : i32
    return %c0_i32, %c0_i32_0 : i32, i32
  }
  func.func @transform_28(%arg0: i32) -> (i32, i32) {
    %c0_i32 = arith.constant 0 : i32
    %c0_i32_0 = arith.constant 0 : i32
    %c0_i32_1 = arith.constant 0 : i32
    return %c0_i32, %c0_i32_0 : i32, i32
  }
  func.func @transform_29(%arg0: i32) -> (i32, i32) {
    %c0_i32 = arith.constant 0 : i32
    %c0_i32_0 = arith.constant 0 : i32
    %c0_i32_1 = arith.constant 0 : i32
    return %c0_i32, %c0_i32_0 : i32, i32
  }
  func.func @transform_30(%arg0: i32) -> (i32, i32) {
    %c0_i32 = arith.constant 0 : i32
    %c0_i32_0 = arith.constant 0 : i32
    %c0_i32_1 = arith.constant 0 : i32
    return %c0_i32, %c0_i32_0 : i32, i32
  }
  func.func @transform_31(%arg0: i32) -> (i32, i32) {
    %c0_i32 = arith.constant 0 : i32
    %c0_i32_0 = arith.constant 0 : i32
    %c0_i32_1 = arith.constant 0 : i32
    return %c0_i32, %c0_i32_0 : i32, i32
  }
  func.func @transform_32(%arg0: i32) -> (i32, i32) {
    %c0_i32 = arith.constant 0 : i32
    %c0_i32_0 = arith.constant 0 : i32
    %c0_i32_1 = arith.constant 0 : i32
    return %c0_i32, %c0_i32_0 : i32, i32
  }
  func.func @transform_33(%arg0: i32) -> (i32, i32) {
    %c0_i32 = arith.constant 0 : i32
    %c0_i32_0 = arith.constant 0 : i32
    %c0_i32_1 = arith.constant 0 : i32
    return %c0_i32, %c0_i32_0 : i32, i32
  }
  func.func @transform_34(%arg0: i32) -> (i32, i32) {
    %c0_i32 = arith.constant 0 : i32
    %c0_i32_0 = arith.constant 0 : i32
    %c0_i32_1 = arith.constant 0 : i32
    return %c0_i32, %c0_i32_0 : i32, i32
  }
  func.func @transform_35(%arg0: i32) -> (i32, i32) {
    %c0_i32 = arith.constant 0 : i32
    %c0_i32_0 = arith.constant 0 : i32
    %c0_i32_1 = arith.constant 0 : i32
    return %c0_i32, %c0_i32_0 : i32, i32
  }
  func.func @transform_36(%arg0: i32) -> (i32, i32) {
    %c0_i32 = arith.constant 0 : i32
    %c0_i32_0 = arith.constant 0 : i32
    %c0_i32_1 = arith.constant 0 : i32
    return %c0_i32, %c0_i32_0 : i32, i32
  }
  func.func @transform_37(%arg0: i32) -> (i32, i32) {
    %c0_i32 = arith.constant 0 : i32
    %c0_i32_0 = arith.constant 0 : i32
    %c0_i32_1 = arith.constant 0 : i32
    return %c0_i32, %c0_i32_0 : i32, i32
  }
  func.func @transform_38(%arg0: i32) -> (i32, i32) {
    %c0_i32 = arith.constant 0 : i32
    %c0_i32_0 = arith.constant 0 : i32
    %c0_i32_1 = arith.constant 0 : i32
    return %c0_i32, %c0_i32_0 : i32, i32
  }
  func.func @transform_39(%arg0: i32) -> (i32, i32) {
    %c0_i32 = arith.constant 0 : i32
    %c0_i32_0 = arith.constant 0 : i32
    %c0_i32_1 = arith.constant 0 : i32
    return %c0_i32, %c0_i32_0 : i32, i32
  }
  func.func @transform_40(%arg0: i32) -> (i32, i32) {
    %c0_i32 = arith.constant 0 : i32
    %c0_i32_0 = arith.constant 0 : i32
    %c0_i32_1 = arith.constant 0 : i32
    return %c0_i32, %c0_i32_0 : i32, i32
  }
  func.func @transform_41(%arg0: i32) -> (i32, i32) {
    %c0_i32 = arith.constant 0 : i32
    %c0_i32_0 = arith.constant 0 : i32
    %c0_i32_1 = arith.constant 0 : i32
    return %c0_i32, %c0_i32_0 : i32, i32
  }
  func.func @transform_42(%arg0: i32) -> (i32, i32, i32) {
    %c0_i32 = arith.constant 0 : i32
    %c0_i32_0 = arith.constant 0 : i32
    %c0_i32_1 = arith.constant 0 : i32
    return %arg0, %c0_i32, %c0_i32_0 : i32, i32, i32
  }
  func.func @transform_43(%arg0: i32) -> (i32, i32, i32) {
    %c0_i32 = arith.constant 0 : i32
    %c0_i32_0 = arith.constant 0 : i32
    %c0_i32_1 = arith.constant 0 : i32
    return %arg0, %c0_i32, %c0_i32_0 : i32, i32, i32
  }
  func.func @transform_44(%arg0: i32) -> (i32, i32, i32) {
    %c0_i32 = arith.constant 0 : i32
    %c0_i32_0 = arith.constant 0 : i32
    %c0_i32_1 = arith.constant 0 : i32
    return %arg0, %c0_i32, %c0_i32_0 : i32, i32, i32
  }
}

module attributes {stable_mosaic.version = 11 : i64} {
  func.func @_decoder_kernel(%arg0: i32, %arg1: memref<1x8x8x4xf32, #tpu.memory_space<vmem>>, %arg2: memref<1x12x8xf32, #tpu.memory_space<vmem>>, %arg3: memref<1x12x8xf32, #tpu.memory_space<vmem>>, %arg4: memref<1x12x2xf32, #tpu.memory_space<vmem>>, %arg5: memref<2x64x16xbf16, #tpu.memory_space<vmem>>, %arg6: memref<2x1x16xf32, #tpu.memory_space<vmem>>, %arg7: memref<4x16xbf16, #tpu.memory_space<vmem>>, %arg8: memref<1x16xf32, #tpu.memory_space<vmem>>, %arg9: memref<32x96xbf16, #tpu.memory_space<vmem>>, %arg10: memref<1x96xf32, #tpu.memory_space<vmem>>, %arg11: memref<32x96xbf16, #tpu.memory_space<vmem>>, %arg12: memref<32x32xbf16, #tpu.memory_space<vmem>>, %arg13: memref<1x32xf32, #tpu.memory_space<vmem>>, %arg14: memref<32x32xbf16, #tpu.memory_space<vmem>>, %arg15: memref<1x32xf32, #tpu.memory_space<vmem>>, %arg16: memref<32x4xbf16, #tpu.memory_space<vmem>>, %arg17: memref<1x4xf32, #tpu.memory_space<vmem>>, %arg18: memref<32x18xbf16, #tpu.memory_space<vmem>>, %arg19: memref<1x18xf32, #tpu.memory_space<vmem>>, %arg20: memref<1x12x8x128xf32, #tpu.memory_space<vmem>>, %arg21: memref<8x32xf32, #tpu.memory_space<vmem>>, %arg22: memref<8x4xf32, #tpu.memory_space<vmem>>) attributes {dimension_semantics = [#tpu.dimension_semantics<parallel>], iteration_bounds = array<i64: 2>, scalar_prefetch = 0 : i64, scratch_operands = 2 : i64, tpu.core_type = #tpu.core_type<tc>, window_params = [{transform_indices = @transform_0, window_bounds = array<i64: 1, 8, 8, 4>}, {transform_indices = @transform_1, window_bounds = array<i64: 1, 12, 8>}, {transform_indices = @transform_2, window_bounds = array<i64: 1, 12, 8>}, {transform_indices = @transform_3, window_bounds = array<i64: 1, 12, 2>}, {pipeline_mode = #tpu.pipeline_mode<synchronous>, transform_indices = @transform_4, window_bounds = array<i64: 2, 64, 16>}, {pipeline_mode = #tpu.pipeline_mode<synchronous>, transform_indices = @transform_5, window_bounds = array<i64: 2, 1, 16>}, {pipeline_mode = #tpu.pipeline_mode<synchronous>, transform_indices = @transform_6, window_bounds = array<i64: 4, 16>}, {pipeline_mode = #tpu.pipeline_mode<synchronous>, transform_indices = @transform_7, window_bounds = array<i64: 1, 16>}, {pipeline_mode = #tpu.pipeline_mode<synchronous>, transform_indices = @transform_8, window_bounds = array<i64: 32, 96>}, {pipeline_mode = #tpu.pipeline_mode<synchronous>, transform_indices = @transform_9, window_bounds = array<i64: 1, 96>}, {pipeline_mode = #tpu.pipeline_mode<synchronous>, transform_indices = @transform_10, window_bounds = array<i64: 32, 96>}, {pipeline_mode = #tpu.pipeline_mode<synchronous>, transform_indices = @transform_11, window_bounds = array<i64: 32, 32>}, {pipeline_mode = #tpu.pipeline_mode<synchronous>, transform_indices = @transform_12, window_bounds = array<i64: 1, 32>}, {pipeline_mode = #tpu.pipeline_mode<synchronous>, transform_indices = @transform_13, window_bounds = array<i64: 32, 32>}, {pipeline_mode = #tpu.pipeline_mode<synchronous>, transform_indices = @transform_14, window_bounds = array<i64: 1, 32>}, {pipeline_mode = #tpu.pipeline_mode<synchronous>, transform_indices = @transform_15, window_bounds = array<i64: 32, 4>}, {pipeline_mode = #tpu.pipeline_mode<synchronous>, transform_indices = @transform_16, window_bounds = array<i64: 1, 4>}, {pipeline_mode = #tpu.pipeline_mode<synchronous>, transform_indices = @transform_17, window_bounds = array<i64: 32, 18>}, {pipeline_mode = #tpu.pipeline_mode<synchronous>, transform_indices = @transform_18, window_bounds = array<i64: 1, 18>}, {transform_indices = @transform_19, window_bounds = array<i64: 1, 12, 8, 128>}]} {
    %c0 = arith.constant 0 : index
    %c0_0 = arith.constant 0 : index
    %c0_1 = arith.constant 0 : index
    %0 = vector.load %arg2[%c0, %c0_0, %c0_1] : memref<1x12x8xf32, #tpu.memory_space<vmem>>, vector<1x12x8xf32>
    %1 = vector.shape_cast %0 : vector<1x12x8xf32> to vector<12x8xf32>
    %c0_2 = arith.constant 0 : index
    %c0_3 = arith.constant 0 : index
    %c0_4 = arith.constant 0 : index
    %2 = vector.load %arg3[%c0_2, %c0_3, %c0_4] : memref<1x12x8xf32, #tpu.memory_space<vmem>>, vector<1x12x8xf32>
    %3 = vector.shape_cast %2 : vector<1x12x8xf32> to vector<12x8xf32>
    %c0_5 = arith.constant 0 : index
    %c0_6 = arith.constant 0 : index
    %c0_7 = arith.constant 0 : index
    %4 = vector.load %arg4[%c0_5, %c0_6, %c0_7] : memref<1x12x2xf32, #tpu.memory_space<vmem>>, vector<1x12x2xf32>
    %5 = vector.shape_cast %4 : vector<1x12x2xf32> to vector<12x2xf32>
    %cst = arith.constant 0.000000e+00 : f32
    %6 = vector.broadcast %cst : f32 to vector<8x32xf32>
    %c0_8 = arith.constant 0 : index
    %c0_9 = arith.constant 0 : index
    %7 = vector.load %arg21[%c0_8, %c0_9] : memref<8x32xf32, #tpu.memory_space<vmem>>, vector<8x32xf32>
    tpu.vector_store %arg21[%c0_8, %c0_9], %6 {strides = array<i32>} : memref<8x32xf32, #tpu.memory_space<vmem>>, vector<8x32xf32>,
    %c0_i32 = arith.constant 0 : i32
    %c0_i32_10 = arith.constant 0 : i32
    %c0_i32_11 = arith.constant 0 : i32
    %c0_i32_12 = arith.constant 0 : i32
    %8 = tpu.memref_slice %arg1[%c0_i32, %c0_i32_10, %c0_i32_11, %c0_i32_12] : memref<1x8x8x4xf32, #tpu.memory_space<vmem>> -> memref<1x8x8x4xf32, #tpu.memory_space<vmem>>
    %9 = tpu.memref_squeeze %8 : memref<1x8x8x4xf32, #tpu.memory_space<vmem>> -> memref<8x8x4xf32, #tpu.memory_space<vmem>>
    %c0_13 = arith.constant 0 : index
    %c0_14 = arith.constant 0 : index
    %c0_15 = arith.constant 0 : index
    %10 = vector.load %9[%c0_13, %c0_14, %c0_15] : memref<8x8x4xf32, #tpu.memory_space<vmem>>, vector<1x8x4xf32>
    %11 = vector.shape_cast %10 : vector<1x8x4xf32> to vector<8x4xf32>
    %c0_16 = arith.constant 0 : index
    %c0_17 = arith.constant 0 : index
    %12 = vector.load %arg22[%c0_16, %c0_17] : memref<8x4xf32, #tpu.memory_space<vmem>>, vector<8x4xf32>
    tpu.vector_store %arg22[%c0_16, %c0_17], %11 {strides = array<i32>} : memref<8x4xf32, #tpu.memory_space<vmem>>, vector<8x4xf32>,
    %cst_18 = arith.constant 0.000000e+00 : f32
    %13 = vector.broadcast %cst_18 : f32 to vector<8x106xf32>
    %cst_19 = arith.constant 0.000000e+00 : f32
    %14 = vector.broadcast %cst_19 : f32 to vector<12x16xf32>
    %c0_i32_20 = arith.constant 0 : i32
    %c0_i32_21 = arith.constant 0 : i32
    %c0_i32_22 = arith.constant 0 : i32
    %c12_i32 = arith.constant 12 : i32
    %15 = arith.addi %c0_i32_22, %c12_i32 : i32
    %c1_i32 = arith.constant 1 : i32
    scf.for %arg23 = %c0_i32_22 to %15 step %c1_i32  : i32 {
      %c1_i32_24 = arith.constant 1 : i32
      %16 = arith.muli %arg23, %c1_i32_24 : i32
      %c0_i32_25 = arith.constant 0 : i32
      %17 = arith.addi %c0_i32_25, %16 : i32
      %c7_i32 = arith.constant 7 : i32
      %18 = arith.minsi %17, %c7_i32 : i32
      %c0_i32_26 = arith.constant 0 : i32
      %c0_i32_27 = arith.constant 0 : i32
      %c0_i32_28 = arith.constant 0 : i32
      %19 = tpu.memref_slice %arg1[%c0_i32_20, %c0_i32_26, %c0_i32_27, %c0_i32_28] : memref<1x8x8x4xf32, #tpu.memory_space<vmem>> -> memref<1x8x8x4xf32, #tpu.memory_space<vmem>>
      %20 = tpu.memref_squeeze %19 : memref<1x8x8x4xf32, #tpu.memory_space<vmem>> -> memref<8x8x4xf32, #tpu.memory_space<vmem>>
      %21 = arith.index_cast %18 : i32 to index
      %c0_29 = arith.constant 0 : index
      %c0_30 = arith.constant 0 : index
      %22 = vector.load %20[%21, %c0_29, %c0_30] : memref<8x8x4xf32, #tpu.memory_space<vmem>>, vector<1x8x4xf32>
      %23 = vector.shape_cast %22 : vector<1x8x4xf32> to vector<8x4xf32>
      %c4_i32 = arith.constant 4 : i32
      %24 = arith.cmpi slt, %17, %c4_i32 : i32
      %c0_31 = arith.constant 0 : index
      %c0_32 = arith.constant 0 : index
      %25 = vector.load %arg22[%c0_31, %c0_32] : memref<8x4xf32, #tpu.memory_space<vmem>>, vector<8x4xf32>
      %26 = arith.select %24, %23, %25 : vector<8x4xf32>
      %c0_33 = arith.constant 0 : index
      %c0_34 = arith.constant 0 : index
      %27 = vector.load %arg21[%c0_33, %c0_34] : memref<8x32xf32, #tpu.memory_space<vmem>>, vector<8x32xf32>
      %28 = arith.truncf %1 : vector<12x8xf32> to vector<12x8xbf16>
      %29 = arith.truncf %27 : vector<8x32xf32> to vector<8x32xbf16>
      %cst_35 = arith.constant dense<0.000000e+00> : vector<12x32xf32>
      %30 = tpu.matmul %28, %29, %cst_35 {dimension_numbers = #tpu.dot_dimension_numbers<[1], [0], [0], [1], [0, 0, 1, 1], [], []>} : vector<12x8xbf16>, vector<8x32xbf16>, vector<12x32xf32> -> vector<12x32xf32>
      %31 = arith.truncf %3 : vector<12x8xf32> to vector<12x8xbf16>
      %32 = arith.truncf %27 : vector<8x32xf32> to vector<8x32xbf16>
      %cst_36 = arith.constant dense<0.000000e+00> : vector<12x32xf32>
      %33 = tpu.matmul %31, %32, %cst_36 {dimension_numbers = #tpu.dot_dimension_numbers<[1], [0], [0], [1], [0, 0, 1, 1], [], []>} : vector<12x8xbf16>, vector<8x32xbf16>, vector<12x32xf32> -> vector<12x32xf32>
      %34 = tpu.concatenate %30, %33 in 1 : vector<12x32xf32>, vector<12x32xf32> -> vector<12x64xf32>
      %c0_37 = arith.constant 0 : index
      %c0_38 = arith.constant 0 : index
      %c0_39 = arith.constant 0 : index
      %35 = vector.load %arg5[%c0_37, %c0_38, %c0_39] : memref<2x64x16xbf16, #tpu.memory_space<vmem>>, vector<1x64x16xbf16>
      %36 = vector.shape_cast %35 : vector<1x64x16xbf16> to vector<64x16xbf16>
      %37 = arith.truncf %34 : vector<12x64xf32> to vector<12x64xbf16>
      %cst_40 = arith.constant dense<0.000000e+00> : vector<12x16xf32>
      %38 = tpu.matmul %37, %36, %cst_40 {dimension_numbers = #tpu.dot_dimension_numbers<[1], [0], [0], [1], [0, 0, 1, 1], [], []>} : vector<12x64xbf16>, vector<64x16xbf16>, vector<12x16xf32> -> vector<12x16xf32>
      %c0_41 = arith.constant 0 : index
      %c0_42 = arith.constant 0 : index
      %c0_43 = arith.constant 0 : index
      %39 = vector.load %arg6[%c0_41, %c0_42, %c0_43] : memref<2x1x16xf32, #tpu.memory_space<vmem>>, vector<1x1x16xf32>
      %40 = vector.shape_cast %39 : vector<1x1x16xf32> to vector<1x16xf32>
      %41 = vector.broadcast %40 : vector<1x16xf32> to vector<12x16xf32>
      %42 = arith.addf %38, %41 : vector<12x16xf32>
      %43 = math.tanh %42 : vector<12x16xf32>
      %44 = vector.extract_strided_slice %5 {offsets = [0, 0], sizes = [12, 1], strides = [1, 1]} : vector<12x2xf32> to vector<12x1xf32>
      %45 = vector.broadcast %44 : vector<12x1xf32> to vector<12x16xf32>
      %46 = arith.mulf %45, %43 : vector<12x16xf32>
      %47 = arith.addf %14, %46 : vector<12x16xf32>
      %c1 = arith.constant 1 : index
      %c0_44 = arith.constant 0 : index
      %c0_45 = arith.constant 0 : index
      %48 = vector.load %arg5[%c1, %c0_44, %c0_45] : memref<2x64x16xbf16, #tpu.memory_space<vmem>>, vector<1x64x16xbf16>
      %49 = vector.shape_cast %48 : vector<1x64x16xbf16> to vector<64x16xbf16>
      %50 = arith.truncf %34 : vector<12x64xf32> to vector<12x64xbf16>
      %cst_46 = arith.constant dense<0.000000e+00> : vector<12x16xf32>
      %51 = tpu.matmul %50, %49, %cst_46 {dimension_numbers = #tpu.dot_dimension_numbers<[1], [0], [0], [1], [0, 0, 1, 1], [], []>} : vector<12x64xbf16>, vector<64x16xbf16>, vector<12x16xf32> -> vector<12x16xf32>
      %c1_47 = arith.constant 1 : index
      %c0_48 = arith.constant 0 : index
      %c0_49 = arith.constant 0 : index
      %52 = vector.load %arg6[%c1_47, %c0_48, %c0_49] : memref<2x1x16xf32, #tpu.memory_space<vmem>>, vector<1x1x16xf32>
      %53 = vector.shape_cast %52 : vector<1x1x16xf32> to vector<1x16xf32>
      %54 = vector.broadcast %53 : vector<1x16xf32> to vector<12x16xf32>
      %55 = arith.addf %51, %54 : vector<12x16xf32>
      %56 = math.tanh %55 : vector<12x16xf32>
      %57 = vector.extract_strided_slice %5 {offsets = [0, 1], sizes = [12, 1], strides = [1, 1]} : vector<12x2xf32> to vector<12x1xf32>
      %58 = vector.broadcast %57 : vector<12x1xf32> to vector<12x16xf32>
      %59 = arith.mulf %58, %56 : vector<12x16xf32>
      %60 = arith.addf %47, %59 : vector<12x16xf32>
      %61 = arith.truncf %1 : vector<12x8xf32> to vector<12x8xbf16>
      %62 = arith.truncf %60 : vector<12x16xf32> to vector<12x16xbf16>
      %cst_50 = arith.constant dense<0.000000e+00> : vector<8x16xf32>
      %63 = tpu.matmul %61, %62, %cst_50 {dimension_numbers = #tpu.dot_dimension_numbers<[0], [0], [1], [1], [0, 1, 1, 1], [], []>} : vector<12x8xbf16>, vector<12x16xbf16>, vector<8x16xf32> -> vector<8x16xf32>
      %cst_51 = arith.constant 2.500000e-01 : f32
      %64 = vector.broadcast %cst_51 : f32 to vector<8x16xf32>
      %65 = arith.mulf %63, %64 : vector<8x16xf32>
      %c0_52 = arith.constant 0 : index
      %c0_53 = arith.constant 0 : index
      %66 = vector.load %arg7[%c0_52, %c0_53] : memref<4x16xbf16, #tpu.memory_space<vmem>>, vector<4x16xbf16>
      %67 = arith.truncf %26 : vector<8x4xf32> to vector<8x4xbf16>
      %cst_54 = arith.constant dense<0.000000e+00> : vector<8x16xf32>
      %68 = tpu.matmul %67, %66, %cst_54 {dimension_numbers = #tpu.dot_dimension_numbers<[1], [0], [0], [1], [0, 0, 1, 1], [], []>} : vector<8x4xbf16>, vector<4x16xbf16>, vector<8x16xf32> -> vector<8x16xf32>
      %c0_55 = arith.constant 0 : index
      %c0_56 = arith.constant 0 : index
      %69 = vector.load %arg8[%c0_55, %c0_56] : memref<1x16xf32, #tpu.memory_space<vmem>>, vector<1x16xf32>
      %70 = vector.broadcast %69 : vector<1x16xf32> to vector<8x16xf32>
      %71 = arith.addf %68, %70 : vector<8x16xf32>
      %cst_57 = arith.constant 0.000000e+00 : f32
      %72 = vector.broadcast %cst_57 : f32 to vector<8x16xf32>
      %73 = arith.maximumf %71, %72 : vector<8x16xf32>
      %74 = tpu.concatenate %73, %65 in 1 : vector<8x16xf32>, vector<8x16xf32> -> vector<8x32xf32>
      %c0_58 = arith.constant 0 : index
      %c0_59 = arith.constant 0 : index
      %75 = vector.load %arg9[%c0_58, %c0_59] : memref<32x96xbf16, #tpu.memory_space<vmem>>, vector<32x96xbf16>
      %76 = arith.truncf %74 : vector<8x32xf32> to vector<8x32xbf16>
      %cst_60 = arith.constant dense<0.000000e+00> : vector<8x96xf32>
      %77 = tpu.matmul %76, %75, %cst_60 {dimension_numbers = #tpu.dot_dimension_numbers<[1], [0], [0], [1], [0, 0, 1, 1], [], []>} : vector<8x32xbf16>, vector<32x96xbf16>, vector<8x96xf32> -> vector<8x96xf32>
      %c0_61 = arith.constant 0 : index
      %c0_62 = arith.constant 0 : index
      %78 = vector.load %arg10[%c0_61, %c0_62] : memref<1x96xf32, #tpu.memory_space<vmem>>, vector<1x96xf32>
      %79 = vector.broadcast %78 : vector<1x96xf32> to vector<8x96xf32>
      %80 = arith.addf %77, %79 : vector<8x96xf32>
      %c0_63 = arith.constant 0 : index
      %c0_64 = arith.constant 0 : index
      %81 = vector.load %arg11[%c0_63, %c0_64] : memref<32x96xbf16, #tpu.memory_space<vmem>>, vector<32x96xbf16>
      %82 = arith.truncf %27 : vector<8x32xf32> to vector<8x32xbf16>
      %cst_65 = arith.constant dense<0.000000e+00> : vector<8x96xf32>
      %83 = tpu.matmul %82, %81, %cst_65 {dimension_numbers = #tpu.dot_dimension_numbers<[1], [0], [0], [1], [0, 0, 1, 1], [], []>} : vector<8x32xbf16>, vector<32x96xbf16>, vector<8x96xf32> -> vector<8x96xf32>
      %84 = vector.extract_strided_slice %80 {offsets = [0, 0], sizes = [8, 32], strides = [1, 1]} : vector<8x96xf32> to vector<8x32xf32>
      %85 = vector.extract_strided_slice %83 {offsets = [0, 0], sizes = [8, 32], strides = [1, 1]} : vector<8x96xf32> to vector<8x32xf32>
      %86 = arith.addf %84, %85 : vector<8x32xf32>
      %87 = arith.negf %86 : vector<8x32xf32>
      %88 = math.exp %87 : vector<8x32xf32>
      %cst_66 = arith.constant 1.000000e+00 : f32
      %89 = vector.broadcast %cst_66 : f32 to vector<8x32xf32>
      %90 = arith.addf %89, %88 : vector<8x32xf32>
      %91 = arith.divf %89, %90 : vector<8x32xf32>
      %92 = vector.extract_strided_slice %80 {offsets = [0, 32], sizes = [8, 32], strides = [1, 1]} : vector<8x96xf32> to vector<8x32xf32>
      %93 = vector.extract_strided_slice %83 {offsets = [0, 32], sizes = [8, 32], strides = [1, 1]} : vector<8x96xf32> to vector<8x32xf32>
      %94 = arith.addf %92, %93 : vector<8x32xf32>
      %95 = arith.negf %94 : vector<8x32xf32>
      %96 = math.exp %95 : vector<8x32xf32>
      %cst_67 = arith.constant 1.000000e+00 : f32
      %97 = vector.broadcast %cst_67 : f32 to vector<8x32xf32>
      %98 = arith.addf %97, %96 : vector<8x32xf32>
      %99 = arith.divf %97, %98 : vector<8x32xf32>
      %100 = vector.extract_strided_slice %80 {offsets = [0, 64], sizes = [8, 32], strides = [1, 1]} : vector<8x96xf32> to vector<8x32xf32>
      %101 = vector.extract_strided_slice %83 {offsets = [0, 64], sizes = [8, 32], strides = [1, 1]} : vector<8x96xf32> to vector<8x32xf32>
      %102 = arith.mulf %91, %101 : vector<8x32xf32>
      %103 = arith.addf %100, %102 : vector<8x32xf32>
      %104 = math.tanh %103 : vector<8x32xf32>
      %cst_68 = arith.constant 1.000000e+00 : f32
      %105 = vector.broadcast %cst_68 : f32 to vector<8x32xf32>
      %106 = arith.subf %105, %99 : vector<8x32xf32>
      %107 = arith.mulf %106, %104 : vector<8x32xf32>
      %108 = arith.mulf %99, %27 : vector<8x32xf32>
      %109 = arith.addf %107, %108 : vector<8x32xf32>
      %c0_69 = arith.constant 0 : index
      %c0_70 = arith.constant 0 : index
      %110 = vector.load %arg21[%c0_69, %c0_70] : memref<8x32xf32, #tpu.memory_space<vmem>>, vector<8x32xf32>
      tpu.vector_store %arg21[%c0_69, %c0_70], %109 {strides = array<i32>} : memref<8x32xf32, #tpu.memory_space<vmem>>, vector<8x32xf32>,
      %c0_71 = arith.constant 0 : index
      %c0_72 = arith.constant 0 : index
      %111 = vector.load %arg12[%c0_71, %c0_72] : memref<32x32xbf16, #tpu.memory_space<vmem>>, vector<32x32xbf16>
      %112 = arith.truncf %109 : vector<8x32xf32> to vector<8x32xbf16>
      %cst_73 = arith.constant dense<0.000000e+00> : vector<8x32xf32>
      %113 = tpu.matmul %112, %111, %cst_73 {dimension_numbers = #tpu.dot_dimension_numbers<[1], [0], [0], [1], [0, 0, 1, 1], [], []>} : vector<8x32xbf16>, vector<32x32xbf16>, vector<8x32xf32> -> vector<8x32xf32>
      %c0_74 = arith.constant 0 : index
      %c0_75 = arith.constant 0 : index
      %114 = vector.load %arg13[%c0_74, %c0_75] : memref<1x32xf32, #tpu.memory_space<vmem>>, vector<1x32xf32>
      %115 = vector.broadcast %114 : vector<1x32xf32> to vector<8x32xf32>
      %116 = arith.addf %113, %115 : vector<8x32xf32>
      %cst_76 = arith.constant 0.000000e+00 : f32
      %117 = vector.broadcast %cst_76 : f32 to vector<8x32xf32>
      %118 = arith.maximumf %116, %117 : vector<8x32xf32>
      %c0_77 = arith.constant 0 : index
      %c0_78 = arith.constant 0 : index
      %119 = vector.load %arg14[%c0_77, %c0_78] : memref<32x32xbf16, #tpu.memory_space<vmem>>, vector<32x32xbf16>
      %120 = arith.truncf %118 : vector<8x32xf32> to vector<8x32xbf16>
      %cst_79 = arith.constant dense<0.000000e+00> : vector<8x32xf32>
      %121 = tpu.matmul %120, %119, %cst_79 {dimension_numbers = #tpu.dot_dimension_numbers<[1], [0], [0], [1], [0, 0, 1, 1], [], []>} : vector<8x32xbf16>, vector<32x32xbf16>, vector<8x32xf32> -> vector<8x32xf32>
      %c0_80 = arith.constant 0 : index
      %c0_81 = arith.constant 0 : index
      %122 = vector.load %arg15[%c0_80, %c0_81] : memref<1x32xf32, #tpu.memory_space<vmem>>, vector<1x32xf32>
      %123 = vector.broadcast %122 : vector<1x32xf32> to vector<8x32xf32>
      %124 = arith.addf %121, %123 : vector<8x32xf32>
      %cst_82 = arith.constant 0.000000e+00 : f32
      %125 = vector.broadcast %cst_82 : f32 to vector<8x32xf32>
      %126 = arith.maximumf %124, %125 : vector<8x32xf32>
      %c0_83 = arith.constant 0 : index
      %c0_84 = arith.constant 0 : index
      %127 = vector.load %arg16[%c0_83, %c0_84] : memref<32x4xbf16, #tpu.memory_space<vmem>>, vector<32x4xbf16>
      %128 = arith.truncf %126 : vector<8x32xf32> to vector<8x32xbf16>
      %cst_85 = arith.constant dense<0.000000e+00> : vector<8x4xf32>
      %129 = tpu.matmul %128, %127, %cst_85 {dimension_numbers = #tpu.dot_dimension_numbers<[1], [0], [0], [1], [0, 0, 1, 1], [], []>} : vector<8x32xbf16>, vector<32x4xbf16>, vector<8x4xf32> -> vector<8x4xf32>
      %c0_86 = arith.constant 0 : index
      %c0_87 = arith.constant 0 : index
      %130 = vector.load %arg17[%c0_86, %c0_87] : memref<1x4xf32, #tpu.memory_space<vmem>>, vector<1x4xf32>
      %131 = vector.broadcast %130 : vector<1x4xf32> to vector<8x4xf32>
      %132 = arith.addf %129, %131 : vector<8x4xf32>
      %133 = arith.addf %26, %132 : vector<8x4xf32>
      %c0_88 = arith.constant 0 : index
      %c0_89 = arith.constant 0 : index
      %134 = vector.load %arg22[%c0_88, %c0_89] : memref<8x4xf32, #tpu.memory_space<vmem>>, vector<8x4xf32>
      tpu.vector_store %arg22[%c0_88, %c0_89], %133 {strides = array<i32>} : memref<8x4xf32, #tpu.memory_space<vmem>>, vector<8x4xf32>,
      %c0_90 = arith.constant 0 : index
      %c0_91 = arith.constant 0 : index
      %135 = vector.load %arg18[%c0_90, %c0_91] : memref<32x18xbf16, #tpu.memory_space<vmem>>, vector<32x18xbf16>
      %136 = arith.truncf %109 : vector<8x32xf32> to vector<8x32xbf16>
      %cst_92 = arith.constant dense<0.000000e+00> : vector<8x18xf32>
      %137 = tpu.matmul %136, %135, %cst_92 {dimension_numbers = #tpu.dot_dimension_numbers<[1], [0], [0], [1], [0, 0, 1, 1], [], []>} : vector<8x32xbf16>, vector<32x18xbf16>, vector<8x18xf32> -> vector<8x18xf32>
      %c0_93 = arith.constant 0 : index
      %c0_94 = arith.constant 0 : index
      %138 = vector.load %arg19[%c0_93, %c0_94] : memref<1x18xf32, #tpu.memory_space<vmem>>, vector<1x18xf32>
      %139 = vector.broadcast %138 : vector<1x18xf32> to vector<8x18xf32>
      %140 = arith.addf %137, %139 : vector<8x18xf32>
      %141 = vector.extract_strided_slice %140 {offsets = [0, 0], sizes = [8, 2], strides = [1, 1]} : vector<8x18xf32> to vector<8x2xf32>
      %cst_95 = arith.constant dense<0xFF800000> : vector<8xf32>
      %142 = vector.multi_reduction <maximumf>, %141, %cst_95 [1] : vector<8x2xf32> to vector<8xf32>
      %143 = vector.shape_cast %142 : vector<8xf32> to vector<8x1xf32>
      %144 = vector.broadcast %143 : vector<8x1xf32> to vector<8x2xf32>
      %145 = arith.subf %141, %144 : vector<8x2xf32>
      %146 = math.exp %145 : vector<8x2xf32>
      %cst_96 = arith.constant dense<0.000000e+00> : vector<8xf32>
      %147 = vector.multi_reduction <add>, %146, %cst_96 [1] : vector<8x2xf32> to vector<8xf32>
      %148 = vector.shape_cast %147 : vector<8xf32> to vector<8x1xf32>
      %149 = tpu.reciprocal %148 {approx = true} : vector<8x1xf32> -> vector<8x1xf32>
      %150 = vector.broadcast %149 : vector<8x1xf32> to vector<8x2xf32>
      %151 = arith.mulf %146, %150 : vector<8x2xf32>
      %152 = tpu.concatenate %26, %26 in 1 : vector<8x4xf32>, vector<8x4xf32> -> vector<8x8xf32>
      %153 = vector.extract_strided_slice %140 {offsets = [0, 2], sizes = [8, 8], strides = [1, 1]} : vector<8x18xf32> to vector<8x8xf32>
      %154 = arith.addf %152, %153 : vector<8x8xf32>
      %155 = vector.extract_strided_slice %140 {offsets = [0, 10], sizes = [8, 8], strides = [1, 1]} : vector<8x18xf32> to vector<8x8xf32>
      %cst_97 = arith.constant 0.000000e+00 : f32
      %156 = vector.broadcast %cst_97 : f32 to vector<8x8xf32>
      %157 = arith.maximumf %155, %156 : vector<8x8xf32>
      %158 = math.absf %155 : vector<8x8xf32>
      %cst_98 = arith.constant 0.000000e+00 : f32
      %159 = vector.broadcast %cst_98 : f32 to vector<8x8xf32>
      %160 = arith.subf %159, %158 : vector<8x8xf32>
      %161 = math.exp %160 : vector<8x8xf32>
      %cst_99 = arith.constant 1.000000e+00 : f32
      %162 = vector.broadcast %cst_99 : f32 to vector<8x8xf32>
      %163 = arith.addf %162, %161 : vector<8x8xf32>
      %164 = math.log %163 : vector<8x8xf32>
      %165 = arith.addf %157, %164 : vector<8x8xf32>
      %cst_100 = arith.constant 1.000000e-03 : f32
      %166 = vector.broadcast %cst_100 : f32 to vector<8x8xf32>
      %167 = arith.addf %165, %166 : vector<8x8xf32>
      %168 = tpu.concatenate %133, %151, %154, %167, %13 in 1 : vector<8x4xf32>, vector<8x2xf32>, vector<8x8xf32>, vector<8x8xf32>, vector<8x106xf32> -> vector<8x128xf32>
      %c0_i32_101 = arith.constant 0 : i32
      %c0_i32_102 = arith.constant 0 : i32
      %c0_i32_103 = arith.constant 0 : i32
      %169 = tpu.memref_slice %arg20[%c0_i32_21, %c0_i32_101, %c0_i32_102, %c0_i32_103] : memref<1x12x8x128xf32, #tpu.memory_space<vmem>> -> memref<1x12x8x128xf32, #tpu.memory_space<vmem>>
      %170 = tpu.memref_squeeze %169 : memref<1x12x8x128xf32, #tpu.memory_space<vmem>> -> memref<12x8x128xf32, #tpu.memory_space<vmem>>
      %171 = arith.index_cast %17 : i32 to index
      %c0_104 = arith.constant 0 : index
      %c0_105 = arith.constant 0 : index
      %172 = vector.load %170[%171, %c0_104, %c0_105] : memref<12x8x128xf32, #tpu.memory_space<vmem>>, vector<1x8x128xf32>
      %173 = vector.shape_cast %172 : vector<1x8x128xf32> to vector<8x128xf32>
      %174 = vector.shape_cast %168 : vector<8x128xf32> to vector<1x8x128xf32>
      tpu.vector_store %170[%171, %c0_104, %c0_105], %174 {strides = array<i32>} : memref<12x8x128xf32, #tpu.memory_space<vmem>>, vector<1x8x128xf32>,
    }
    %c12_i32_23 = arith.constant 12 : i32
    return
  }
  func.func @transform_0(%arg0: i32) -> (i32, i32, i32, i32) {
    %c0_i32 = arith.constant 0 : i32
    %c0_i32_0 = arith.constant 0 : i32
    %c0_i32_1 = arith.constant 0 : i32
    %c0_i32_2 = arith.constant 0 : i32
    return %arg0, %c0_i32, %c0_i32_0, %c0_i32_1 : i32, i32, i32, i32
  }
  func.func @transform_1(%arg0: i32) -> (i32, i32, i32) {
    %c0_i32 = arith.constant 0 : i32
    %c0_i32_0 = arith.constant 0 : i32
    %c0_i32_1 = arith.constant 0 : i32
    return %arg0, %c0_i32, %c0_i32_0 : i32, i32, i32
  }
  func.func @transform_2(%arg0: i32) -> (i32, i32, i32) {
    %c0_i32 = arith.constant 0 : i32
    %c0_i32_0 = arith.constant 0 : i32
    %c0_i32_1 = arith.constant 0 : i32
    return %arg0, %c0_i32, %c0_i32_0 : i32, i32, i32
  }
  func.func @transform_3(%arg0: i32) -> (i32, i32, i32) {
    %c0_i32 = arith.constant 0 : i32
    %c0_i32_0 = arith.constant 0 : i32
    %c0_i32_1 = arith.constant 0 : i32
    return %arg0, %c0_i32, %c0_i32_0 : i32, i32, i32
  }
  func.func @transform_4(%arg0: i32) -> (i32, i32, i32) {
    %c0_i32 = arith.constant 0 : i32
    %c0_i32_0 = arith.constant 0 : i32
    %c0_i32_1 = arith.constant 0 : i32
    %c0_i32_2 = arith.constant 0 : i32
    return %c0_i32, %c0_i32_0, %c0_i32_1 : i32, i32, i32
  }
  func.func @transform_5(%arg0: i32) -> (i32, i32, i32) {
    %c0_i32 = arith.constant 0 : i32
    %c0_i32_0 = arith.constant 0 : i32
    %c0_i32_1 = arith.constant 0 : i32
    %c0_i32_2 = arith.constant 0 : i32
    return %c0_i32, %c0_i32_0, %c0_i32_1 : i32, i32, i32
  }
  func.func @transform_6(%arg0: i32) -> (i32, i32) {
    %c0_i32 = arith.constant 0 : i32
    %c0_i32_0 = arith.constant 0 : i32
    %c0_i32_1 = arith.constant 0 : i32
    return %c0_i32, %c0_i32_0 : i32, i32
  }
  func.func @transform_7(%arg0: i32) -> (i32, i32) {
    %c0_i32 = arith.constant 0 : i32
    %c0_i32_0 = arith.constant 0 : i32
    %c0_i32_1 = arith.constant 0 : i32
    return %c0_i32, %c0_i32_0 : i32, i32
  }
  func.func @transform_8(%arg0: i32) -> (i32, i32) {
    %c0_i32 = arith.constant 0 : i32
    %c0_i32_0 = arith.constant 0 : i32
    %c0_i32_1 = arith.constant 0 : i32
    return %c0_i32, %c0_i32_0 : i32, i32
  }
  func.func @transform_9(%arg0: i32) -> (i32, i32) {
    %c0_i32 = arith.constant 0 : i32
    %c0_i32_0 = arith.constant 0 : i32
    %c0_i32_1 = arith.constant 0 : i32
    return %c0_i32, %c0_i32_0 : i32, i32
  }
  func.func @transform_10(%arg0: i32) -> (i32, i32) {
    %c0_i32 = arith.constant 0 : i32
    %c0_i32_0 = arith.constant 0 : i32
    %c0_i32_1 = arith.constant 0 : i32
    return %c0_i32, %c0_i32_0 : i32, i32
  }
  func.func @transform_11(%arg0: i32) -> (i32, i32) {
    %c0_i32 = arith.constant 0 : i32
    %c0_i32_0 = arith.constant 0 : i32
    %c0_i32_1 = arith.constant 0 : i32
    return %c0_i32, %c0_i32_0 : i32, i32
  }
  func.func @transform_12(%arg0: i32) -> (i32, i32) {
    %c0_i32 = arith.constant 0 : i32
    %c0_i32_0 = arith.constant 0 : i32
    %c0_i32_1 = arith.constant 0 : i32
    return %c0_i32, %c0_i32_0 : i32, i32
  }
  func.func @transform_13(%arg0: i32) -> (i32, i32) {
    %c0_i32 = arith.constant 0 : i32
    %c0_i32_0 = arith.constant 0 : i32
    %c0_i32_1 = arith.constant 0 : i32
    return %c0_i32, %c0_i32_0 : i32, i32
  }
  func.func @transform_14(%arg0: i32) -> (i32, i32) {
    %c0_i32 = arith.constant 0 : i32
    %c0_i32_0 = arith.constant 0 : i32
    %c0_i32_1 = arith.constant 0 : i32
    return %c0_i32, %c0_i32_0 : i32, i32
  }
  func.func @transform_15(%arg0: i32) -> (i32, i32) {
    %c0_i32 = arith.constant 0 : i32
    %c0_i32_0 = arith.constant 0 : i32
    %c0_i32_1 = arith.constant 0 : i32
    return %c0_i32, %c0_i32_0 : i32, i32
  }
  func.func @transform_16(%arg0: i32) -> (i32, i32) {
    %c0_i32 = arith.constant 0 : i32
    %c0_i32_0 = arith.constant 0 : i32
    %c0_i32_1 = arith.constant 0 : i32
    return %c0_i32, %c0_i32_0 : i32, i32
  }
  func.func @transform_17(%arg0: i32) -> (i32, i32) {
    %c0_i32 = arith.constant 0 : i32
    %c0_i32_0 = arith.constant 0 : i32
    %c0_i32_1 = arith.constant 0 : i32
    return %c0_i32, %c0_i32_0 : i32, i32
  }
  func.func @transform_18(%arg0: i32) -> (i32, i32) {
    %c0_i32 = arith.constant 0 : i32
    %c0_i32_0 = arith.constant 0 : i32
    %c0_i32_1 = arith.constant 0 : i32
    return %c0_i32, %c0_i32_0 : i32, i32
  }
  func.func @transform_19(%arg0: i32) -> (i32, i32, i32, i32) {
    %c0_i32 = arith.constant 0 : i32
    %c0_i32_0 = arith.constant 0 : i32
    %c0_i32_1 = arith.constant 0 : i32
    %c0_i32_2 = arith.constant 0 : i32
    return %arg0, %c0_i32, %c0_i32_0, %c0_i32_1 : i32, i32, i32, i32
  }
}

</mosaic_0001>

<bundles_post_ra>
// kernel: hgnn_forward.5
= control target key start
LH: loop header
LB: loop body
LE: loop exit
PB: predicated region body
PF: predicated region fallthrough
CT: control target
= control target key end

     0   :  { %s2366_s0 = inlined_call_operand.vmem [shape: f32[2,8,8,4], index: 0, kind: input, shape index: {}]   ;;  %s2367_s1 = inlined_call_operand.vmem [shape: f32[2,12,8], index: 1, kind: input, shape index: {}]   ;;  %s2368_s2 = inlined_call_operand.vmem [shape: f32[2,12,8], index: 2, kind: input, shape index: {}]   ;;  %s2369_s3 = inlined_call_operand.vmem [shape: f32[2,12,2], index: 3, kind: input, shape index: {}]   ;;  %s2370_s4 = inlined_call_operand.vmem [shape: bf16[2,64,16], index: 4, kind: input, shape index: {}]   ;;  %s2371_s5 = inlined_call_operand.vmem [shape: f32[2,1,16], index: 5, kind: input, shape index: {}]   ;;  %s2372_s6 = inlined_call_operand.vmem [shape: bf16[4,16], index: 6, kind: input, shape index: {}]   ;;  %s2373_s7 = inlined_call_operand.vmem [shape: f32[1,16], index: 7, kind: input, shape index: {}]   ;;  %s2374_s8 = inlined_call_operand.vmem [shape: bf16[32,96], index: 8, kind: input, shape index: {}]   ;;  %s2375_s9 = inlined_call_operand.vmem [shape: f32[1,96], index: 9, kind: input, shape index: {}]   ;;  %s2376_s10 = inlined_call_operand.vmem [shape: bf16[32,96], index: 10, kind: input, shape index: {}]   ;;  %s2377_s11 = inlined_call_operand.vmem [shape: bf16[32,32], index: 11, kind: input, shape index: {}]   ;;  %s2378_s12 = inlined_call_operand.vmem [shape: f32[1,32], index: 12, kind: input, shape index: {}]   ;;  %s2379_s13 = inlined_call_operand.vmem [shape: bf16[32,32], index: 13, kind: input, shape index: {}]   ;;  %s2380_s14 = inlined_call_operand.vmem [shape: f32[1,32], index: 14, kind: input, shape index: {}]   ;;  %s2381_s15 = inlined_call_operand.vmem [shape: bf16[32,4], index: 15, kind: input, shape index: {}]   ;;  %s2382_s16 = inlined_call_operand.vmem [shape: f32[1,4], index: 16, kind: input, shape index: {}]   ;;  %s2383_s17 = inlined_call_operand.vmem [shape: bf16[32,18], index: 17, kind: input, shape index: {}]   ;;  %s2384_s18 = inlined_call_operand.vmem [shape: f32[1,18], index: 18, kind: input, shape index: {}]   ;;  %s2385_s19 = inlined_call_operand.vmem [shape: f32[2,12,8,128], index: 19, kind: output, shape index: {}]  }
   0x1   :  { %2388 = sst [smem:[#allocation5_spill]] %s2366_s0  ;;  %s2122_s0 = smov 0  }
   0x2   :  { %2389 = sst [smem:[#allocation6_spill]] %s2367_s1 }
   0x3   :  { %2390 = sst [smem:[#allocation7_spill]] %s2368_s2 }
   0x4   :  { %2391 = sst [smem:[#allocation8_spill]] %s2369_s3 }
   0x5   :  { %2392 = sst [smem:[#allocation9_spill]] %s2380_s14 }
   0x6   :  { %2393 = sst [smem:[#allocation10_spill]] %s2381_s15 }
   0x7   :  { %2394 = sst [smem:[#allocation11_spill]] %s2382_s16 }
   0x8   :  { %2395 = sst [smem:[#allocation12_spill]] %s2384_s18 }
   0x9 LB: > { %2396 = sst [smem:[#allocation4_spill]] %s2004_s0  ;;  %s1710_s30 = sadd.s32 4294967295, %s2004_s0   ;;  %s2004_s0 = sphi %s2122_s0, %s29_s0  }
   0xa   : > { %p1714_p0 = scmp.ge.s32.totalorder %s2004_s0, 1  ;;  %p567_p1 = scmp.lt.s32.totalorder %s2004_s0, 3 }
   0xc   : > { %p568_p2 = pnand %p1714_p0, %p567_p1 }
   0xd   : > { %vm670_vm0 = vcmask (!%p568_p2), 261120   ;;  %p638_p3 = scmp.lt.s32.totalorder (!%p568_p2), %s1710_s30, 1  ;;  %v2010_v0 = vmov (!%p568_p2), 0.0   ;;  %vm673_vm1 = vcmask (!%p568_p2), 31744   ;;  %s2397_s2 = sld [smem:[#allocation5_spill]] (!%p568_p2) }
   0xe   : > { %571 = sbr.rel (%p568_p2) target bundleno = 2429 (0x97d), region = 96  ;;  %671 = vst.msk [vmem:[#allocation2] sm:$0xff] (!%p568_p2), %vm670_vm0, %v2010_v0  ;;  %s2398_s3 = sld [smem:[#allocation6_spill]] (!%p568_p2) }
   0xf   : > { %s2399_s29 = sld [smem:[#allocation7_spill]] (!%p568_p2)  ;;  %s2400_s14 = sld [smem:[#allocation8_spill]] (!%p568_p2) }
  0x10   : > { %s2164_s16 = smov (!%p568_p2), 0  }
  0x15   : > { %s2407_s30 = smov (!%p638_p3, %s1710_s30), 1 }
  0x16   : > { %s1778_s20 = sshll.u32 %s2407_s30, 6  ;;  %s1779_s21 = sshll.u32 %s2407_s30, 4 }
  0x17   : > { %s2134_s23 = scalar_lea.vmem %s2397_s2, %s1778_s20  ;;  %s647_s26 = scalar_lea.vmem %s2398_s3, %s1779_s21 }
  0x18   : > { %s652_s0 = scalar_lea.vmem %s2399_s29, %s1779_s21  ;;  %s657_s15 = scalar_lea.vmem %s2400_s14, %s1779_s21  ;;  %v2145_v1 = vld [vmem:[%s647_s26] sm:$0xff]  ;;  %v2147_v2 = vld [vmem:[%s647_s26 + $0x8] sm:$0xf] }
  0x19   : > { %v672_v3 = vld [vmem:[%s2134_s23] sm:$0xff]  ;;  %s1914_s20 = smul.u32 96, %s2407_s30  ;;  %v2152_v5 = vld [vmem:[%s652_s0 + $0x8] sm:$0xf] }
  0x1a   : > { %v2150_v4 = vld [vmem:[%s652_s0] sm:$0xff]  ;;  %674 = vst.msk [vmem:[#allocation3] sm:$0xff] %vm673_vm1, %v672_v3  ;;  %v2157_v7 = vld [vmem:[%s657_s15 + $0x8] sm:$0xf] }
  0x1b   : > { %v2154_v6 = vld [vmem:[%s657_s15] sm:$0xff]  ;;  %s2162_s14 = scalar_lea.vmem %s2385_s19, %s1914_s20 }
  0x1c LB: >> { %v2169_v8 = vld [vmem:[#allocation2] sm:$0xff]  ;;  %vm699_vm2 = vcmask 1043456   ;;  %v2011_v9 = vmov 0.0   ;;  %vm2012_vm3 = vmmov 0   ;;  %vm695_vm4 = vcmask 64512   ;;  %v1954_v16 = vld [vmem:[%s2370_s4 + $0x8] sm:$0xff]   ;;  %s2008_s16 = sphi %s2164_s16, %s680_s16  }
  0x1d   : >> { %1824 = vmatprep.subr.bf16.mxu1 %v2011_v9  ;;  %v2174_v10 = vpack.c.bf16 %v2169_v8, %v2169_v8  ;;  %1826 = vmatprep.mubr.msk.bf16.mxu1 %vm2012_vm3, %v2011_v9  ;;  %v744_v12 = vpack.c.bf16 %v2152_v5, %v2150_v4  ;;  %v693_v13 = vpack.c.bf16 %v2147_v2, %v2145_v1  ;;  %v1952_v14 = vld [vmem:[%s2370_s4] sm:$0xff]   ;;  %v1955_v17 = vld [vmem:[%s2370_s4 + $0x28] sm:$0xff]   ;;  %v1956_v18 = vld [vmem:[%s2370_s4 + $0x10] sm:$0xff]   ;;  %v2013_v22 = vmov 0   ;;  %s2015_s15 = smov 32   ;;  %p681_p4 = scmp.lt.s32.totalorder %s2008_s16, 7 }
  0x1e   : >> { %1818 = vmatprep.subr.bf16.mxu0 %v2011_v9  ;;  %1820 = vmatprep.mubr.msk.bf16.mxu0 %vm2012_vm3, %v2011_v9  ;;  %v1953_v15 = vld [vmem:[%s2370_s4 + $0x20] sm:$0xff]   ;;  %v1957_v19 = vld [vmem:[%s2370_s4 + $0x30] sm:$0xff]   ;;  %v1958_v20 = vld [vmem:[%s2370_s4 + $0x18] sm:$0xff]   ;;  %v2014_v32 = vmov 1   ;;  %vm839_vm5 = vcmask 523264   ;;  %vm1074_vm6 = vcmask 1041408  }
  0x1f   : >> { %v701_v11 = vsel %vm699_vm2, %v2174_v10, 0  ;;  %v1959_v21 = vld [vmem:[%s2370_s4 + $0x38] sm:$0xff]   ;;  %1949 = vset.pattern.permute.xlu1 %v2013_v22  ;;  %1948 = vset.pattern.permute.xlu0 %v2013_v22  ;;  %v1062_v39 = vld [vmem:[%s2372_s6] sm:$0x3]  ;;  %p686_p5 = scmp.lt.s32.totalorder %s2008_s16, 4  ;;  %vm1017_vm8 = vcmask 1045504  }
  0x20   : >> { %1825 = vmatpush3.bf16.msra.mxu1 %v701_v11  ;;  %1819 = vmatpush3.bf16.msra.mxu0 %v701_v11  ;;  %v1076_v40 = vsel %vm1074_vm6, %v1062_v39, 0  ;;  %s682_s30 = scalar_select %p681_p4, %s2008_s16, 7  ;;  %v1727_v46 = vld [vmem:[%s2371_s5] ss:$0 sm:$0xff]  ;;  %v1742_v47 = vld [vmem:[%s2371_s5 + $0x1] ss:$0 sm:$0xff] }
  0x21   : >> { %1830 = vmatprep.subr.bf16.mxu0 %v2011_v9  ;;  %1842 = vmatprep.subr.bf16.mxu1 %v2011_v9  ;;  %s688_s21 = scalar_select %p686_p5, 1, 0  ;;  %v687_v41 = vld [vmem:[#allocation3] sm:$0xff]  ;;  %vm1013_vm9 = vcmask 97280   ;;  %v1960_v22 = vld [vmem:[%s2376_s10] sm:$0xff]   ;;  %vm1123_vm10 = vcmask 130048  }
  0x22   : >> { %893 = vperm.xlu1 %1949, %v2157_v7   ;;  %s1724_s2 = sshll.u32 %s682_s30, 3  ;;  %s2018_s1 = smov 96   ;;  %vm1556_vm11 = vcmask 15360   ;;  %vm1601_vm12 = vcmask 48128   ;;  %vm1603_vm13 = vcmask 113664   ;;  %vm1605_vm14 = vcmask 179200  }
  0x23   : >> { %1827 = vmatmul.mubr.msk.bf16.vlgmr.msra.gmra.mrb[0].mxu1 %vm695_vm4, %v744_v12  ;;  %1821 = vmatmul.mubr.msk.bf16.vlgmr.msra.gmra.mrb[0].mxu0 %vm695_vm4, %v693_v13  ;;  %s684_s24 = scalar_lea.vmem %s2134_s23, %s1724_s2  ;;  %v689_v42 = vstv %s688_s21  ;;  %s2016_s21 = smov 16  }
  0x24   : >> { %1838 = vmatprep.mubr.msk.bf16.mxu0 %vm2012_vm3, %v2011_v9  ;;  %1850 = vmatprep.mubr.msk.bf16.mxu1 %vm2012_vm3, %v2011_v9  ;;  %v685_v43 = vld [vmem:[%s684_s24] sm:$0xff]  ;;  %vm690_vm7 = vcmp.eq.s32.totalorder %v689_v42, 1  ;;  %s2017_s2 = smov 64   ;;  %s2401_s28 = sld [smem:[#allocation10_spill]] }
  0x25   : >> { %1831 = vmatpush3.bf16.msra.mxu0 %v1952_v14  ;;  %1843 = vmatpush3.bf16.msra.mxu1 %v1953_v15  ;;  %v2243_v44 = vsel %vm690_vm7, %v685_v43, %v687_v41  ;;  %s2402_s18 = sld [smem:[#allocation9_spill]]  ;;  %s2020_s24 = smov 4  }
  0x26   : >> { %1832 = vmatprep.subr.bf16.mxu0 %v2011_v9  ;;  %1844 = vmatprep.subr.bf16.mxu1 %v2011_v9  ;;  %v1063_v45 = vpack.c.bf16 %v2243_v44, %v2243_v44  ;;  %s2404_s26 = sld [smem:[#allocation11_spill]]  ;;  %s2021_s27 = smov 6  }
  0x27   : >> { %1950 = vset.pattern.permute.xlu1 %v2014_v32  ;;  %s1775_s29 = sshll.u32 %s2008_s16, 3  ;;  %s680_s16 = sadd.s32 1, %s2008_s16  }
  0x28   : >> { %985 = vperm.xlu1 %1950, %v2154_v6   ;;  %s1608_s20 = scalar_lea.vmem %s2162_s14, %s1775_s29  ;;  %p677_p6 = scmp.ge.s32.totalorder %s680_s16, 12  }
  0x29   : >> { %1833 = vmatpush3.bf16.msra.mxu0 %v1954_v16  ;;  %1845 = vmatpush3.bf16.msra.mxu1 %v1955_v17 }
  0x2a   : >> { %1834 = vmatprep.subr.bf16.mxu0 %v2011_v9  ;;  %1846 = vmatprep.subr.bf16.mxu1 %v2011_v9 }
  0x2c   : >> { %989 = vperm.xlu1 %1950, %v2157_v7  }
  0x2d   : >> { %1835 = vmatpush3.bf16.msra.mxu0 %v1956_v18  ;;  %1847 = vmatpush3.bf16.msra.mxu1 %v1957_v19 }
  0x2e   : >> { %1836 = vmatprep.subr.bf16.mxu0 %v2011_v9  ;;  %1848 = vmatprep.subr.bf16.mxu1 %v2011_v9 }
  0x31   : >> { %1837 = vmatpush3.bf16.msra.mxu0 %v1958_v20  ;;  %1849 = vmatpush3.bf16.msra.mxu1 %v1959_v21 }
  0x32   : >> { %1854 = vmatprep.subr.bf16.mxu0 %v2011_v9  ;;  %1860 = vmatprep.subr.bf16.mxu1 %v2011_v9 }
  0xa1   : >> { %v894_v60 = vpop.permute.xlu1 %893 }
  0xa7   : >> { %v986_v61 = vpop.permute.xlu1 %985 }
  0xab   : >> { %v990_v15 = vpop.permute.xlu1 %989 }
  0xf6   : >> { %v782_v23 = vpop.f32.mrb[0].mxu1  ;;  %v737_v24 = vpop.f32.mrb[0].mxu0 }
  0xf7   : >> { %v1828_v25 = vpop.f32.mrb[1].mxu1  ;;  %v1822_v26 = vpop.f32.mrb[1].mxu0 }
  0xf8   : >> { %v785_v27 = vpop.f32.mrb[2].mxu1  ;;  %v740_v28 = vpop.f32.mrb[2].mxu0 }
  0xf9   : >> { %v1943_v29 = vpack.i.bf16 %v785_v27, %v782_v23  ;;  %v1829_v30 = vpop.f32.mrb[3].mxu1  ;;  %v1823_v31 = vpop.f32.mrb[3].mxu0  ;;  %v1962_v23 = vld [vmem:[%s2374_s8] sm:$0xff]  }
  0xfb   : >> { %1944 = vrot.lane.b32.xlu0 %v1943_v29, %s2015_s15  ;;  %v1963_v29 = vld [vmem:[%s2374_s8 + $0x8] sm:$0xff]  }
  0xff   : >> { %888 = vperm.xlu0 %1948, %v2154_v6  }
 0x11d   : >> { %997 = vxpose.xlu0.c.b16.start.end [1/1] (short) (narrow) %v693_v13, 16 }
 0x126   : >> { %1951 = vset.pattern.permute.xlu0 %v2014_v32 }
 0x16d   : >> { %v1945_v33 = vpop.permute.xlu0 %1944 }
 0x16e   : >> { %v1947_v34 = vunpack.i.h.bf16 %v1945_v33  ;;  %v1946_v35 = vunpack.i.l.bf16 %v1945_v33 }
 0x170   : >> { %v797_v36 = vsel %vm670_vm0, %v737_v24, %v1946_v35  ;;  %v798_v37 = vsel %vm670_vm0, %v740_v28, %v1947_v34  ;;  %v1961_v24 = vld [vmem:[%s2376_s10 + $0x8] sm:$0xff]  }
 0x171   : >> { %v807_v38 = vpack.c.bf16 %v798_v37, %v797_v36 }
 0x173   : >> { %1839 = vmatmul.mubr.msk.bf16.vlgmr.msra.gmra.mrb[4].mxu0 %vm839_vm5, %v807_v38  ;;  %1851 = vmatmul.mubr.msk.bf16.vlgmr.msra.gmra.mrb[4].mxu1 %vm839_vm5, %v807_v38  ;;  %v1749_v38 = vld [vmem:[%s2373_s7] ss:$0 sm:$0xff] }
 0x174   : >> { %1856 = vmatprep.mubr.msk.bf16.mxu0 %vm2012_vm3, %v2011_v9  ;;  %1862 = vmatprep.mubr.msk.bf16.mxu1 %vm2012_vm3, %v2011_v9 }
 0x175   : >> { %1861 = vmatpush3.bf16.msra.mxu1 %v1076_v40 }
 0x176   : >> { %1874 = vmatprep.subr.bf16.mxu1 %v2011_v9 }
 0x17b   : >> { %1863 = vmatmul.mubr.msk.bf16.vlgmr.msra.gmra.mrb[8].mxu1 %vm673_vm1, %v1063_v45  ;;  %v1751_v45 = vld [vmem:[%s2375_s9] ss:$0 sm:$0xff] }
 0x17c   : >> { %1878 = vmatprep.mubr.msk.bf16.mxu1 %vm2012_vm3, %v2011_v9  ;;  %1875 = vmatpush3.bf16.msra.mxu1 %v1960_v22 }
 0x17d   : >> { %1876 = vmatprep.subr.bf16.mxu1 %v2011_v9 }
 0x17e   : >> { %v889_v62 = vpop.permute.xlu0 %888 }
 0x180   : >> { %1877 = vmatpush3.bf16.msra.mxu1 %v1961_v24  ;;  %v1968_v24 = vld [vmem:[%s2383_s17] sm:$0xff]  }
 0x181   : >> { %1890 = vmatprep.subr.bf16.mxu1 %v2011_v9 }
 0x183   : >> { %v1005_v21 = vpop.trf.xlu0  ;;  %1879 = vmatmul.mubr.msk.bf16.vlgmr.msra.gmra.mrb[12].mxu1 %vm670_vm0, %v2174_v10 }
 0x184   : >> { %1894 = vmatprep.mubr.msk.bf16.mxu1 %vm2012_vm3, %v2011_v9 }
 0x246   : >> { %v877_v48 = vpop.f32.mrb[4].mxu0  ;;  %v975_v49 = vpop.f32.mrb[4].mxu1 }
 0x247   : >> { %v878_v50 = vadd.f32 %v1727_v46, %v877_v48  ;;  %v976_v51 = vadd.f32 %v1742_v47, %v975_v49  ;;  %v1840_v52 = vpop.f32.mrb[5].mxu0  ;;  %v1852_v53 = vpop.f32.mrb[5].mxu1 }
 0x248   : >> { %v880_v54 = vpop.f32.mrb[6].mxu0  ;;  %v978_v55 = vpop.f32.mrb[6].mxu1 }
 0x249   : >> { %1972 = vtanh.f32 %v878_v50  ;;  %v881_v56 = vadd.f32 %v1727_v46, %v880_v54  ;;  %v979_v57 = vadd.f32 %v1742_v47, %v978_v55  ;;  %v1841_v58 = vpop.f32.mrb[7].mxu0  ;;  %v1853_v59 = vpop.f32.mrb[7].mxu1 }
 0x24a   : >> { %1974 = vtanh.f32 %v976_v51 }
 0x24b   : >> { %1976 = vtanh.f32 %v881_v56 }
 0x24c   : >> { %1978 = vtanh.f32 %v979_v57 }
 0x24e   : >> { %v1112_v25 = vpop.f32.mrb[8].mxu1 }
 0x24f   : >> { %v1864_v26 = vpop.f32.mrb[9].mxu1  ;;  %v1113_v39 = vadd.f32 %v1749_v38, %v1112_v25 }
 0x250   : >> { %v1115_v27 = vpop.f32.mrb[10].mxu1  ;;  %v1969_v26 = vld [vmem:[%s2383_s17 + $0x8] sm:$0xff]  }
 0x251   : >> { %v1865_v28 = vpop.f32.mrb[11].mxu1  ;;  %v1118_v40 = vmax.f32 %v1113_v39, 0.0  ;;  %v1970_v27 = vld [vmem:[%s2401_s28] sm:$0xff]  }
 0x252   : >> { %v1971_v28 = vld [vmem:[%s2401_s28 + $0x8] sm:$0xff]  }
 0x253   : >> { %v1973_v63 = vpop.eup %1972 }
 0x254   : >> { %v1975_v0 = vpop.eup %1974  ;;  %v896_v3 = vmul.f32 %v1973_v63, %v889_v62  ;;  %v1965_v62 = vld [vmem:[%s2377_s11 + $0x8] sm:$0xff]  }
 0x255   : >> { %v1977_v11 = vpop.eup %1976  ;;  %v992_v12 = vmul.f32 %v1975_v0, %v986_v61 }
 0x256   : >> { %v1979_v13 = vpop.eup %1978  ;;  %v897_v14 = vmul.f32 %v1977_v11, %v894_v60  ;;  %v1244_v34 = vpop.f32.mrb[12].mxu1  ;;  %v1964_v60 = vld [vmem:[%s2377_s11] sm:$0xff]  }
 0x257   : >> { %v993_v16 = vmul.f32 %v1979_v13, %v990_v15  ;;  %v994_v17 = vadd.f32 %v992_v12, %v896_v3  ;;  %v1880_v35 = vpop.f32.mrb[13].mxu1 }
 0x258   : >> { %v1247_v36 = vpop.f32.mrb[14].mxu1 }
 0x259   : >> { %v995_v18 = vadd.f32 %v993_v16, %v897_v14  ;;  %v1881_v37 = vpop.f32.mrb[15].mxu1  ;;  %v1967_v16 = vld [vmem:[%s2379_s13 + $0x8] sm:$0xff]  }
 0x25b   : >> { %v996_v19 = vpack.c.bf16 %v995_v18, %v994_v17  ;;  %v1759_v17 = vld [vmem:[%s2378_s12] ss:$0 sm:$0xff] }
 0x25d   : >> { %v1019_v20 = vsel %vm1017_vm8, %v996_v19, 0 }
 0x25e   : >> { %1855 = vmatpush3.bf16.msra.mxu0 %v1019_v20 }
 0x25f   : >> { %1866 = vmatprep.subr.bf16.mxu0 %v2011_v9 }
 0x261   : >> { %1857 = vmatmul.mubr.msk.bf16.vlgmr.msra.gmra.mrb[8].mxu0 %vm1013_vm9, %v1005_v21 }
 0x262   : >> { %1870 = vmatprep.mubr.msk.bf16.mxu0 %vm2012_vm3, %v2011_v9  ;;  %1867 = vmatpush3.bf16.msra.mxu0 %v1962_v23 }
 0x263   : >> { %1868 = vmatprep.subr.bf16.mxu0 %v2011_v9 }
 0x266   : >> { %1869 = vmatpush3.bf16.msra.mxu0 %v1963_v29  ;;  %v1763_v29 = vld [vmem:[%s2402_s18] ss:$0 sm:$0xff] }
 0x267   : >> { %1882 = vmatprep.subr.bf16.mxu0 %v2011_v9 }
 0x334   : >> { %v1055_v30 = vpop.f32.mrb[8].mxu0 }
 0x335   : >> { %v1061_v31 = vmul.f32 0.25, %v1055_v30  ;;  %v1858_v32 = vpop.f32.mrb[9].mxu0 }
 0x336   : >> { %v1058_v33 = vpop.f32.mrb[10].mxu0 }
 0x337   : >> { %1120 = vrot.lane.b32.xlu1 %v1061_v31, %s2016_s21  ;;  %v1859_v10 = vpop.f32.mrb[11].mxu0  ;;  %s2403_s21 = sld [smem:[#allocation12_spill]] }
 0x33b   : >> { %1258 = vrot.lane.b32.xlu1 %v1244_v34, %s2017_s2 }
 0x3a9   : >> { %v1121_v41 = vpop.permute.xlu1 %1120 }
 0x3aa   : >> { %v1124_v42 = vsel %vm1123_vm10, %v1118_v40, %v1121_v41 }
 0x3ab   : >> { %v1129_v43 = vpack.c.bf16 %v1124_v42, %v1124_v42 }
 0x3ad   : >> { %1871 = vmatmul.mubr.msk.bf16.vlgmr.msra.gmra.mrb[12].mxu0 %vm670_vm0, %v1129_v43  ;;  %v1259_v55 = vpop.permute.xlu1 %1258 }
 0x3ae   : >> { %1886 = vmatprep.mubr.msk.bf16.mxu0 %vm2012_vm3, %v2011_v9  ;;  %1883 = vmatpush3.bf16.msra.mxu0 %v1964_v60 }
 0x3af   : >> { %1884 = vmatprep.subr.bf16.mxu0 %v2011_v9 }
 0x3b2   : >> { %1885 = vmatpush3.bf16.msra.mxu0 %v1965_v62 }
 0x3b3   : >> { %1898 = vmatprep.subr.bf16.mxu0 %v2011_v9 }
 0x480   : >> { %v1186_v46 = vpop.f32.mrb[12].mxu0 }
 0x481   : >> { %v1187_v47 = vadd.f32 %v1751_v45, %v1186_v46  ;;  %v1872_v48 = vpop.f32.mrb[13].mxu0 }
 0x482   : >> { %v1189_v49 = vpop.f32.mrb[14].mxu0  ;;  %v1767_v48 = vld [vmem:[%s2404_s26] ss:$0 sm:$0xff] }
 0x483   : >> { %v1250_v50 = vadd.f32 %v1244_v34, %v1187_v47  ;;  %v1873_v51 = vpop.f32.mrb[15].mxu0 }
 0x485   : >> { %v1758_v52 = vmul.f32 -1.442695, %v1250_v50 }
 0x487   : >> { %1980 = vpow2.f32 %v1758_v52 }
 0x491   : >> { %v1981_v53 = vpop.eup %1980 }
 0x492   : >> { %v1254_v54 = vadd.f32 1.0, %v1981_v53 }
 0x494   : >> { %1982 = vrcp.f32 %v1254_v54 }
 0x49e   : >> { %v1983_v56 = vpop.eup %1982 }
 0x49f   : >> { %v1261_v57 = vmul.f32 %v1983_v56, %v1259_v55  ;;  %v1268_v0 = vsub.f32 1.0, %v1983_v56 }
 0x4a1   : >> { %1263 = vrot.lane.b32.xlu1 %v1261_v57, %s2017_s2  ;;  %s2019_s2 = smov 126  }
 0x513   : >> { %v1264_v58 = vpop.permute.xlu1 %1263 }
 0x514   : >> { %v1266_v59 = vadd.f32 %v1264_v58, %v1187_v47 }
 0x516   : >> { %1984 = vtanh.f32 %v1266_v59 }
 0x520   : >> { %v1985_v61 = vpop.eup %1984 }
 0x521   : >> { %1270 = vrot.lane.b32.xlu1 %v1985_v61, %s2018_s1 }
 0x525   : >> { %1275 = vrot.lane.b32.xlu1 %v2169_v8, %s2015_s15  ;;  %v1966_v8 = vld [vmem:[%s2379_s13] sm:$0xff]  }
 0x526   : >> { %1891 = vmatpush3.bf16.msra.mxu1 %v1966_v8 }
 0x527   : >> { %1892 = vmatprep.subr.bf16.mxu1 %v2011_v9 }
 0x52a   : >> { %1893 = vmatpush3.bf16.msra.mxu1 %v1967_v16 }
 0x52b   : >> { %1906 = vmatprep.subr.bf16.mxu1 %v2011_v9 }
 0x593   : >> { %v1271_v63 = vpop.permute.xlu1 %1270 }
 0x594   : >> { %v1273_v11 = vmul.f32 %v1271_v63, %v1268_v0 }
 0x597   : >> { %v1276_v3 = vpop.permute.xlu1 %1275 }
 0x598   : >> { %v1278_v12 = vmul.f32 %v1983_v56, %v1276_v3 }
 0x59a   : >> { %v2299_v13 = vadd.f32 %v1278_v12, %v1273_v11 }
 0x59c   : >> { %v1289_v14 = vpack.c.bf16 %v2299_v13, %v2299_v13 }
 0x59e   : >> { %1298 = vrot.lane.b32.xlu1 %v1289_v14, %s2018_s1 }
 0x610   : >> { %v1299_v15 = vpop.permute.xlu1 %1298 }
 0x611   : >> { %1887 = vmatmul.mubr.msk.bf16.vlgmr.msra.gmra.mrb[16].mxu0 %vm670_vm0, %v1299_v15 }
 0x612   : >> { %1902 = vmatprep.mubr.msk.bf16.mxu0 %vm2012_vm3, %v2011_v9  ;;  %1899 = vmatpush3.bf16.msra.mxu0 %v1970_v27 }
 0x613   : >> { %1900 = vmatprep.subr.bf16.mxu0 %v2011_v9 }
 0x616   : >> { %1901 = vmatpush3.bf16.msra.mxu0 %v1971_v28 }
 0x6e4   : >> { %v1349_v18 = vpop.f32.mrb[16].mxu0 }
 0x6e5   : >> { %v1350_v19 = vadd.f32 %v1759_v17, %v1349_v18  ;;  %v1888_v20 = vpop.f32.mrb[17].mxu0 }
 0x6e6   : >> { %v1352_v21 = vpop.f32.mrb[18].mxu0 }
 0x6e7   : >> { %v1355_v22 = vmax.f32 %v1350_v19, 0.0  ;;  %v1889_v23 = vpop.f32.mrb[19].mxu0 }
 0x6e9   : >> { %v1360_v25 = vpack.c.bf16 %v1355_v22, %v1355_v22 }
 0x6eb   : >> { %1895 = vmatmul.mubr.msk.bf16.vlgmr.msra.gmra.mrb[16].mxu1 %vm670_vm0, %v1360_v25 }
 0x6ec   : >> { %1907 = vmatpush3.bf16.msra.mxu1 %v1968_v24  ;;  %1910 = vmatprep.mubr.msk.bf16.mxu1 %vm2012_vm3, %v2011_v9 }
 0x6ed   : >> { %1908 = vmatprep.subr.bf16.mxu1 %v2011_v9  ;;  %v1771_v9 = vld [vmem:[%s2403_s21] ss:$0 sm:$0xff] }
 0x6f0   : >> { %1909 = vmatpush3.bf16.msra.mxu1 %v1969_v26 }
 0x6f3   : >> { %1911 = vmatmul.mubr.msk.bf16.vlgmr.msra.gmra.mrb[20].mxu1 %vm670_vm0, %v1299_v15 }
 0x7be   : >> { %v1417_v30 = vpop.f32.mrb[16].mxu1 }
 0x7bf   : >> { %v1418_v31 = vadd.f32 %v1763_v29, %v1417_v30  ;;  %v1896_v32 = vpop.f32.mrb[17].mxu1 }
 0x7c0   : >> { %v1420_v33 = vpop.f32.mrb[18].mxu1 }
 0x7c1   : >> { %v1423_v10 = vmax.f32 %v1418_v31, 0.0  ;;  %v1897_v34 = vpop.f32.mrb[19].mxu1 }
 0x7c3   : >> { %v1428_v35 = vpack.c.bf16 %v1423_v10, %v1423_v10 }
 0x7c5   : >> { %1903 = vmatmul.mubr.msk.bf16.vlgmr.msra.gmra.mrb[20].mxu0 %vm670_vm0, %v1428_v35 }
 0x7c6   : >> { %v1550_v36 = vpop.f32.mrb[20].mxu1 }
 0x7c7   : >> { %v1551_v37 = vadd.f32 %v1771_v9, %v1550_v36  ;;  %v1912_v38 = vpop.f32.mrb[21].mxu1 }
 0x7c8   : >> { %v1553_v39 = vpop.f32.mrb[22].mxu1 }
 0x7c9   : >> { %v1913_v40 = vpop.f32.mrb[23].mxu1  ;;  %v1557_v41 = vsel %vm1556_vm11, %v1551_v37, -inf  ;;  %v1579_v55 = vand.u32 2147483647, %v1551_v37  ;;  %v1578_v0 = vmax.f32 %v1551_v37, 0.0 }
 0x7ca   : >> { %1558 = vmax.xlane.f32.xlu1 %v1557_v41 }
 0x7cb   : >> { %v1580_v56 = vsub.f32 0.0, %v1579_v55 }
 0x7cd   : >> { %v1581_v57 = vmul.f32 1.442695, %v1580_v56 }
 0x7db   : >> { %1574 = vrot.lane.b32.xlu1 %v1551_v37, %s2019_s2 }
 0x857   : >> { %v1559_v42 = vpop.xlane.xlu1 %1558 }
 0x858   : >> { %v1560_v43 = vsub.f32 %v1551_v37, %v1559_v42 }
 0x85a   : >> { %v1561_v45 = vmul.f32 1.442695, %v1560_v43 }
 0x85b   : >> { %v1575_v3 = vpop.permute.xlu1 %1574 }
 0x85c   : >> { %1986 = vpow2.f32 %v1561_v45 }
 0x85d   : >> { %1988 = vpow2.f32 %v1581_v57 }
 0x866   : >> { %v1987_v46 = vpop.eup %1986 }
 0x867   : >> { %v1563_v47 = vsel %vm1556_vm11, %v1987_v46, 0.0  ;;  %v1989_v58 = vpop.eup %1988 }
 0x868   : >> { %1564 = vadd.xlane.f32.xlu0 %v1563_v47  ;;  %v1583_v59 = vadd.f32 1.0, %v1989_v58 }
 0x86a   : >> { %1990 = vlog2.f32 %v1583_v59 }
 0x874   : >> { %v1991_v60 = vpop.eup %1990 }
 0x875   : >> { %v1585_v62 = vmul.f32 0.6931472, %v1991_v60 }
 0x877   : >> { %v1586_v14 = vadd.f32 %v1585_v62, %v1578_v0 }
 0x879   : >> { %v1587_v15 = vadd.f32 0.001, %v1586_v14 }
 0x87e   : >> { %1569 = vrot.lane.b32.xlu0 %v2243_v44, %s2020_s24 }
 0x898   : >> { %v1485_v49 = vpop.f32.mrb[20].mxu0 }
 0x899   : >> { %v1486_v50 = vadd.f32 %v1767_v48, %v1485_v49  ;;  %v1904_v51 = vpop.f32.mrb[21].mxu0 }
 0x89a   : >> { %v1488_v52 = vpop.f32.mrb[22].mxu0 }
 0x89b   : >> { %v1905_v53 = vpop.f32.mrb[23].mxu0  ;;  %v1491_v54 = vadd.f32 %v1486_v50, %v2243_v44 }
 0x89d   : >> { %1492 = vst.msk [vmem:[#allocation3] sm:$0xff] %vm673_vm1, %v1491_v54 }
 0x8f5   : >> { %v1565_v61 = vpop.xlane.xlu0 %1564 }
 0x8f6   : >> { %1992 = vrcp.f32 %v1565_v61 }
 0x8f9   : >> { %v1570_v63 = vpop.permute.xlu0 %1569 }
 0x8fa   : >> { %v1572_v11 = vsel %vm673_vm1, %v2243_v44, %v1570_v63 }
 0x8fb   : >> { %v1577_v12 = vadd.f32 %v1575_v3, %v1572_v11 }
 0x8fd   : >> { %1593 = vrot.lane.b32.xlu0 %v1577_v12, %s2021_s27 }
 0x900   : >> { %v1993_v8 = vpop.eup %1992 }
 0x901   : >> { %1597 = vrot.lane.b32.xlu0 %v1587_v15, %s2020_s24  ;;  %v1567_v16 = vmul.f32 %v1993_v8, %v1987_v46 }
 0x905   : >> { %1589 = vrot.lane.b32.xlu0 %v1567_v16, %s2020_s24 }
 0x909   : >> { %1281 = vrot.lane.b32.xlu0 %v2299_v13, %s2018_s1 }
 0x96f   : >> { %v1594_v17 = vpop.permute.xlu0 %1593 }
 0x973   : >> { %v1598_v18 = vpop.permute.xlu0 %1597 }
 0x976   : > { %679 = sbr.rel (!%p677_p6) target bundleno = 28 (0x1c), region = 146 }
 0x977   : >> { %v1590_v44 = vpop.permute.xlu0 %1589 }
 0x978   : >> { %v1600_v19 = vsel %vm673_vm1, %v1491_v54, %v1590_v44 }
 0x979   : >> { %v1602_v20 = vsel %vm1601_vm12, %v1600_v19, %v1594_v17 }
 0x97a   : >> { %v1604_v21 = vsel %vm1603_vm13, %v1602_v20, %v1598_v18 }
 0x97b   : >> { %v1606_v22 = vsel %vm1605_vm14, %v1604_v21, 0.0  ;;  %v1282_v23 = vpop.permute.xlu0 %1281 }
 0x97c   : >> { %1609 = vst [vmem:[%s1608_s20] sm:$0xff] %v1606_v22  ;;  %1284 = vst.msk [vmem:[#allocation2] sm:$0xff] %vm670_vm0, %v1282_v23 }
 0x97d PF: > { %s2405_s1 = sld [smem:[#allocation4_spill]] }
 0x983   : > { %s29_s0 = sadd.s32 1, %s2405_s1  }
 0x984   : > { %p26_p7 = scmp.ge.s32.totalorder %s29_s0, 4  }
 0x986   :  { %28 = sbr.rel (!%p26_p7) target bundleno = 9 (0x9), region = 157 }

// kernel: hgnn_forward.4
= control target key start
LH: loop header
LB: loop body
LE: loop exit
PB: predicated region body
PF: predicated region fallthrough
CT: control target
= control target key end

     0   :  { %s4495_s6 = smov 1   ;;  %s4496_s10 = smov 2   ;;  %s5216_s0 = inlined_call_operand.smem [shape: u32[45], index: -1, kind: input, shape index: {}] }
   0x1   :  { %s4556_s5 = sld [smem:[%s5216_s0]]   ;;  %s4497_s14 = smov 3  }
   0x2   :  { %s4561_s9 = sld [smem:[%s5216_s0 + %s4495_s6]]   ;;  %s4498_s18 = smov 4  }
   0x3   :  { %s4566_s13 = sld [smem:[%s5216_s0 + %s4496_s10]]   ;;  %s4499_s22 = smov 5  }
   0x4   :  { %s4571_s17 = sld [smem:[%s5216_s0 + %s4497_s14]]   ;;  %s4500_s26 = smov 6  }
   0x5   :  { %s4576_s21 = sld [smem:[%s5216_s0 + %s4498_s18]]   ;;  %s4501_s30 = smov 7  }
   0x6   :  { %s4581_s25 = sld [smem:[%s5216_s0 + %s4499_s22]]   ;;  %s4502_s4 = smov 8  }
   0x7   :  { %5242 = sst [smem:[#allocation6_spill]] %s4556_s5  ;;  %s4503_s10 = smov 9  }
   0x8   :  { %5243 = sst [smem:[#allocation7_spill]] %s4561_s9  ;;  %s4504_s15 = smov 10  }
   0x9   :  { %5244 = sst [smem:[#allocation8_spill]] %s4566_s13  ;;  %s4505_s20 = smov 11  }
   0xa   :  { %5245 = sst [smem:[#allocation9_spill]] %s4571_s17  ;;  %s4507_s1 = smov 13  }
   0xb   :  { %5246 = sst [smem:[#allocation10_spill]] %s4576_s21  ;;  %s4508_s7 = smov 14  }
   0xc   :  { %5247 = sst [smem:[#allocation11_spill]] %s4581_s25  ;;  %s4510_s22 = smov 16  }
   0xd   :  { %s4586_s29 = sld [smem:[%s5216_s0 + %s4500_s26]]   ;;  %s4506_s26 = smov 12  }
   0xe   :  { %s4591_s3 = sld [smem:[%s5216_s0 + %s4501_s30]]   ;;  %s4511_s28 = smov 17  }
   0xf   :  { %s4596_s8 = sld [smem:[%s5216_s0 + %s4502_s4]]   ;;  %s4519_s17 = smov 25  }
  0x10   :  { %s4601_s14 = sld [smem:[%s5216_s0 + %s4503_s10]]   ;;  %s4516_s10 = smov 22  }
  0x11   :  { %s4606_s19 = sld [smem:[%s5216_s0 + %s4504_s15]]   ;;  %s4509_s15 = smov 15  }
  0x12   :  { %s4611_s24 = sld [smem:[%s5216_s0 + %s4505_s20]]  }
  0x13   :  { %s4616_s30 = sld [smem:[%s5216_s0 + %s4506_s26]]  }
  0x14   :  { %5248 = sst [smem:[#allocation12_spill]] %s4591_s3 }
  0x15   :  { %5249 = sst [smem:[#allocation13_spill]] %s4596_s8 }
  0x16   :  { %5250 = sst [smem:[#allocation14_spill]] %s4601_s14 }
  0x17   :  { %5251 = sst [smem:[#allocation15_spill]] %s4606_s19 }
  0x18   :  { %s3739_s6 = sld [smem:[%s5216_s0 + %s4507_s1]]  }
  0x19   :  { %s4624_s12 = sld [smem:[%s5216_s0 + %s4508_s7]]   ;;  %s4512_s7 = smov 18  }
  0x1a   :  { %s4629_s20 = sld [smem:[%s5216_s0 + %s4509_s15]]   ;;  %s4513_s15 = smov 19  }
  0x1b   :  { %s4634_s27 = sld [smem:[%s5216_s0 + %s4510_s22]]   ;;  %s4514_s22 = smov 20  }
  0x1c   :  { %s4639_s4 = sld [smem:[%s5216_s0 + %s4511_s28]]   ;;  %s4515_s28 = smov 21  }
  0x1d   :  { %s4644_s25 = sld [smem:[%s5216_s0 + %s4512_s7]]  }
  0x1e   :  { %s4649_s21 = sld [smem:[%s5216_s0 + %s4513_s15]]   ;;  %v95_v0 = vstv %s3739_s6  ;;  %s4517_s6 = smov 23  }
  0x1f   :  { %5252 = sst [smem:[#allocation16_spill]] %s4624_s12  ;;  %96 = vst [vmem:[#allocation2] sm:$0x1] %v95_v0 }
  0x20   :  { %5253 = sst [smem:[#allocation17_spill]] %s4629_s20 }
  0x21   :  { %s4654_s1 = sld [smem:[%s5216_s0 + %s4514_s22]]   ;;  %s4518_s22 = smov 24  }
  0x22   :  { %5254 = sst [smem:[#allocation18_spill]] %s4639_s4  ;;  %s4520_s4 = smov 26  }
  0x23   :  { %s4659_s7 = sld [smem:[%s5216_s0 + %s4515_s28]]  }
  0x24   :  { %5255 = sst [smem:[#allocation19_spill]] %s4649_s21  ;;  %s4522_s21 = smov 28  }
  0x25   :  { %s4664_s15 = sld [smem:[%s5216_s0 + %s4516_s10]]  }
  0x26   :  { %s4669_s23 = sld [smem:[%s5216_s0 + %s4517_s6]]   ;;  %s4521_s6 = smov 27  }
  0x27   :  { %5256 = sst [smem:[#allocation20_spill]] %s4654_s1 }
  0x28   :  { %s4674_s1 = sld [smem:[%s5216_s0 + %s4518_s22]]  }
  0x29   :  { %5257 = sst [smem:[#allocation21_spill]] %s4659_s7 }
  0x2a   :  { %s4679_s7 = sld [smem:[%s5216_s0 + %s4519_s17]]   ;;  %s4523_s17 = smov 29  }
  0x2b   :  { %5258 = sst [smem:[#allocation22_spill]] %s4664_s15 }
  0x2c   :  { %5259 = sst [smem:[#allocation23_spill]] %s4669_s23 }
  0x2d   :  { %s4684_s15 = sld [smem:[%s5216_s0 + %s4520_s4]]   ;;  %s4524_s4 = smov 30  }
  0x2e   :  { %5260 = sst [smem:[#allocation24_spill]] %s4674_s1 }
  0x2f   :  { %s4689_s23 = sld [smem:[%s5216_s0 + %s4521_s6]]   ;;  %s4525_s6 = smov 31  }
  0x30   :  { %5261 = sst [smem:[#allocation25_spill]] %s4679_s7 }
  0x31   :  { %s4694_s1 = sld [smem:[%s5216_s0 + %s4522_s21]]   ;;  %s4526_s21 = smov 32  }
  0x32   :  { %s4699_s7 = sld [smem:[%s5216_s0 + %s4523_s17]]   ;;  %s4527_s17 = smov 33  }
  0x33   :  { %5262 = sst [smem:[#allocation26_spill]] %s4684_s15 }
  0x34   :  { %s4704_s15 = sld [smem:[%s5216_s0 + %s4524_s4]]   ;;  %s4528_s4 = smov 34  }
  0x35   :  { %5263 = sst [smem:[#allocation27_spill]] %s4689_s23 }
  0x36   :  { %s4709_s23 = sld [smem:[%s5216_s0 + %s4525_s6]]   ;;  %s4529_s6 = smov 35  }
  0x37   :  { %5264 = sst [smem:[#allocation28_spill]] %s4694_s1 }
  0x38   :  { %5265 = sst [smem:[#allocation29_spill]] %s4699_s7 }
  0x39   :  { %s4714_s1 = sld [smem:[%s5216_s0 + %s4526_s21]]   ;;  %s4530_s21 = smov 36  }
  0x3a   :  { %5266 = sst [smem:[#allocation30_spill]] %s4704_s15 }
  0x3b   :  { %s4719_s7 = sld [smem:[%s5216_s0 + %s4527_s17]]   ;;  %s4531_s17 = smov 37  }
  0x3c   :  { %5267 = sst [smem:[#allocation31_spill]] %s4709_s23 }
  0x3d   :  { %s4724_s15 = sld [smem:[%s5216_s0 + %s4528_s4]]   ;;  %s4532_s4 = smov 38  }
  0x3e   :  { %s4729_s23 = sld [smem:[%s5216_s0 + %s4529_s6]]   ;;  %s4533_s6 = smov 39  }
  0x3f   :  { %5268 = sst [smem:[#allocation32_spill]] %s4714_s1 }
  0x40   :  { %s4734_s1 = sld [smem:[%s5216_s0 + %s4530_s21]]   ;;  %s4534_s21 = smov 40  }
  0x41   :  { %5269 = sst [smem:[#allocation33_spill]] %s4719_s7 }
  0x42   :  { %s4739_s7 = sld [smem:[%s5216_s0 + %s4531_s17]]   ;;  %s4535_s17 = smov 41  }
  0x43   :  { %5270 = sst [smem:[#allocation34_spill]] %s4724_s15 }
  0x44   :  { %5271 = sst [smem:[#allocation35_spill]] %s4729_s23 }
  0x45   :  { %s4744_s15 = sld [smem:[%s5216_s0 + %s4532_s4]]   ;;  %s4536_s4 = smov 42  }
  0x46   :  { %5272 = sst [smem:[#allocation36_spill]] %s4734_s1 }
  0x47   :  { %s4749_s23 = sld [smem:[%s5216_s0 + %s4533_s6]]   ;;  %s4537_s6 = smov 43  }
  0x48   :  { %5273 = sst [smem:[#allocation37_spill]] %s4739_s7 }
  0x49   :  { %s4754_s1 = sld [smem:[%s5216_s0 + %s4534_s21]]   ;;  %s4538_s21 = smov 44  }
  0x4a   :  { %s4759_s7 = sld [smem:[%s5216_s0 + %s4535_s17]]  }
  0x4b   :  { %5274 = sst [smem:[#allocation38_spill]] %s4744_s15 }
  0x4c   :  { %s4764_s15 = sld [smem:[%s5216_s0 + %s4536_s4]]  }
  0x4d   :  { %5275 = sst [smem:[#allocation39_spill]] %s4749_s23 }
  0x4e   :  { %s4769_s23 = sld [smem:[%s5216_s0 + %s4537_s6]]  }
  0x4f   :  { %5276 = sst [smem:[#allocation40_spill]] %s4754_s1 }
  0x50   :  { %5277 = sst [smem:[#allocation41_spill]] %s4759_s7 }
  0x51   :  { %s4774_s1 = sld [smem:[%s5216_s0 + %s4538_s21]]  }
  0x52   :  { %97 = vsyncpa [#allocation4], 0 }
  0x53   :  { %99 = vsyncpa [#allocation4 + $0x1], 0  ;;  %s4776_s17 = smov 0   ;;  %s4778_s28 = smov 0  }
  0x54   :  { %s4780_s2 = smov 0   ;;  %s4782_s4 = smov 0  }
  0x55 LB: > { %s5278_s19 = sld [smem:[#allocation15_spill]]  ;;  %s5279_s8 = sld [smem:[#allocation13_spill]]  ;;  %s4485_s28 = sphi %s4778_s28, %s5319_s28   ;;  %s4481_s17 = sphi %s4776_s17, %s5318_s17   ;;  %s4493_s4 = sphi %s4782_s4, %s5321_s4   ;;  %s4489_s2 = sphi %s4780_s2, %s5320_s2  }
  0x56   : > { %s4797_s0 = sadd.s32 4294967295, %s4493_s4   ;;  %s3772_s10 = sadd.s32 4294967294, %s4493_s4  }
  0x57   : > { %s4801_s11 = sadd.s32 1, %s4493_s4   ;;  %s1024_s6 = sadd.s32 1, %s4489_s2 }
  0x58   : > { %s1021_s16 = ssub.s32 %s4493_s4, %s4801_s11  ;;  %p1034_p0 = scmp.ne.s32.totalorder %s4489_s2, %s4485_s28 }
  0x59   : > { %p1022_p1 = scmp.eq.s32.totalorder %s1021_s16, 0  ;;  %p1035_p2 = scmp.eq.s32.totalorder %s4797_s0, 1 }
  0x5a   : > { %p1040_p3 = scmp.ne.s32.totalorder %s4485_s28, %s4481_s17  ;;  %p1041_p4 = scmp.eq.s32.totalorder %s3772_s10, 1 }
  0x5b   : > { %s4812_s18 = scalar_select %p1022_p1, %s4489_s2, %s1024_s6  }
  0x5c   : > { %p4814_p5 = por %p1035_p2, %p1034_p0  ;;  %p4818_p6 = por %p1041_p4, %p1040_p3 }
  0x5d   : > { %p3775_p7 = scmp.ge.s32.totalorder %s4493_s4, 1  ;;  %p1264_p8 = scmp.lt.s32.totalorder %s4493_s4, 3 }
  0x5f   : > { %p1265_p9 = pnand %p3775_p7, %p1264_p8 }
  0x60   : > { %s5282_s5 = sld [smem:[#allocation6_spill]] (!%p1265_p9)  ;;  %v4333_v1 = vld [vmem:[%s4586_s29] sm:$0xff] (!%p1265_p9)   ;;  %v4539_v2 = vmov (!%p1265_p9), 0.0   ;;  %v4334_v3 = vld [vmem:[%s4586_s29 + $0x8] sm:$0xff] (!%p1265_p9)   ;;  %vm4540_vm0 = vmmov (!%p1265_p9), 0   ;;  %p1401_p10 = scmp.lt.s32.totalorder (!%p1265_p9), %s4797_s0, 1 }
  0x61   : > { %1268 = sbr.rel (%p1265_p9) target bundleno = 6662 (0x1a06), region = 188  ;;  %3988 = vmatprep.subr.bf16.mxu0 (!%p1265_p9), %v4539_v2  ;;  %3996 = vmatprep.subr.bf16.mxu1 (!%p1265_p9), %v4539_v2  ;;  %s5283_s3 = sld [smem:[#allocation12_spill]] (!%p1265_p9)  ;;  %vm1467_vm1 = vcmask (!%p1265_p9), 261120   ;;  %v4335_v6 = vld [vmem:[%s5279_s8] sm:$0xff] (!%p1265_p9)   ;;  %v4336_v7 = vld [vmem:[%s5279_s8 + $0x8] sm:$0xff] (!%p1265_p9)   ;;  %vm1585_vm2 = vcmask (!%p1265_p9), 1041408  }
  0x62   : > { %3989 = vmatpush3.bf16.msra.mxu0 (!%p1265_p9), %v4333_v1  ;;  %3992 = vmatprep.mubr.msk.bf16.mxu0 (!%p1265_p9), %vm4540_vm0, %v4539_v2  ;;  %s5284_s14 = sld [smem:[#allocation14_spill]] (!%p1265_p9)  ;;  %s5285_s13 = sld [smem:[#allocation8_spill]] (!%p1265_p9)  ;;  %vm1581_vm3 = vcmask (!%p1265_p9), 31744   ;;  %v4337_v30 = vld [vmem:[%s5278_s19] sm:$0xff] (!%p1265_p9)   ;;  %v4338_v31 = vld [vmem:[%s5278_s19 + $0x8] sm:$0xff] (!%p1265_p9)   ;;  %v4339_v32 = vld [vmem:[%s5278_s19 + $0x10] sm:$0xff] (!%p1265_p9)  }
  0x63   : > { %3990 = vmatprep.subr.bf16.mxu0 (!%p1265_p9), %v4539_v2  ;;  %4000 = vmatprep.mubr.msk.bf16.mxu1 (!%p1265_p9), %vm4540_vm0, %v4539_v2  ;;  %s5286_s9 = sld [smem:[#allocation7_spill]] (!%p1265_p9)  ;;  %v4340_v33 = vld [vmem:[%s5278_s19 + $0x18] sm:$0xff] (!%p1265_p9)   ;;  %vm1725_vm4 = vcmask (!%p1265_p9), 523264   ;;  %v4341_v49 = vld [vmem:[%s4616_s30] sm:$0xff] (!%p1265_p9)   ;;  %vm1788_vm5 = vcmask (!%p1265_p9), 130048   ;;  %v4542_v60 = vmov (!%p1265_p9), 0  }
  0x64   : > { %3997 = vmatpush3.bf16.msra.mxu1 (!%p1265_p9), %v4335_v6  ;;  %v3799_v50 = vld [vmem:[%s4611_s24] ss:$0 sm:$0xff] (!%p1265_p9)  ;;  %4316 = vset.pattern.permute.xlu0 (!%p1265_p9), %v4542_v60  ;;  %s5287_s12 = sld [smem:[#allocation16_spill]] (!%p1265_p9)  ;;  %vm1878_vm6 = vcmask (!%p1265_p9), 1045504   ;;  %s5288_s20 = sld [smem:[#allocation17_spill]] (!%p1265_p9)  ;;  %vm1874_vm7 = vcmask (!%p1265_p9), 97280  }
  0x65   : > { %3998 = vmatprep.subr.bf16.mxu1 (!%p1265_p9), %v4539_v2  ;;  %4317 = vset.pattern.permute.xlu1 (!%p1265_p9), %v4542_v60  ;;  %v3805_v61 = vld [vmem:[#allocation2] ss:$0 sm:$0xff] (!%p1265_p9)  ;;  %vm2097_vm8 = vcmask (!%p1265_p9), 392192   ;;  %vm2100_vm9 = vcmask (!%p1265_p9), 654336   ;;  %vm2159_vm10 = vcmask (!%p1265_p9), 785408   ;;  %vm2352_vm11 = vcmask (!%p1265_p9), 19456  }
  0x66   : > { %3991 = vmatpush3.bf16.msra.mxu0 (!%p1265_p9), %v4334_v3  ;;  %s5299_s8 = sld [smem:[#allocation25_spill]] (!%p1265_p9)  ;;  %vm3462_vm13 = vcmask (!%p1265_p9), 15360   ;;  %vm3466_vm14 = vcmask (!%p1265_p9), 11264   ;;  %vm3519_vm15 = vcmask (!%p1265_p9), 277504  }
  0x67   : > { %4004 = vmatprep.subr.bf16.mxu0 (!%p1265_p9), %v4539_v2  ;;  %v3789_v8 = vld [vmem:[%s5283_s3] ss:$0 sm:$0xff] (!%p1265_p9)  ;;  %s5293_s3 = sld [smem:[#allocation21_spill]] (!%p1265_p9)  ;;  %s5317_s7 = sld [smem:[#allocation41_spill]] (!%p1265_p9) }
  0x68   : > { %s1402_s26 = scalar_select %p1401_p10, %s4797_s0, 1  ;;  %3999 = vmatpush3.bf16.msra.mxu1 %v4336_v7  ;;  %v3793_v16 = vld [vmem:[%s5284_s14] ss:$0 sm:$0xff] }
  0x69   : > { %4010 = vmatprep.subr.bf16.mxu1 %v4539_v2  ;;  %s5314_s14 = sld [smem:[#allocation39_spill]] }
  0x6a   : > { %s4835_s10 = sshll.u32 %s1402_s26, 2  ;;  %s4851_s16 = sshll.u32 %s1402_s26, 4 }
  0x6b   : > { %s1404_s6 = scalar_lea.vmem %s5282_s5, %s4835_s10  ;;  %s1409_s5 = scalar_lea.vmem %s5286_s9, %s4851_s16 }
  0x6c   : > { %v1438_v4 = vld [vmem:[%s1404_s6] sm:$0xf]  ;;  %s1414_s6 = scalar_lea.vmem %s5285_s13, %s4851_s16  ;;  %v1440_v24 = vld [vmem:[%s1409_s5 + $0x8] sm:$0xf]  ;;  %s5227_s26 = smov 48  }
  0x6d   : > { %v1447_v5 = vpack.c.bf16 %v1438_v4, %v1438_v4  ;;  %v1441_v20 = vld [vmem:[%s1414_s6] sm:$0xff]  ;;  %v1442_v22 = vld [vmem:[%s1414_s6 + $0x8] sm:$0xf]  ;;  %s4544_s6 = smov 80   ;;  %s5312_s9 = sld [smem:[#allocation10_spill]] }
  0x6e   : > { %v1439_v23 = vld [vmem:[%s1409_s5] sm:$0xff]  ;;  %v4863_v28 = vpack.c.bf16 %v1442_v22, %v1441_v20  ;;  %s4541_s5 = smov 32  }
  0x6f   : > { %3993 = vmatmul.mubr.msk.bf16.vlgmr.msra.gmra.mrb[0].mxu0 %vm1467_vm1, %v1447_v5  ;;  %v4865_v29 = vpack.c.bf16 %v1440_v24, %v1439_v23 }
  0x70   : > { %4006 = vmatprep.mubr.msk.bf16.mxu0 %vm4540_vm0, %v4539_v2 }
  0x73   : > { %s1423_s13 = scalar_lea.vmem %s5312_s9, %s4851_s16  ;;  %s5315_s9 = sld [smem:[#allocation40_spill]] }
 0x142   : > { %v1505_v9 = vpop.f32.mrb[0].mxu0 }
 0x143   : > { %v1506_v10 = vadd.f32 %v3789_v8, %v1505_v9  ;;  %v3994_v11 = vpop.f32.mrb[1].mxu0 }
 0x144   : > { %v1508_v12 = vpop.f32.mrb[2].mxu0 }
 0x145   : > { %v1511_v13 = vmax.f32 %v1506_v10, 0.0  ;;  %v3995_v14 = vpop.f32.mrb[3].mxu0 }
 0x147   : > { %v1516_v15 = vpack.c.bf16 %v1511_v13, %v1511_v13 }
 0x149   : > { %4001 = vmatmul.mubr.msk.bf16.vlgmr.msra.gmra.mrb[0].mxu1 %vm1467_vm1, %v1516_v15 }
 0x14a   : > { %4012 = vmatprep.mubr.msk.bf16.mxu1 %vm4540_vm0, %v4539_v2 }
 0x21c   : > { %v1573_v17 = vpop.f32.mrb[0].mxu1 }
 0x21d   : > { %v4858_v18 = vadd.f32 %v3793_v16, %v1573_v17  ;;  %v4002_v19 = vpop.f32.mrb[1].mxu1 }
 0x21e   : > { %v1576_v21 = vpop.f32.mrb[2].mxu1 }
 0x21f   : > { %v1580_v25 = vpack.c.bf16 %v4858_v18, %v4858_v18  ;;  %v4003_v26 = vpop.f32.mrb[3].mxu1  ;;  %v4342_v21 = vld [vmem:[%s5287_s12] sm:$0xff]   ;;  %s5313_s12 = sld [smem:[#allocation37_spill]] }
 0x221   : > { %v1587_v27 = vsel %vm1585_vm2, %v1580_v25, 0 }
 0x222   : > { %4005 = vmatpush3.bf16.msra.mxu0 %v1587_v27  ;;  %4011 = vmatpush3.bf16.msra.mxu1 %v1587_v27  ;;  %v3811_v27 = vld [vmem:[%s5288_s20] ss:$0 sm:$0xff] }
 0x223   : > { %4016 = vmatprep.subr.bf16.mxu0 %v4539_v2  ;;  %4028 = vmatprep.subr.bf16.mxu1 %v4539_v2 }
 0x225   : > { %4013 = vmatmul.mubr.msk.bf16.vlgmr.msra.gmra.mrb[4].mxu1 %vm1581_vm3, %v4863_v28  ;;  %4007 = vmatmul.mubr.msk.bf16.vlgmr.msra.gmra.mrb[4].mxu0 %vm1581_vm3, %v4865_v29 }
 0x226   : > { %4024 = vmatprep.mubr.msk.bf16.mxu0 %vm4540_vm0, %v4539_v2  ;;  %4030 = vmatprep.mubr.msk.bf16.mxu1 %vm4540_vm0, %v4539_v2 }
 0x227   : > { %4017 = vmatpush3.bf16.msra.mxu0 %v4337_v30  ;;  %4029 = vmatpush3.bf16.msra.mxu1 %v4341_v49 }
 0x228   : > { %4018 = vmatprep.subr.bf16.mxu0 %v4539_v2  ;;  %4034 = vmatprep.subr.bf16.mxu1 %v4539_v2 }
 0x22b   : > { %4019 = vmatpush3.bf16.msra.mxu0 %v4338_v31 }
 0x22c   : > { %4020 = vmatprep.subr.bf16.mxu0 %v4539_v2 }
 0x22f   : > { %4021 = vmatpush3.bf16.msra.mxu0 %v4339_v32 }
 0x230   : > { %4022 = vmatprep.subr.bf16.mxu0 %v4539_v2 }
 0x233   : > { %4023 = vmatpush3.bf16.msra.mxu0 %v4340_v33 }
 0x234   : > { %4040 = vmatprep.subr.bf16.mxu0 %v4539_v2 }
 0x2f8   : > { %v1668_v34 = vpop.f32.mrb[4].mxu1  ;;  %v4885_v35 = vpop.f32.mrb[4].mxu0 }
 0x2f9   : > { %v4014_v36 = vpop.f32.mrb[5].mxu1  ;;  %v4008_v37 = vpop.f32.mrb[5].mxu0 }
 0x2fa   : > { %v1671_v38 = vpop.f32.mrb[6].mxu1  ;;  %v4887_v39 = vpop.f32.mrb[6].mxu0 }
 0x2fb   : > { %v4318_v40 = vpack.i.bf16 %v1671_v38, %v1668_v34  ;;  %v4015_v41 = vpop.f32.mrb[7].mxu1  ;;  %v4009_v42 = vpop.f32.mrb[7].mxu0 }
 0x2fc   : > { %v4344_v41 = vld [vmem:[%s4634_s27 + $0x8] sm:$0xff]   ;;  %v4345_v42 = vld [vmem:[%s4634_s27 + $0x10] sm:$0xff]  }
 0x2fd   : > { %4312 = vrot.lane.b32.xlu0 %v4318_v40, %s4541_s5 }
 0x36f   : > { %v4313_v43 = vpop.permute.xlu0 %4312 }
 0x370   : > { %v4315_v44 = vunpack.i.h.bf16 %v4313_v43  ;;  %v4314_v45 = vunpack.i.l.bf16 %v4313_v43  ;;  %v4347_v43 = vld [vmem:[%s4634_s27 + $0x20] sm:$0xff]  }
 0x372   : > { %v1683_v46 = vsel %vm1467_vm1, %v4885_v35, %v4314_v45  ;;  %v1684_v47 = vsel %vm1467_vm1, %v4887_v39, %v4315_v44  ;;  %v4348_v44 = vld [vmem:[%s4634_s27 + $0x28] sm:$0xff]  }
 0x373   : > { %v1693_v48 = vpack.c.bf16 %v1684_v47, %v1683_v46 }
 0x375   : > { %4025 = vmatmul.mubr.msk.bf16.vlgmr.msra.gmra.mrb[8].mxu0 %vm1725_vm4, %v1693_v48 }
 0x376   : > { %4042 = vmatprep.mubr.msk.bf16.mxu0 %vm4540_vm0, %v4539_v2  ;;  %4041 = vmatpush3.bf16.msra.mxu0 %v4342_v21 }
 0x377   : > { %4052 = vmatprep.subr.bf16.mxu0 %v4539_v2 }
 0x448   : > { %v1763_v51 = vpop.f32.mrb[8].mxu0 }
 0x449   : > { %v1764_v52 = vadd.f32 %v3799_v50, %v1763_v51  ;;  %v4026_v53 = vpop.f32.mrb[9].mxu0 }
 0x44a   : > { %v1766_v54 = vpop.f32.mrb[10].mxu0 }
 0x44b   : > { %v1767_v55 = vadd.f32 %v3799_v50, %v1766_v54  ;;  %v4027_v56 = vpop.f32.mrb[11].mxu0  ;;  %v1770_v57 = vmax.f32 %v1764_v52, 0.0 }
 0x44d   : > { %v1771_v58 = vmax.f32 %v1767_v55, 0.0 }
 0x44f   : > { %v1774_v59 = vpack.c.bf16 %v1771_v58, %v1770_v57 }
 0x451   : > { %4031 = vmatmul.mubr.msk.bf16.vlgmr.msra.gmra.mrb[8].mxu1 %vm1788_vm5, %v1774_v59 }
 0x452   : > { %4036 = vmatprep.mubr.msk.bf16.mxu1 %vm4540_vm0, %v4539_v2 }
 0x524   : > { %v1826_v62 = vpop.f32.mrb[8].mxu1 }
 0x525   : > { %v1827_v63 = vadd.f32 %v3805_v61, %v1826_v62  ;;  %v4032_v0 = vpop.f32.mrb[9].mxu1 }
 0x526   : > { %v1829_v1 = vpop.f32.mrb[10].mxu1 }
 0x527   : > { %v3808_v3 = vmul.f32 -1.442695, %v1827_v63  ;;  %v1830_v4 = vadd.f32 %v3805_v61, %v1829_v1  ;;  %v4033_v5 = vpop.f32.mrb[11].mxu1 }
 0x529   : > { %4383 = vpow2.f32 %v3808_v3  ;;  %v3809_v6 = vmul.f32 -1.442695, %v1830_v4 }
 0x52b   : > { %4385 = vpow2.f32 %v3809_v6  ;;  %v4349_v6 = vld [vmem:[%s4644_s25] sm:$0xff]  }
 0x533   : > { %v4384_v7 = vpop.eup %4383 }
 0x534   : > { %v1839_v8 = vadd.f32 1.0, %v4384_v7  ;;  %v4350_v7 = vld [vmem:[%s4644_s25 + $0x8] sm:$0xff]  }
 0x535   : > { %v4386_v9 = vpop.eup %4385 }
 0x536   : > { %4387 = vrcp.f32 %v1839_v8  ;;  %v1840_v10 = vadd.f32 1.0, %v4386_v9 }
 0x538   : > { %4389 = vrcp.f32 %v1840_v10 }
 0x540   : > { %v4388_v11 = vpop.eup %4387 }
 0x541   : > { %1847 = vperm.xlu0 %4316, %v4388_v11  }
 0x542   : > { %v4390_v12 = vpop.eup %4389 }
 0x543   : > { %1852 = vperm.xlu1 %4317, %v4390_v12  }
 0x545   : > { %4319 = vrot.lane.b32.xlu0 %v4318_v40, %s5227_s26  ;;  %v4343_v40 = vld [vmem:[%s4634_s27] sm:$0xff]   ;;  %s5291_s26 = sld [smem:[#allocation19_spill]] }
 0x566   : > { %1858 = vxpose.xlu1.c.b16.start.end [1/1] (short) (narrow) %v4865_v29, 16 }
 0x5c0   : > { %v4904_v13 = vpop.permute.xlu0 %1847 }
 0x5c1   : > { %v1855_v15 = vmul.f32 %v4904_v13, %v1770_v57 }
 0x5c2   : > { %v4906_v14 = vpop.permute.xlu1 %1852 }
 0x5c3   : > { %v1856_v16 = vmul.f32 %v4906_v14, %v1771_v58 }
 0x5c4   : > { %v4320_v55 = vpop.permute.xlu0 %4319 }
 0x5c5   : > { %v1857_v17 = vpack.c.bf16 %v1856_v16, %v1855_v15  ;;  %v4322_v61 = vunpack.i.h.bf16 %v4320_v55  ;;  %v4321_v62 = vunpack.i.l.bf16 %v4320_v55 }
 0x5c7   : > { %v1880_v19 = vsel %vm1878_vm6, %v1857_v17, 0 }
 0x5c8   : > { %4035 = vmatpush3.bf16.msra.mxu1 %v1880_v19 }
 0x5c9   : > { %4046 = vmatprep.subr.bf16.mxu1 %v4539_v2 }
 0x5cc   : > { %v4912_v20 = vpop.trf.xlu1 }
 0x5cd   : > { %4037 = vmatmul.mubr.msk.bf16.vlgmr.msra.gmra.mrb[12].mxu1 %vm1874_vm7, %v4912_v20 }
 0x5ce   : > { %4048 = vmatprep.mubr.msk.bf16.mxu1 %vm4540_vm0, %v4539_v2 }
 0x6a0   : > { %v1916_v22 = vpop.f32.mrb[12].mxu1 }
 0x6a1   : > { %v1924_v23 = vpack.c.bf16 %v1916_v22, %v1916_v22  ;;  %v4038_v24 = vpop.f32.mrb[13].mxu1 }
 0x6a2   : > { %v1919_v25 = vpop.f32.mrb[14].mxu1 }
 0x6a3   : > { %v4039_v26 = vpop.f32.mrb[15].mxu1  ;;  %4043 = vmatmul.mubr.msk.bf16.vlgmr.msra.gmra.mrb[12].mxu0 %vm1788_vm5, %v1924_v23 }
 0x6a4   : > { %4054 = vmatprep.mubr.msk.bf16.mxu0 %vm4540_vm0, %v4539_v2 }
 0x776   : > { %v1975_v30 = vpop.f32.mrb[12].mxu0 }
 0x777   : > { %v1976_v31 = vadd.f32 %v3811_v27, %v1975_v30  ;;  %v4044_v32 = vpop.f32.mrb[13].mxu0  ;;  %v3824_v30 = vld [vmem:[%s5291_s26] ss:$0 sm:$0xff]  ;;  %s5295_s26 = sld [smem:[#allocation24_spill]] }
 0x778   : > { %v1978_v33 = vpop.f32.mrb[14].mxu0 }
 0x779   : > { %v1981_v34 = vmax.f32 %v1976_v31, 0.0  ;;  %v4045_v36 = vpop.f32.mrb[15].mxu0 }
 0x77b   : > { %v1987_v37 = vpack.c.bf16 %v1981_v34, %v1981_v34 }
 0x77d   : > { %v1989_v38 = vsel %vm1585_vm2, %v1987_v37, 0 }
 0x77e   : > { %4047 = vmatpush3.bf16.msra.mxu1 %v1989_v38  ;;  %4053 = vmatpush3.bf16.msra.mxu0 %v1989_v38  ;;  %v3828_v38 = vld [vmem:[%s5293_s3] ss:$0 sm:$0xff]  ;;  %s5294_s3 = sld [smem:[#allocation22_spill]] }
 0x77f   : > { %4058 = vmatprep.subr.bf16.mxu1 %v4539_v2  ;;  %4074 = vmatprep.subr.bf16.mxu0 %v4539_v2 }
 0x781   : > { %4049 = vmatmul.mubr.msk.bf16.vlgmr.msra.gmra.mrb[16].mxu1 %vm1581_vm3, %v4865_v29  ;;  %4055 = vmatmul.mubr.msk.bf16.vlgmr.msra.gmra.mrb[16].mxu0 %vm1581_vm3, %v4863_v28  ;;  %v4346_v29 = vld [vmem:[%s4634_s27 + $0x18] sm:$0xff]  }
 0x782   : > { %4070 = vmatprep.mubr.msk.bf16.mxu1 %vm4540_vm0, %v4539_v2  ;;  %4078 = vmatprep.mubr.msk.bf16.mxu0 %vm4540_vm0, %v4539_v2 }
 0x783   : > { %4059 = vmatpush3.bf16.msra.mxu1 %v4343_v40  ;;  %4075 = vmatpush3.bf16.msra.mxu0 %v4349_v6 }
 0x784   : > { %4060 = vmatprep.subr.bf16.mxu1 %v4539_v2  ;;  %4076 = vmatprep.subr.bf16.mxu0 %v4539_v2 }
 0x787   : > { %4061 = vmatpush3.bf16.msra.mxu1 %v4344_v41  ;;  %4077 = vmatpush3.bf16.msra.mxu0 %v4350_v7 }
 0x788   : > { %4062 = vmatprep.subr.bf16.mxu1 %v4539_v2  ;;  %4082 = vmatprep.subr.bf16.mxu0 %v4539_v2 }
 0x78b   : > { %4063 = vmatpush3.bf16.msra.mxu1 %v4345_v42 }
 0x78c   : > { %4064 = vmatprep.subr.bf16.mxu1 %v4539_v2 }
 0x78f   : > { %4065 = vmatpush3.bf16.msra.mxu1 %v4346_v29 }
 0x790   : > { %4066 = vmatprep.subr.bf16.mxu1 %v4539_v2 }
 0x793   : > { %4067 = vmatpush3.bf16.msra.mxu1 %v4347_v43 }
 0x794   : > { %4068 = vmatprep.subr.bf16.mxu1 %v4539_v2 }
 0x797   : > { %4069 = vmatpush3.bf16.msra.mxu1 %v4348_v44 }
 0x798   : > { %4092 = vmatprep.subr.bf16.mxu1 %v4539_v2 }
 0x854   : > { %v2025_v45 = vpop.f32.mrb[16].mxu1  ;;  %v2066_v46 = vpop.f32.mrb[16].mxu0 }
 0x855   : > { %v4050_v47 = vpop.f32.mrb[17].mxu1  ;;  %v4056_v48 = vpop.f32.mrb[17].mxu0 }
 0x856   : > { %v2028_v49 = vpop.f32.mrb[18].mxu1  ;;  %v2069_v50 = vpop.f32.mrb[18].mxu0 }
 0x857   : > { %v4323_v51 = vpack.i.bf16 %v2028_v49, %v2025_v45  ;;  %v4051_v52 = vpop.f32.mrb[19].mxu1  ;;  %v4328_v53 = vpack.i.bf16 %v2069_v50, %v2066_v46  ;;  %v4057_v54 = vpop.f32.mrb[19].mxu0 }
 0x859   : > { %4324 = vrot.lane.b32.xlu0 %v4323_v51, %s4541_s5 }
 0x85d   : > { %4329 = vrot.lane.b32.xlu0 %v4328_v53, %s4544_s6  ;;  %s5289_s6 = sld [smem:[#allocation18_spill]]  ;;  %v2364_v53 = vlaneseq }
 0x85f   : > { %v2365_v55 = vand.u32 127, %v2364_v53 }
 0x861   : > { %1983 = vrot.lane.b32.xlu0 %v1981_v34, %s4541_s5  ;;  %s5290_s5 = sld [smem:[#allocation20_spill]] }
 0x863   : > { %v3816_v8 = vld [vmem:[%s5289_s6] ss:$0 sm:$0xff]  ;;  %s5292_s6 = sld [smem:[#allocation9_spill]] }
 0x867   : > { %v4351_v21 = vld [vmem:[%s5290_s5] sm:$0xff]   ;;  %v4352_v23 = vld [vmem:[%s5290_s5 + $0x8] sm:$0xff]   ;;  %v4353_v25 = vld [vmem:[%s5290_s5 + $0x10] sm:$0xff]  }
 0x869   : > { %s1418_s5 = scalar_lea.vmem %s5292_s6, %s4835_s10  ;;  %s5297_s6 = sld [smem:[#allocation23_spill]] }
 0x86a   : > { %v2349_v41 = vld [vmem:[%s1418_s5] sm:$0xf]  ;;  %s5296_s5 = sld [smem:[#allocation26_spill]] }
 0x8cb   : > { %v4325_v56 = vpop.permute.xlu0 %4324 }
 0x8cc   : > { %v4327_v57 = vunpack.i.h.bf16 %v4325_v56  ;;  %v4326_v58 = vunpack.i.l.bf16 %v4325_v56  ;;  %v2366_v56 = vcvt.s32.f32 %v2365_v55 }
 0x8ce   : > { %v2096_v59 = vsel %vm1467_vm1, %v4887_v39, %v4327_v57  ;;  %v2095_v60 = vsel %vm1467_vm1, %v4885_v35, %v4326_v58  ;;  %v2367_v57 = vmul.f32 1e-06, %v2366_v56 }
 0x8cf   : > { %v4330_v63 = vpop.permute.xlu0 %4329  ;;  %v2098_v3 = vsel %vm2097_vm8, %v2095_v60, %v4321_v62  ;;  %v2099_v4 = vsel %vm2097_vm8, %v2096_v59, %v4322_v61 }
 0x8d0   : > { %v4332_v0 = vunpack.i.h.bf16 %v4330_v63  ;;  %v4331_v1 = vunpack.i.l.bf16 %v4330_v63 }
 0x8d2   : > { %v2102_v5 = vsel %vm2100_vm9, %v2099_v4, %v4332_v0  ;;  %v2101_v39 = vsel %vm2100_vm9, %v2098_v3, %v4331_v1 }
 0x8d3   : > { %v2115_v35 = vpack.c.bf16 %v2102_v5, %v2101_v39  ;;  %v1984_v24 = vpop.permute.xlu0 %1983 }
 0x8d4   : > { %v4974_v26 = vsel %vm1467_vm1, %v4858_v18, %v1984_v24  ;;  %v4357_v24 = vld [vmem:[%s5295_s26] sm:$0xff]  }
 0x8d5   : > { %4071 = vmatmul.mubr.msk.bf16.vlgmr.msra.gmra.mrb[20].mxu1 %vm2159_vm10, %v2115_v35  ;;  %v4978_v27 = vpack.c.bf16 %v4974_v26, %v4974_v26 }
 0x8d6   : > { %4094 = vmatprep.mubr.msk.bf16.mxu1 %vm4540_vm0, %v4539_v2 }
 0x8d7   : > { %v2492_v3 = vsel %vm1585_vm2, %v4978_v27, 0 }
 0x9a8   : > { %v2197_v9 = vpop.f32.mrb[20].mxu1 }
 0x9a9   : > { %v2198_v10 = vadd.f32 %v3816_v8, %v2197_v9  ;;  %v4072_v11 = vpop.f32.mrb[21].mxu1 }
 0x9aa   : > { %v2200_v12 = vpop.f32.mrb[22].mxu1 }
 0x9ab   : > { %v2201_v15 = vadd.f32 %v3816_v8, %v2200_v12  ;;  %v4073_v16 = vpop.f32.mrb[23].mxu1  ;;  %v2204_v17 = vmax.f32 %v2198_v10, 0.0  ;;  %v4354_v12 = vld [vmem:[%s5294_s3] sm:$0xff]  }
 0x9ad   : > { %v2205_v19 = vmax.f32 %v2201_v15, 0.0  ;;  %v4355_v15 = vld [vmem:[%s5294_s3 + $0x8] sm:$0xff]  }
 0x9af   : > { %v2210_v22 = vpack.c.bf16 %v2205_v19, %v2204_v17 }
 0x9b1   : > { %4079 = vmatmul.mubr.msk.bf16.vlgmr.msra.gmra.mrb[20].mxu0 %vm1467_vm1, %v2210_v22 }
 0x9b2   : > { %4083 = vmatpush3.bf16.msra.mxu0 %v4351_v21  ;;  %4088 = vmatprep.mubr.msk.bf16.mxu0 %vm4540_vm0, %v4539_v2 }
 0x9b3   : > { %4084 = vmatprep.subr.bf16.mxu0 %v4539_v2 }
 0x9b6   : > { %4085 = vmatpush3.bf16.msra.mxu0 %v4352_v23  ;;  %v4356_v23 = vld [vmem:[%s5294_s3 + $0x10] sm:$0xff]   ;;  %s5298_s3 = sld [smem:[#allocation28_spill]] }
 0x9b7   : > { %4086 = vmatprep.subr.bf16.mxu0 %v4539_v2 }
 0x9ba   : > { %4087 = vmatpush3.bf16.msra.mxu0 %v4353_v25 }
 0x9bb   : > { %4098 = vmatprep.subr.bf16.mxu0 %v4539_v2 }
 0x9bd   : > { %4089 = vmatmul.mubr.msk.bf16.vlgmr.msra.gmra.mrb[24].mxu0 %vm2097_vm8, %v4978_v27 }
 0x9be   : > { %4100 = vmatprep.mubr.msk.bf16.mxu0 %vm4540_vm0, %v4539_v2 }
 0xa84   : > { %v2267_v31 = vpop.f32.mrb[20].mxu0 }
 0xa85   : > { %v4080_v32 = vpop.f32.mrb[21].mxu0  ;;  %v4986_v34 = vadd.f32 %v3824_v30, %v2267_v31 }
 0xa86   : > { %v2270_v33 = vpop.f32.mrb[22].mxu0 }
 0xa87   : > { %v4988_v18 = vadd.f32 %v3824_v30, %v2270_v33  ;;  %v4081_v36 = vpop.f32.mrb[23].mxu0 }
 0xa88   : > { %v4358_v36 = vld [vmem:[%s5295_s26 + $0x8] sm:$0xff]  }
 0xa89   : > { %v3127_v37 = vpack.c.bf16 %v4988_v18, %v4986_v34 }
 0xa90   : > { %v2343_v40 = vpop.f32.mrb[24].mxu0 }
 0xa91   : > { %v2344_v42 = vadd.f32 %v3828_v38, %v2343_v40  ;;  %v4090_v29 = vpop.f32.mrb[25].mxu0  ;;  %v4362_v38 = vld [vmem:[%s5296_s5] sm:$0xff]   ;;  %v4363_v40 = vld [vmem:[%s5296_s5 + $0x8] sm:$0xff]  }
 0xa92   : > { %v2346_v43 = vpop.f32.mrb[26].mxu0 }
 0xa93   : > { %v2350_v44 = vadd.f32 %v2349_v41, %v2344_v42  ;;  %v4091_v45 = vpop.f32.mrb[27].mxu0  ;;  %v3837_v41 = vld [vmem:[%s5297_s6] ss:$0 sm:$0xff]  ;;  %s5300_s6 = sld [smem:[#allocation30_spill]] }
 0xa95   : > { %v2351_v46 = vmul.f32 2.0, %v2350_v44 }
 0xa97   : > { %v2353_v47 = vsel %vm2352_vm11, %v2351_v46, -inf }
 0xa98   : > { %2354 = vmax.xlane.f32.xlu0 %v2353_v47  ;;  %v4359_v47 = vld [vmem:[%s5298_s3] sm:$0xff]  }
 0xb25   : > { %v2355_v48 = vpop.xlane.xlu0 %2354 }
 0xb26   : > { %v2356_v49 = vsub.f32 %v2351_v46, %v2355_v48 }
 0xb28   : > { %v2357_v50 = vmul.f32 1.442695, %v2356_v49  ;;  %v4360_v49 = vld [vmem:[%s5298_s3 + $0x8] sm:$0xff]  }
 0xb2a   : > { %4391 = vpow2.f32 %v2357_v50  ;;  %v4361_v50 = vld [vmem:[%s5298_s3 + $0x10] sm:$0xff]   ;;  %s5301_s3 = sld [smem:[#allocation27_spill]] }
 0xb34   : > { %v4392_v51 = vpop.eup %4391 }
 0xb35   : > { %v2359_v52 = vsel %vm2352_vm11, %v4392_v51, 0.0 }
 0xb36   : > { %2360 = vadd.xlane.f32.xlu1 %v2359_v52  ;;  %v3842_v52 = vld [vmem:[%s5299_s8] ss:$0 sm:$0xff]  ;;  %s5302_s8 = sld [smem:[#allocation29_spill]] }
 0xbc3   : > { %v2361_v54 = vpop.xlane.xlu1 %2360 }
 0xbc4   : > { %4393 = vrcp.f32 %v2361_v54 }
 0xbce   : > { %v4394_v58 = vpop.eup %4393 }
 0xbcf   : > { %v2363_v59 = vmul.f32 %v4394_v58, %v4392_v51  ;;  %v4364_v51 = vld [vmem:[%s5296_s5 + $0x10] sm:$0xff]   ;;  %s5303_s5 = sld [smem:[#allocation31_spill]] }
 0xbd1   : > { %v2368_v60 = vsub.f32 %v2363_v59, %v2367_v57  ;;  %v4365_v57 = vld [vmem:[%s5300_s6] sm:$0xff]  }
 0xbd3   : > { %v2369_v61 = vsel %vm2352_vm11, %v2368_v60, -inf }
 0xbd4   : > { %2370 = vmax.xlane.f32.xlu1 %v2369_v61  ;;  %v4367_v61 = vld [vmem:[%s5300_s6 + $0x10] sm:$0xff]  }
 0xc61   : > { %v2371_v62 = vpop.xlane.xlu1 %2370 }
 0xc62   : > { %vm2372_vm12 = vcmp.ge.f32.partialorder %v2368_v60, %v2371_v62  ;;  %v4366_v60 = vld [vmem:[%s5300_s6 + $0x8] sm:$0xff]   ;;  %s5308_s6 = sld [smem:[#allocation36_spill]] }
 0xc63   : > { %v4999_v63 = vsel %vm2372_vm12, 1.0, %v4539_v2 }
 0xc64   : > { %v2375_v0 = vpack.c.bf16 %v4999_v63, %v4999_v63 }
 0xc66   : > { %v2377_v1 = vsel %vm1585_vm2, %v2375_v0, 0 }
 0xc67   : > { %4093 = vmatpush3.bf16.msra.mxu1 %v2377_v1 }
 0xc68   : > { %4104 = vmatprep.subr.bf16.mxu1 %v4539_v2 }
 0xc6a   : > { %4095 = vmatmul.mubr.msk.bf16.vlgmr.msra.gmra.mrb[24].mxu1 %vm1581_vm3, %v4863_v28 }
 0xc6b   : > { %4105 = vmatpush3.bf16.msra.mxu1 %v2492_v3  ;;  %4106 = vmatprep.mubr.msk.bf16.mxu1 %vm4540_vm0, %v4539_v2 }
 0xc6c   : > { %4120 = vmatprep.subr.bf16.mxu1 %v4539_v2 }
 0xd3d   : > { %v2413_v4 = vpop.f32.mrb[24].mxu1 }
 0xd3e   : > { %v4096_v5 = vpop.f32.mrb[25].mxu1  ;;  %v2420_v35 = vmul.f32 %v2413_v4, %v4904_v13  ;;  %v3846_v4 = vld [vmem:[%s5301_s3] ss:$0 sm:$0xff]  ;;  %s5304_s3 = sld [smem:[#allocation34_spill]] }
 0xd3f   : > { %v2416_v39 = vpop.f32.mrb[26].mxu1 }
 0xd40   : > { %v2421_v6 = vmul.f32 %v2416_v39, %v4906_v14  ;;  %v4097_v7 = vpop.f32.mrb[27].mxu1 }
 0xd42   : > { %v2422_v28 = vpack.c.bf16 %v2421_v6, %v2420_v35 }
 0xd44   : > { %v2424_v8 = vsel %vm1878_vm6, %v2422_v28, 0 }
 0xd45   : > { %4099 = vmatpush3.bf16.msra.mxu0 %v2424_v8  ;;  %v3851_v8 = vld [vmem:[%s5302_s8] ss:$0 sm:$0xff]  ;;  %s5306_s8 = sld [smem:[#allocation35_spill]] }
 0xd46   : > { %4110 = vmatprep.subr.bf16.mxu0 %v4539_v2 }
 0xd48   : > { %4101 = vmatmul.mubr.msk.bf16.vlgmr.msra.gmra.mrb[28].mxu0 %vm1874_vm7, %v4912_v20 }
 0xd49   : > { %4116 = vmatprep.mubr.msk.bf16.mxu0 %vm4540_vm0, %v4539_v2  ;;  %4111 = vmatpush3.bf16.msra.mxu0 %v4354_v12 }
 0xd4a   : > { %4112 = vmatprep.subr.bf16.mxu0 %v4539_v2 }
 0xd4d   : > { %4113 = vmatpush3.bf16.msra.mxu0 %v4355_v15 }
 0xd4e   : > { %4114 = vmatprep.subr.bf16.mxu0 %v4539_v2 }
 0xd51   : > { %4115 = vmatpush3.bf16.msra.mxu0 %v4356_v23 }
 0xd52   : > { %4128 = vmatprep.subr.bf16.mxu0 %v4539_v2 }
 0xe1b   : > { %v2460_v9 = vpop.f32.mrb[28].mxu0 }
 0xe1c   : > { %v4102_v10 = vpop.f32.mrb[29].mxu0  ;;  %v2466_v13 = vsel %vm2352_vm11, %v2460_v9, 0.0 }
 0xe1d   : > { %2467 = vadd.xlane.f32.xlu1 %v2466_v13  ;;  %v2463_v14 = vpop.f32.mrb[30].mxu0  ;;  %v3856_v13 = vld [vmem:[%s5303_s5] ss:$0 sm:$0xff]  ;;  %s5305_s5 = sld [smem:[#allocation32_spill]] }
 0xe1e   : > { %v4103_v11 = vpop.f32.mrb[31].mxu0 }
 0xe23   : > { %v4373_v34 = vld [vmem:[%s5305_s5 + $0x20] sm:$0xff]  }
 0xeaa   : > { %v2468_v16 = vpop.xlane.xlu1 %2467 }
 0xeab   : > { %v2469_v20 = vadd.f32 1e-06, %v2468_v16 }
 0xead   : > { %4395 = vrcp.f32 %v2469_v20 }
 0xeb7   : > { %v4396_v17 = vpop.eup %4395 }
 0xeb8   : > { %v2471_v19 = vmul.f32 %v4396_v17, %v2460_v9 }
 0xeba   : > { %v2472_v21 = vpack.c.bf16 %v2471_v19, %v2471_v19  ;;  %v3862_v19 = vadd.f32 -1.0, %v4999_v63 }
 0xebc   : > { %2473 = vxpose.xlu0.c.b16.start.end [1/1] (short) (narrow) %v2472_v21, 16 }
 0xf22   : > { %v2481_v22 = vpop.trf.xlu0 }
 0xf23   : > { %4107 = vmatmul.mubr.msk.bf16.vlgmr.msra.gmra.mrb[28].mxu1 %vm1581_vm3, %v2481_v22  ;;  %v2944_v22 = vmul.f32 1e+09, %v3862_v19 }
 0xf24   : > { %4124 = vmatprep.mubr.msk.bf16.mxu1 %vm4540_vm0, %v4539_v2  ;;  %4121 = vmatpush3.bf16.msra.mxu1 %v4357_v24 }
 0xf25   : > { %4122 = vmatprep.subr.bf16.mxu1 %v4539_v2 }
 0xf28   : > { %4123 = vmatpush3.bf16.msra.mxu1 %v4358_v36 }
 0xf29   : > { %4138 = vmatprep.subr.bf16.mxu1 %v4539_v2 }
 0xff6   : > { %v2528_v25 = vpop.f32.mrb[28].mxu1 }
 0xff7   : > { %v2540_v30 = vpack.c.bf16 %v2528_v25, %v2528_v25  ;;  %v4108_v31 = vpop.f32.mrb[29].mxu1 }
 0xff8   : > { %v2531_v32 = vpop.f32.mrb[30].mxu1 }
 0xff9   : > { %4117 = vmatmul.mubr.msk.bf16.vlgmr.msra.gmra.mrb[32].mxu0 %vm2097_vm8, %v2540_v30  ;;  %v4109_v33 = vpop.f32.mrb[31].mxu1 }
 0xffa   : > { %4134 = vmatprep.mubr.msk.bf16.mxu0 %vm4540_vm0, %v4539_v2  ;;  %4129 = vmatpush3.bf16.msra.mxu0 %v4362_v38 }
 0xffb   : > { %4130 = vmatprep.subr.bf16.mxu0 %v4539_v2 }
 0xffe   : > { %4131 = vmatpush3.bf16.msra.mxu0 %v4363_v40 }
 0xfff   : > { %4132 = vmatprep.subr.bf16.mxu0 %v4539_v2 }
0x1002   : > { %4133 = vmatpush3.bf16.msra.mxu0 %v4364_v51 }
0x1003   : > { %4148 = vmatprep.subr.bf16.mxu0 %v4539_v2 }
0x10cc   : > { %v2603_v42 = vpop.f32.mrb[32].mxu0 }
0x10cd   : > { %v2604_v29 = vadd.f32 %v3837_v41, %v2603_v42  ;;  %v4118_v43 = vpop.f32.mrb[33].mxu0 }
0x10ce   : > { %v2606_v44 = vpop.f32.mrb[34].mxu0 }
0x10cf   : > { %v2609_v45 = vmax.f32 %v2604_v29, 0.0  ;;  %v4119_v46 = vpop.f32.mrb[35].mxu0 }
0x10d1   : > { %v2614_v48 = vpack.c.bf16 %v2609_v45, %v2609_v45 }
0x10d3   : > { %4125 = vmatmul.mubr.msk.bf16.vlgmr.msra.gmra.mrb[32].mxu1 %vm1467_vm1, %v2614_v48 }
0x10d4   : > { %4139 = vmatpush3.bf16.msra.mxu1 %v4359_v47  ;;  %4144 = vmatprep.mubr.msk.bf16.mxu1 %vm4540_vm0, %v4539_v2 }
0x10d5   : > { %4140 = vmatprep.subr.bf16.mxu1 %v4539_v2 }
0x10d8   : > { %4141 = vmatpush3.bf16.msra.mxu1 %v4360_v49 }
0x10d9   : > { %4142 = vmatprep.subr.bf16.mxu1 %v4539_v2 }
0x10dc   : > { %4143 = vmatpush3.bf16.msra.mxu1 %v4361_v50 }
0x10dd   : > { %4158 = vmatprep.subr.bf16.mxu1 %v4539_v2 }
0x10df   : > { %4145 = vmatmul.mubr.msk.bf16.vlgmr.msra.gmra.mrb[36].mxu1 %vm2097_vm8, %v4978_v27 }
0x10e0   : > { %4160 = vmatprep.mubr.msk.bf16.mxu1 %vm4540_vm0, %v4539_v2 }
0x11a6   : > { %v2671_v53 = vpop.f32.mrb[32].mxu1 }
0x11a7   : > { %v5058_v54 = vadd.f32 %v3842_v52, %v2671_v53  ;;  %v4126_v55 = vpop.f32.mrb[33].mxu1 }
0x11a8   : > { %v2674_v56 = vpop.f32.mrb[34].mxu1 }
0x11a9   : > { %v2683_v58 = vpack.c.bf16 %v5058_v54, %v5058_v54  ;;  %v4127_v59 = vpop.f32.mrb[35].mxu1  ;;  %v4368_v56 = vld [vmem:[%s5304_s3] sm:$0xff]   ;;  %s5307_s3 = smov 48  }
0x11aa   : > { %v4370_v59 = vld [vmem:[%s5305_s5 + $0x8] sm:$0xff]  }
0x11ab   : > { %4135 = vmatmul.mubr.msk.bf16.vlgmr.msra.gmra.mrb[36].mxu0 %vm2097_vm8, %v2683_v58  ;;  %v4369_v58 = vld [vmem:[%s5305_s5] sm:$0xff]  }
0x11ac   : > { %4149 = vmatpush3.bf16.msra.mxu0 %v4365_v57  ;;  %4154 = vmatprep.mubr.msk.bf16.mxu0 %vm4540_vm0, %v4539_v2 }
0x11ad   : > { %4150 = vmatprep.subr.bf16.mxu0 %v4539_v2 }
0x11b0   : > { %4151 = vmatpush3.bf16.msra.mxu0 %v4366_v60  ;;  %v4371_v60 = vld [vmem:[%s5305_s5 + $0x10] sm:$0xff]  }
0x11b1   : > { %4152 = vmatprep.subr.bf16.mxu0 %v4539_v2 }
0x11b2   : > { %v2817_v62 = vpop.f32.mrb[36].mxu1 }
0x11b3   : > { %v4146_v0 = vpop.f32.mrb[37].mxu1  ;;  %v2818_v10 = vadd.f32 %v3851_v8, %v2817_v62 }
0x11b4   : > { %v2820_v1 = vpop.f32.mrb[38].mxu1  ;;  %4153 = vmatpush3.bf16.msra.mxu0 %v4367_v61  ;;  %v4372_v61 = vld [vmem:[%s5305_s5 + $0x18] sm:$0xff]   ;;  %s5236_s5 = smov 96  }
0x11b5   : > { %v4147_v3 = vpop.f32.mrb[39].mxu1  ;;  %4170 = vmatprep.subr.bf16.mxu0 %v4539_v2  ;;  %v2894_v14 = vpack.c.bf16 %v2818_v10, %v2818_v10  ;;  %v3871_v1 = vld [vmem:[%s5306_s8] ss:$0 sm:$0xff]  ;;  %s5309_s8 = sld [smem:[#allocation38_spill]] }
0x11b7   : > { %4155 = vmatmul.mubr.msk.bf16.vlgmr.msra.gmra.mrb[40].mxu0 %vm2097_vm8, %v4978_v27 }
0x11b8   : > { %4180 = vmatprep.mubr.msk.bf16.mxu0 %vm4540_vm0, %v4539_v2  ;;  %4171 = vmatpush3.bf16.msra.mxu0 %v4369_v58 }
0x11b9   : > { %4172 = vmatprep.subr.bf16.mxu0 %v4539_v2 }
0x11bc   : > { %4173 = vmatpush3.bf16.msra.mxu0 %v4370_v59 }
0x11bd   : > { %4174 = vmatprep.subr.bf16.mxu0 %v4539_v2 }
0x11c0   : > { %4175 = vmatpush3.bf16.msra.mxu0 %v4371_v60 }
0x11c1   : > { %4176 = vmatprep.subr.bf16.mxu0 %v4539_v2 }
0x11c4   : > { %4177 = vmatpush3.bf16.msra.mxu0 %v4372_v61  ;;  %v3876_v61 = vld [vmem:[%s5314_s14] ss:$0 sm:$0xff]  ;;  %s5316_s14 = sld [smem:[#allocation11_spill]] }
0x11c5   : > { %4178 = vmatprep.subr.bf16.mxu0 %v4539_v2 }
0x11c8   : > { %4179 = vmatpush3.bf16.msra.mxu0 %v4373_v34 }
0x11c9   : > { %4204 = vmatprep.subr.bf16.mxu0 %v4539_v2 }
0x127e   : > { %v2746_v5 = vpop.f32.mrb[36].mxu0 }
0x127f   : > { %v2747_v39 = vadd.f32 %v3846_v4, %v2746_v5  ;;  %v4136_v35 = vpop.f32.mrb[37].mxu0 }
0x1280   : > { %v2749_v6 = vpop.f32.mrb[38].mxu0 }
0x1281   : > { %v2895_v7 = vpack.c.bf16 %v2747_v39, %v2747_v39  ;;  %v4137_v28 = vpop.f32.mrb[39].mxu0 }
0x1283   : > { %v2900_v9 = vsel %vm1467_vm1, %v2895_v7, 0 }
0x1284   : > { %4159 = vmatpush3.bf16.xpose.msra.mxu1 %v2900_v9 }
0x1285   : > { %4164 = vmatprep.subr.bf16.mxu1 %v4539_v2 }
0x128a   : > { %v2888_v27 = vpop.f32.mrb[40].mxu0 }
0x128b   : > { %v2889_v11 = vadd.f32 %v3856_v13, %v2888_v27  ;;  %v4156_v12 = vpop.f32.mrb[41].mxu0  ;;  %4161 = vmatmul.mubr.msk.bf16.vlgmr.msra.gmra.mrb[40].mxu1 %vm1467_vm1, %v2894_v14  ;;  %v4374_v14 = vld [vmem:[%s5308_s6] sm:$0xff]  }
0x128c   : > { %v2891_v15 = vpop.f32.mrb[42].mxu0  ;;  %4166 = vmatprep.mubr.msk.bf16.mxu1 %vm4540_vm0, %v4539_v2 }
0x128d   : > { %v2966_v16 = vpack.c.bf16 %v2889_v11, %v2889_v11  ;;  %v4157_v20 = vpop.f32.mrb[43].mxu0  ;;  %v4375_v15 = vld [vmem:[%s5308_s6 + $0x8] sm:$0xff]   ;;  %s5311_s6 = smov 96  }
0x128f   : > { %v2987_v17 = vsel %vm1585_vm2, %v2966_v16, 0 }
0x1290   : > { %4165 = vmatpush3.bf16.msra.mxu1 %v2987_v17  ;;  %v4377_v17 = vld [vmem:[%s5309_s8 + $0x8] sm:$0xff]  }
0x1291   : > { %4184 = vmatprep.subr.bf16.mxu1 %v4539_v2 }
0x135e   : > { %v2936_v21 = vpop.f32.mrb[40].mxu1 }
0x135f   : > { %v2942_v23 = vmul.f32 0.17677669, %v2936_v21  ;;  %v4162_v24 = vpop.f32.mrb[41].mxu1 }
0x1360   : > { %v2939_v25 = vpop.f32.mrb[42].mxu1 }
0x1361   : > { %v2945_v30 = vadd.f32 %v2944_v22, %v2942_v23  ;;  %v4163_v31 = vpop.f32.mrb[43].mxu1  ;;  %v4378_v23 = vld [vmem:[%s5309_s8 + $0x10] sm:$0xff]  }
0x1363   : > { %v2946_v32 = vsel %vm2352_vm11, %v2945_v30, -inf }
0x1364   : > { %v2947_v33 = vrot.slane %v2946_v32, 4 }
0x1366   : > { %v2948_v36 = vmax.f32 %v2946_v32, %v2947_v33  ;;  %v4379_v33 = vld [vmem:[%s5309_s8 + $0x18] sm:$0xff]  }
0x1368   : > { %v2949_v38 = vrot.slane %v2948_v36, 2 }
0x136a   : > { %v2950_v40 = vmax.f32 %v2948_v36, %v2949_v38  ;;  %v4380_v38 = vld [vmem:[%s5309_s8 + $0x20] sm:$0xff]  }
0x136c   : > { %v2951_v41 = vrot.slane %v2950_v40, 1 }
0x136e   : > { %v2952_v42 = vmax.f32 %v2950_v40, %v2951_v41 }
0x1370   : > { %v2953_v29 = vsub.f32 %v2945_v30, %v2952_v42 }
0x1372   : > { %v2954_v43 = vmul.f32 1.442695, %v2953_v29 }
0x1374   : > { %4397 = vpow2.f32 %v2954_v43 }
0x137e   : > { %v4398_v44 = vpop.eup %4397 }
0x137f   : > { %v2956_v45 = vsel %vm2352_vm11, %v4398_v44, 0.0 }
0x1380   : > { %v2957_v46 = vrot.slane %v2956_v45, 4 }
0x1382   : > { %v2958_v47 = vadd.f32 %v2957_v46, %v2956_v45 }
0x1384   : > { %v2959_v48 = vrot.slane %v2958_v47, 2 }
0x1386   : > { %v2960_v49 = vadd.f32 %v2959_v48, %v2958_v47  ;;  %v3884_v47 = vld [vmem:[%s5313_s12] ss:$0 sm:$0xff]  ;;  %s5155_s12 = scalar_lea.vmem %s4769_s23, %s4851_s16  ;;  %s1385_s16 = sand.u32 1, %s4485_s28  }
0x1388   : > { %v2961_v50 = vrot.slane %v2960_v49, 1 }
0x138a   : > { %v2962_v51 = vadd.f32 %v2961_v50, %v2960_v49  ;;  %v3456_v49 = vld [vmem:[%s1423_s13] sm:$0xff] }
0x138c   : > { %4399 = vrcp.f32 %v2962_v51 }
0x1396   : > { %v4400_v52 = vpop.eup %4399 }
0x1397   : > { %v2964_v53 = vmul.f32 %v4400_v52, %v4398_v44 }
0x1399   : > { %v2965_v55 = vpack.c.bf16 %v2964_v53, %v2964_v53  ;;  %v3457_v53 = vld [vmem:[%s1423_s13 + $0x8] sm:$0xf]  ;;  %s4546_s13 = smov 98  }
0x139b   : > { %2967 = vxpose.xlu1.c.b16.start.end [1/1] (short) (narrow) %v2965_v55, 16 }
0x1401   : > { %v2975_v57 = vpop.trf.xlu1 }
0x1402   : > { %4167 = vmatmul.mubr.msk.bf16.vlgmr.msra.gmra.mrb[44].mxu1 %vm1581_vm3, %v2975_v57 }
0x1403   : > { %4185 = vmatpush3.bf16.msra.mxu1 %v4368_v56  ;;  %4186 = vmatprep.mubr.msk.bf16.mxu1 %vm4540_vm0, %v4539_v2 }
0x1404   : > { %4190 = vmatprep.subr.bf16.mxu1 %v4539_v2 }
0x140a   : > { %4187 = vmatmul.mubr.msk.bf16.vlgmr.msra.gmra.mrb[48].mxu1 %vm1788_vm5, %v3127_v37 }
0x140b   : > { %4200 = vmatprep.mubr.msk.bf16.mxu1 %vm4540_vm0, %v4539_v2 }
0x14d5   : > { %v3023_v18 = vpop.f32.mrb[44].mxu1 }
0x14d6   : > { %3030 = vrot.lane.b32.xlu0 %v3023_v18, %s5307_s3  ;;  %v4168_v37 = vpop.f32.mrb[45].mxu1 }
0x14d7   : > { %v3026_v62 = vpop.f32.mrb[46].mxu1 }
0x14d8   : > { %v4169_v0 = vpop.f32.mrb[47].mxu1 }
0x14dd   : > { %v3178_v3 = vpop.f32.mrb[48].mxu1 }
0x14de   : > { %v3179_v4 = vadd.f32 %v3871_v1, %v3178_v3  ;;  %v4188_v5 = vpop.f32.mrb[49].mxu1 }
0x14df   : > { %v3181_v39 = vpop.f32.mrb[50].mxu1 }
0x14e0   : > { %4401 = vtanh.f32 %v3179_v4  ;;  %v3182_v35 = vadd.f32 %v3871_v1, %v3181_v39  ;;  %v4189_v6 = vpop.f32.mrb[51].mxu1  ;;  %v3874_v8 = vmul.f32 -1.442695, %v3179_v4 }
0x14e2   : > { %4403 = vtanh.f32 %v3182_v35  ;;  %v3875_v9 = vmul.f32 -1.442695, %v3182_v35 }
0x14e3   : > { %4405 = vpow2.f32 %v3874_v8  ;;  %v4381_v8 = vld [vmem:[%s5315_s9] sm:$0xff]  }
0x14e4   : > { %4407 = vpow2.f32 %v3875_v9  ;;  %v4382_v9 = vld [vmem:[%s5315_s9 + $0x8] sm:$0xff]  }
0x14ea   : > { %v4402_v7 = vpop.eup %4401 }
0x14eb   : > { %3203 = vrot.lane.b32.xlu1 %v4402_v7, %s5236_s5 }
0x14ec   : > { %v4404_v28 = vpop.eup %4403 }
0x14ed   : > { %v4406_v11 = vpop.eup %4405 }
0x14ee   : > { %v4408_v12 = vpop.eup %4407  ;;  %v3191_v16 = vadd.f32 1.0, %v4406_v11 }
0x14ef   : > { %3205 = vrot.lane.b32.xlu1 %v4404_v28, %s5236_s5  ;;  %v3192_v20 = vadd.f32 1.0, %v4408_v12  ;;  %s5310_s5 = sld [smem:[#allocation33_spill]] }
0x14f0   : > { %4409 = vrcp.f32 %v3191_v16 }
0x14f1   : > { %4411 = vrcp.f32 %v3192_v20 }
0x14f5   : > { %v3864_v41 = vld [vmem:[%s5310_s5] ss:$0 sm:$0xff]  ;;  %s3776_s5 = sshll.u32 %s1385_s16, 2 }
0x14fa   : > { %v4410_v19 = vpop.eup %4409 }
0x14fb   : > { %v4412_v21 = vpop.eup %4411  ;;  %v3199_v24 = vsub.f32 1.0, %v4410_v19 }
0x14fc   : > { %v3200_v25 = vsub.f32 1.0, %v4412_v21 }
0x1548   : > { %v3031_v10 = vpop.permute.xlu0 %3030 }
0x1549   : > { %v3033_v13 = vsel %vm2097_vm8, %v5058_v54, %v3031_v10  ;;  %v4376_v54 = vld [vmem:[%s5309_s8] sm:$0xff]   ;;  %s3532_s8 = scalar_lea.sflag [#allocation4], %s1385_s16 }
0x154a   : > { %v3044_v27 = vpack.c.bf16 %v3033_v13, %v3033_v13  ;;  %4191 = vmatpush3.bf16.msra.mxu1 %v4376_v54 }
0x154b   : > { %4192 = vmatprep.subr.bf16.mxu1 %v4539_v2 }
0x154c   : > { %4181 = vmatmul.mubr.msk.bf16.vlgmr.msra.gmra.mrb[44].mxu0 %vm2100_vm9, %v3044_v27 }
0x154d   : > { %4205 = vmatpush3.bf16.msra.mxu0 %v4374_v14  ;;  %4208 = vmatprep.mubr.msk.bf16.mxu0 %vm4540_vm0, %v4539_v2 }
0x154e   : > { %4206 = vmatprep.subr.bf16.mxu0 %v4539_v2  ;;  %4193 = vmatpush3.bf16.msra.mxu1 %v4377_v17 }
0x154f   : > { %4194 = vmatprep.subr.bf16.mxu1 %v4539_v2 }
0x1551   : > { %4207 = vmatpush3.bf16.msra.mxu0 %v4375_v15 }
0x1552   : > { %4212 = vmatprep.subr.bf16.mxu0 %v4539_v2  ;;  %4195 = vmatpush3.bf16.msra.mxu1 %v4378_v23 }
0x1553   : > { %4196 = vmatprep.subr.bf16.mxu1 %v4539_v2 }
0x1556   : > { %4197 = vmatpush3.bf16.msra.mxu1 %v4379_v33 }
0x1557   : > { %4198 = vmatprep.subr.bf16.mxu1 %v4539_v2 }
0x155a   : > { %4199 = vmatpush3.bf16.msra.mxu1 %v4380_v38 }
0x155d   : > { %v3204_v22 = vpop.permute.xlu1 %3203 }
0x155e   : > { %v3209_v31 = vmul.f32 %v3204_v22, %v3199_v24 }
0x1561   : > { %v3206_v30 = vpop.permute.xlu1 %3205 }
0x1562   : > { %v5127_v32 = vmul.f32 %v3206_v30, %v3200_v25  ;;  %v3888_v25 = vld [vmem:[%s5317_s7] ss:$0 sm:$0xff] }
0x1564   : > { %v3319_v36 = vpack.c.bf16 %v5127_v32, %v3209_v31 }
0x1566   : > { %3328 = vrot.lane.b32.xlu1 %v3319_v36, %s5311_s6 }
0x15d8   : > { %v3329_v40 = vpop.permute.xlu1 %3328 }
0x15d9   : > { %4209 = vmatmul.mubr.msk.bf16.vlgmr.msra.gmra.mrb[48].mxu0 %vm1467_vm1, %v3329_v40 }
0x15da   : > { %4216 = vmatprep.mubr.msk.bf16.mxu0 %vm4540_vm0, %v4539_v2  ;;  %4213 = vmatpush3.bf16.msra.mxu0 %v4381_v8  ;;  %vm3489_vm0 = vcmask 10240  }
0x15db   : > { %4214 = vmatprep.subr.bf16.mxu0 %v4539_v2 }
0x15de   : > { %4215 = vmatpush3.bf16.msra.mxu0 %v4382_v9 }
0x161f   : > { %v3119_v42 = vpop.f32.mrb[44].mxu0 }
0x1620   : > { %v3120_v29 = vadd.f32 %v3864_v41, %v3119_v42  ;;  %v4182_v43 = vpop.f32.mrb[45].mxu0 }
0x1621   : > { %v3122_v44 = vpop.f32.mrb[46].mxu0 }
0x1622   : > { %v3221_v45 = vpack.c.bf16 %v3120_v29, %v3120_v29  ;;  %v4183_v46 = vpop.f32.mrb[47].mxu0 }
0x1624   : > { %4201 = vmatmul.mubr.msk.bf16.vlgmr.msra.gmra.mrb[52].mxu1 %vm2100_vm9, %v3221_v45 }
0x16ac   : > { %v3379_v48 = vpop.f32.mrb[48].mxu0 }
0x16ad   : > { %v3380_v50 = vadd.f32 %v3884_v47, %v3379_v48  ;;  %v4210_v51 = vpop.f32.mrb[49].mxu0 }
0x16ae   : > { %v3382_v52 = vpop.f32.mrb[50].mxu0 }
0x16af   : > { %v3458_v55 = vadd.f32 %v3456_v49, %v3380_v50  ;;  %v3383_v56 = vadd.f32 %v3884_v47, %v3382_v52  ;;  %v4211_v57 = vpop.f32.mrb[51].mxu0 }
0x16b1   : > { %v3459_v58 = vadd.f32 %v3457_v53, %v3383_v56  ;;  %v3460_v59 = vmul.f32 2.0, %v3458_v55 }
0x16b3   : > { %v3463_v60 = vsel %vm3462_vm13, %v3460_v59, -inf  ;;  %v3461_v12 = vmul.f32 2.0, %v3459_v58 }
0x16b4   : > { %3464 = vmax.xlane.f32.xlu1 %v3463_v60 }
0x16b5   : > { %v3467_v15 = vsel %vm3466_vm14, %v3461_v12, -inf }
0x16f7   : > { %v3296_v34 = vpop.f32.mrb[52].mxu1 }
0x16f8   : > { %v3297_v18 = vadd.f32 %v3876_v61, %v3296_v34  ;;  %v4202_v37 = vpop.f32.mrb[53].mxu1 }
0x16f9   : > { %v3299_v62 = vpop.f32.mrb[54].mxu1 }
0x16fa   : > { %4413 = vtanh.f32 %v3297_v18  ;;  %v4203_v0 = vpop.f32.mrb[55].mxu1  ;;  %v3883_v6 = vmul.f32 -1.442695, %v3297_v18 }
0x1704   : > { %v4414_v1 = vpop.eup %4413 }
0x1705   : > { %3311 = vrot.lane.b32.xlu0 %v4414_v1, %s5311_s6 }
0x1741   : > { %v3465_v3 = vpop.xlane.xlu1 %3464 }
0x1742   : > { %v3470_v4 = vsub.f32 %v3460_v59, %v3465_v3 }
0x1744   : > { %v3472_v5 = vmul.f32 1.442695, %v3470_v4 }
0x1746   : > { %4415 = vpow2.f32 %v3472_v5 }
0x1747   : > { %4417 = vpow2.f32 %v3883_v6 }
0x1750   : > { %v4416_v39 = vpop.eup %4415 }
0x1751   : > { %v3476_v35 = vsel %vm3462_vm13, %v4416_v39, 0.0  ;;  %v4418_v7 = vpop.eup %4417 }
0x1752   : > { %3477 = vadd.xlane.f32.xlu1 %v3476_v35  ;;  %v3305_v28 = vadd.f32 1.0, %v4418_v7 }
0x1754   : > { %4419 = vrcp.f32 %v3305_v28 }
0x175e   : > { %v4420_v10 = vpop.eup %4419 }
0x175f   : > { %v3309_v13 = vsub.f32 1.0, %v4420_v10 }
0x1763   : > { %3511 = vrot.lane.b32.xlu1 %v3209_v31, %s4546_s13 }
0x1777   : > { %v3312_v14 = vpop.permute.xlu0 %3311 }
0x1778   : > { %v3314_v27 = vmul.f32 %v3312_v14, %v3309_v13 }
0x177a   : > { %v3390_v11 = vpack.c.bf16 %v3314_v27, %v3314_v27 }
0x177c   : > { %3399 = vrot.lane.b32.xlu0 %v3390_v11, %s5311_s6  ;;  %s1427_s6 = scalar_lea.vmem %s5316_s14, %s4835_s10  ;;  %s1387_s14 = scalar_lea.vmem [#allocation3], %s3776_s5 }
0x177d   : > { %v3486_v31 = vld [vmem:[%s1427_s6] sm:$0x7]  ;;  %s3554_s6 = sshll.u32 %s1387_s14, 4  ;;  %s4547_s5 = smov [#allocation3]   ;;  %s3555_s6 = int_to_ptr.vmem [resolvable:$true] %s3554_s6 }
0x177e   : > { %s4431_s9 = scalar_lea.vmem %s3555_s6, 64  ;;  %s4435_s19 = sshll.u32 %s4547_s5, 4  ;;  %s4436_s19 = int_to_ptr.vmem [resolvable:$false] %s4435_s19 }
0x177f   : > { %p4432_p11 = scmp.ne.s32.totalorder %s3555_s6, %s4431_s9  ;;  %s4437_s20 = scalar_lea.vmem %s4436_s19, 128 }
0x1780   : > { %p4438_p0 = scmp.lt.s32.totalorder %s3555_s6, %s4436_s19  ;;  %p4439_p1 = scmp.lt.s32.totalorder %s4437_s20, %s4431_s9 }
0x1781   : > { %p4433_p12 = pnand %p4432_p11, %p4814_p5 }
0x1782   : > { %p4440_p2 = por %p4439_p1, %p4438_p0 }
0x1783   : > { %p4434_p13 = pneg %p4433_p12 }
0x1785   : > { %p4441_p3 = pnand %p4440_p2, %p4434_p13 }
0x179b   : > { %3468 = vmax.xlane.f32.xlu0 %v3467_v15 }
0x17df   : > { %v3478_v16 = vpop.xlane.xlu1 %3477 }
0x17e0   : > { %4421 = vrcp.f32 %v3478_v16 }
0x17e3   : > { %v3512_v54 = vpop.permute.xlu1 %3511 }
0x17ea   : > { %v4422_v2 = vpop.eup %4421 }
0x17eb   : > { %v3484_v20 = vmul.f32 %v4422_v2, %v4416_v39 }
0x17ed   : > { %v3517_v17 = vsel %vm3462_vm13, %v3484_v20, %v3512_v54 }
0x17ee   : > { %v3520_v19 = vsel %vm3519_vm15, %v3517_v17, 0.0  ;;  %v3400_v21 = vpop.permute.xlu0 %3399 }
0x17ef   : > { %3522 = vst [vmem:[%s5155_s12] sm:$0xff] %v3520_v19  ;;  %4217 = vmatmul.mubr.msk.bf16.vlgmr.msra.gmra.mrb[52].mxu0 %vm1467_vm1, %v3400_v21  ;;  %vm3506_vm1 = vcmask 416768  }
0x1828   : > { %v3469_v22 = vpop.xlane.xlu0 %3468 }
0x1829   : > { %v3471_v23 = vsub.f32 %v3461_v12, %v3469_v22 }
0x182b   : > { %v3474_v24 = vmul.f32 1.442695, %v3471_v23 }
0x182d   : > { %4423 = vpow2.f32 %v3474_v24 }
0x1837   : > { %v4424_v43 = vpop.eup %4423 }
0x1838   : > { %v3479_v44 = vsel %vm3466_vm14, %v4424_v43, 0.0 }
0x18c2   : > { %v3450_v30 = vpop.f32.mrb[52].mxu0 }
0x18c3   : > { %v3451_v33 = vadd.f32 %v3888_v25, %v3450_v30  ;;  %v4218_v36 = vpop.f32.mrb[53].mxu0 }
0x18c4   : > { %v3453_v38 = vpop.f32.mrb[54].mxu0 }
0x18c5   : > { %v3487_v40 = vadd.f32 %v3486_v31, %v3451_v33  ;;  %v4219_v41 = vpop.f32.mrb[55].mxu0 }
0x18c7   : > { %v3488_v42 = vmul.f32 2.0, %v3487_v40 }
0x18c9   : > { %v3490_v29 = vsel %vm3489_vm0, %v3488_v42, -inf }
0x18ca   : > { %3491 = vmax.xlane.f32.xlu0 %v3490_v29 }
0x18ce   : > { %3480 = vadd.xlane.f32.xlu0 %v3479_v44 }
0x18e4   : > { %3502 = vrot.lane.b32.xlu0 %v4999_v63, %s5307_s3  ;;  %s3893_s3 = sshll.u32 %s4797_s0, 6 }
0x18e5   : > { %s5177_s7 = scalar_lea.hbm %s4764_s15, %s3893_s3 }
0x18e8   : > { %3525 = vrot.lane.b32.xlu0 %v3314_v27, %s4546_s13 }
0x1957   : > { %v3492_v45 = vpop.xlane.xlu0 %3491 }
0x1958   : > { %v3493_v46 = vsub.f32 %v3488_v42, %v3492_v45 }
0x195a   : > { %v3494_v47 = vmul.f32 1.442695, %v3493_v46 }
0x195b   : > { %v3481_v48 = vpop.xlane.xlu0 %3480 }
0x195c   : > { %4425 = vpow2.f32 %v3494_v47 }
0x195f   : > { %v3503_v49 = vpop.permute.xlu0 %3502 }
0x1960   : > { %v3505_v50 = vsel %vm2097_vm8, %v4974_v26, %v3503_v49 }
0x1961   : > { %v3507_v51 = vsel %vm3506_vm1, %v3505_v50, 0.0 }
0x1962   : > { %3508 = vst [vmem:[%s1387_s14] sm:$0xf] %v3507_v51 }
0x1966   : > { %v4426_v63 = vpop.eup %4425 }
0x1967   : > { %v3496_v52 = vsel %vm3489_vm0, %v4426_v63, 0.0 }
0x1968   : > { %3497 = vadd.xlane.f32.xlu1 %v3496_v52 }
0x1979   : > { %3513 = vrot.lane.b32.xlu1 %v5127_v32, %s4546_s13 }
0x197a   : > { %4444 = shalt.err (!%p4441_p3)
}
0x197b   : > { %s4445_s0 = scalar_lea.hbm %s5177_s7, 64  ;;  %s4449_s13 = scalar_lea.hbm %s4764_s15, 128 }
0x197c   : > { %p4446_p4 = scmp.ne.s32.totalorder %s5177_s7, %s4445_s0  ;;  %p4450_p9 = scmp.lt.u32.totalorder %s5177_s7, %s4764_s15 }
0x197d   : > { %p4451_p10 = scmp.lt.u32.totalorder %s4449_s13, %s4445_s0  ;;  %p4453_p12 = scmp.lt.u32.totalorder %s4445_s0, %s5177_s7 }
0x197e   : > { %p4447_p7 = pnand %p4446_p4, %p4814_p5 }
0x197f   : > { %p4452_p11 = por %p4451_p10, %p4450_p9 }
0x1980   : > { %p4448_p8 = pneg %p4447_p7 }
0x1981   : > { %p4454_p0 = por %p4453_p12, %p4452_p11 }
0x1983   : > { %p4455_p13 = pnand %p4454_p0, %p4448_p8 }
0x1985   : > { %4458 = shalt.err (!%p4455_p13)
}
0x1986   : > { %4220 = dma.vmem_to_hbm [thread:$0]  (%p4814_p5), %s3555_s6, 64, %s5177_s7, %s3532_s8   ;;  %4427 = vrcp.f32 %v3481_v48  ;;  %v3526_v60 = vpop.permute.xlu0 %3525 }
0x1987   : > { %s1436_s19 = scalar_lea.vmem %s4774_s1, %s4835_s10 }
0x1990   : > { %v4428_v26 = vpop.eup %4427 }
0x1991   : > { %v3485_v53 = vmul.f32 %v4428_v26, %v4424_v43 }
0x19f5   : > { %v3498_v32 = vpop.xlane.xlu1 %3497 }
0x19f6   : > { %4429 = vrcp.f32 %v3498_v32 }
0x19f9   : > { %v3514_v55 = vpop.permute.xlu1 %3513 }
0x19fa   : > { %v3518_v56 = vsel %vm3462_vm13, %v3485_v53, %v3514_v55 }
0x19fb   : > { %v3521_v57 = vsel %vm3519_vm15, %v3518_v56, 0.0 }
0x19fc   : > { %3523 = vst [vmem:[%s5155_s12 + $0x8] sm:$0xf] %v3521_v57 }
0x1a00   : > { %v4430_v58 = vpop.eup %4429 }
0x1a01   : > { %v3500_v59 = vmul.f32 %v4430_v58, %v4426_v63 }
0x1a03   : > { %v3528_v61 = vsel %vm3462_vm13, %v3500_v59, %v3526_v60 }
0x1a04   : > { %v3529_v34 = vsel %vm3519_vm15, %v3528_v61, 0.0 }
0x1a05   : > { %3530 = vst [vmem:[%s1436_s19] sm:$0x7] %v3529_v34 }
0x1a06 PF: > { %p4226_p5 = scmp.ge.s32.totalorder %s4493_s4, 2  ;;  %s3572_s20 = sand.u32 1, %s4481_s17  }
0x1a07   : > { %s3573_s7 = scalar_lea.sflag [#allocation4], %s3572_s20 }
0x1a08   : > { %p4223_p1 = pnand %p4226_p5, %p4818_p6 }
0x1a0a   : > { %4476 = dma.done.wait (!%p4223_p1), %s3573_s7, 64  }
0x1a0b   : > { %4478 = vsyncadd (!%p4223_p1), %s3573_s7, 4294967232  ;;  %p102_p2 = scmp.ge.s32.totalorder %s4801_s11, 4   ;;  %s5318_s17 = smov %s4485_s28 }
0x1a0c   : > { %s5319_s28 = smov %s4489_s2  ;;  %s5320_s2 = smov %s4812_s18 }
0x1a0d   : > { %s5321_s4 = smov %s4801_s11  ;;  %104 = sbr.rel (!%p102_p2) target bundleno = 85 (0x55), region = 306 }
0x1a14   :  { %3593 = vsyncpa [#allocation4], 1 }
0x1a15   :  { %3595 = vsyncpa [#allocation4 + $0x1], 1 }

</bundles_post_ra>
